<compile_context>
chip_gen: v5e
topology: v5e:2x2
jax: 0.10.0
libtpu: 0.0.40
codegen_flags: <defaults>
</compile_context>

<pallas_src>
import math
import numpy as np
import jax
import jax.numpy as jnp
from jax.experimental import pallas as pl
from jax.experimental.pallas import tpu as pltpu

# -------------------- config (small shapes consistent with the forward) ------
STATE_DIM   = 8
ACTION_DIM  = 8
NUM_QUERIES = 8          # action chunk length == num decoder queries (ACT)
HIDDEN      = 32         # transformer.d_model
NHEADS      = 4
DH          = HIDDEN // NHEADS
DIM_FFN     = 64
LATENT_DIM  = 32         # fixed inside DETRVAE.__init__
CAMERAS     = ["cam0"]
BACKBONE_CH = 12         # backbones[0].num_channels
IMG_H = IMG_W = 8
BATCH = 2

S_ENC = 2 + NUM_QUERIES                  # [actions..., cls, qpos] (reordered)
HW    = IMG_H * IMG_W * len(CAMERAS)     # image tokens
S_TR  = HW + 2                           # [image tokens..., latent, proprio]
ATT_SCALE = 1.0 / math.sqrt(DH)
OUT_W = 128                              # lane-dense packed output width


# ====================== static slab layouts ===================================
def _layout(items):
    """items: [(name, nrows)]. 8-row-aligned offsets -> (offset dict, total)."""
    off, r = {}, 0
    for name, n in items:
        off[name] = r
        r += -(-n // 8) * 8
    return off, r


_W32_ITEMS = [
    ("cls", 1), ("aproj_w", ACTION_DIM), ("aproj_b", 1),
    ("lo_w", LATENT_DIM), ("lo_b", 1),
    ("conv_w", 3), ("conv_b", 1),
    ("e0_wo", HIDDEN), ("e0_bo", 1), ("e0_n1", 2),
    ("e0_w2", DIM_FFN), ("e0_b2", 1), ("e0_n2", 2),
    ("e1_wo", HIDDEN), ("e1_bo", 1), ("e1_n1", 2),
    ("e1_w2", DIM_FFN), ("e1_b2", 1), ("e1_n2", 2),
    ("d_wo", HIDDEN), ("d_bo", 1), ("d_n2", 2),
    ("d_w2", DIM_FFN), ("d_b2", 1), ("d_n3", 2),
    ("tgt1", NUM_QUERIES), ("d_qc", NUM_QUERIES),
]
_W64_ITEMS = [
    ("jr_w", STATE_DIM), ("jr_b", 1),
    ("e0_w1", HIDDEN), ("e0_b1", 1),
    ("e1_w1", HIDDEN), ("e1_b1", 1),
    ("d_w1", HIDDEN), ("d_b1", 1),
    ("d_wkv", HIDDEN), ("d_kvb", S_TR),
]
_W96_ITEMS = [
    ("e0_wqkv", HIDDEN), ("e0_qkvb", S_ENC),
    ("e1_wqkv", HIDDEN), ("e1_qkvb", S_TR),
]
_W128_ITEMS = [
    ("lp_w", HIDDEN), ("lp_b", 1),
    ("head_w", HIDDEN), ("head_b", 1),
]
OFF32, ROWS32 = _layout(_W32_ITEMS)
OFF64, ROWS64 = _layout(_W64_ITEMS)
OFF96, ROWS96 = _layout(_W96_ITEMS)
OFF128, ROWS128 = _layout(_W128_ITEMS)


def _pack_slab(entries, items, offsets, total_rows, width):
    slab = np.zeros((total_rows, width), np.float32)
    for name, n in items:
        a = np.asarray(entries[name], np.float32)
        assert a.shape == (n, width), (name, a.shape, (n, width))
        slab[offsets[name]:offsets[name] + n, :] = a
    return jnp.asarray(slab)


# ====================== in-kernel building blocks =============================
def _layer_norm(x, g, b, eps=1e-5):
    mu = jnp.mean(x, axis=-1, keepdims=True)
    var = jnp.mean((x - mu) ** 2, axis=-1, keepdims=True)
    return (x - mu) * jax.lax.rsqrt(var + eps) * g + b


def _softmax_rows(s):
    # approx reciprocal rides the otherwise-idle EUP slot; rows sum to ~1.
    m = jnp.max(s, axis=-1, keepdims=True)
    p = jnp.exp(s - m)
    return p * pl.reciprocal(jnp.sum(p, axis=-1, keepdims=True), approx=True)


# ============================ fused kernel ====================================
def _fused_kernel(actions_ref, qpos_ref, keybias_ref, eps_ref, pixels_ref,
                  w32_ref, w64_ref, w96_ref, w128_ref,
                  out_ref, x_scr, src_scr):
    f32 = jnp.float32

    def r32(name, n):
        o = OFF32[name]
        return w32_ref[o:o + n, :]

    def r64(name, n):
        o = OFF64[name]
        return w64_ref[o:o + n, :]

    def r96(name, n):
        o = OFF96[name]
        return w96_ref[o:o + n, :]

    def r128(name, n):
        o = OFF128[name]
        return w128_ref[o:o + n, :]

    def mha(q_all, kv_all, wo, bo, key_bias=None):
        """q_all: (Sq, H) = all-head Q; kv_all: (Sk, 2H) = [K|V] packed.

        Per-head 8-lane slices + 8-row-aligned Wo slices; output projection is
        accumulated per head (no lane concatenation anywhere)."""
        acc = None
        for h in range(NHEADS):
            qh = q_all[:, h * DH:(h + 1) * DH]
            kh = kv_all[:, h * DH:(h + 1) * DH]
            vh = kv_all[:, HIDDEN + h * DH:HIDDEN + (h + 1) * DH]
            s = jax.lax.dot_general(qh, kh, (((1,), (1,)), ((), ())),
                                    preferred_element_type=f32) * ATT_SCALE
            if key_bias is not None:
                s = s + key_bias
            p = _softmax_rows(s)
            pv = jnp.dot(p, vh, preferred_element_type=f32)
            c = jnp.dot(pv, wo[h * DH:(h + 1) * DH, :],
                        preferred_element_type=f32)
            acc = c if acc is None else acc + c
        return acc + bo

    def enc_layer(x, pre, seq, key_bias=None):
        """DETR post-norm encoder layer; pos-emb folded into the qkv bias."""
        qkv = jnp.dot(x, r96(pre + "_wqkv", HIDDEN),
                      preferred_element_type=f32) + r96(pre + "_qkvb", seq)
        att = mha(qkv[:, :HIDDEN], qkv[:, HIDDEN:],
                  r32(pre + "_wo", HIDDEN), r32(pre + "_bo", 1), key_bias)
        n1 = r32(pre + "_n1", 2)
        x = _layer_norm(x + att, n1[0:1, :], n1[1:2, :])
        h = jax.nn.relu(jnp.dot(x, r64(pre + "_w1", HIDDEN),
                                preferred_element_type=f32)
                        + r64(pre + "_b1", 1))
        ff = jnp.dot(h, r32(pre + "_w2", DIM_FFN),
                     preferred_element_type=f32) + r32(pre + "_b2", 1)
        n2 = r32(pre + "_n2", 2)
        return _layer_norm(x + ff, n2[0:1, :], n2[1:2, :])

    # ------------------------- CVAE encode() ---------------------------------
    a_emb = jnp.dot(actions_ref[...], r32("aproj_w", ACTION_DIM),
                    preferred_element_type=f32) + r32("aproj_b", 1)
    # joint-proj and robot-state-proj share qpos -> one packed (8,64) matmul
    jr = jnp.dot(qpos_ref[...], r64("jr_w", STATE_DIM),
                 preferred_element_type=f32) + r64("jr_b", 1)
    q_emb = jr[:, :HIDDEN]
    proprio = jr[:, HIDDEN:]

    # encoder input = [actions..., cls, qpos] (permutation of the torch order;
    # pos table / key mask are permuted identically at init).
    x_scr[0:NUM_QUERIES, :] = a_emb
    x_scr[NUM_QUERIES:NUM_QUERIES + 1, :] = r32("cls", 1)
    x_scr[NUM_QUERIES + 1:NUM_QUERIES + 2, :] = q_emb
    y = enc_layer(x_scr[...], "e0", S_ENC, key_bias=keybias_ref[...])
    cls_out = y[NUM_QUERIES:NUM_QUERIES + 1, :]

    # latent_proj padded to 128 lanes: [mu | logvar | 0] in one lane-dense row
    lp = jnp.dot(cls_out, r128("lp_w", HIDDEN),
                 preferred_element_type=f32) + r128("lp_b", 1)        # (1,128)
    mu = lp[:, :LATENT_DIM]
    logvar = lp[:, LATENT_DIM:2 * LATENT_DIM]
    z = mu + jnp.exp(0.5 * logvar) * eps_ref[...]                     # reparam
    latent = jnp.dot(z, r32("lo_w", LATENT_DIM),
                     preferred_element_type=f32) + r32("lo_b", 1)

    # ------------------- backbone conv + DETR transformer --------------------
    # backbone 1x1 conv composed with input_proj 1x1 conv -> one (3->H) matmul
    feat = jnp.dot(pixels_ref[...], r32("conv_w", 3),
                   preferred_element_type=f32) + r32("conv_b", 1)     # (HW, H)
    src_scr[0:HW, :] = feat
    src_scr[HW:HW + 1, :] = latent
    src_scr[HW + 1:HW + 2, :] = proprio
    memory = enc_layer(src_scr[...], "e1", S_TR)

    # decoder: self-attn on tgt=0 and its norm are hoisted to init (tgt1, Qc);
    # in-kernel decoder starts at the cross-attention.
    kv = jnp.dot(memory, r64("d_wkv", HIDDEN),
                 preferred_element_type=f32) + r64("d_kvb", S_TR)     # (S_TR,64)
    att = mha(r32("d_qc", NUM_QUERIES), kv,
              r32("d_wo", HIDDEN), r32("d_bo", 1))
    n2 = r32("d_n2", 2)
    tgt = _layer_norm(r32("tgt1", NUM_QUERIES) + att, n2[0:1, :], n2[1:2, :])
    h2 = jax.nn.relu(jnp.dot(tgt, r64("d_w1", HIDDEN),
                             preferred_element_type=f32) + r64("d_b1", 1))
    ff = jnp.dot(h2, r32("d_w2", DIM_FFN),
                 preferred_element_type=f32) + r32("d_b2", 1)
    n3 = r32("d_n3", 2)
    hs = _layer_norm(tgt + ff, n3[0:1, :], n3[1:2, :])

    # -------------------------- packed outputs --------------------------------
    # rows 0..NQ-1: [action_head | is_pad_head | 0...]; row NQ: [mu|logvar|0...]
    head = jnp.dot(hs, r128("head_w", HIDDEN),
                   preferred_element_type=f32) + r128("head_b", 1)    # (NQ,128)
    out_ref[0:NUM_QUERIES, :] = head
    out_ref[NUM_QUERIES:NUM_QUERIES + 1, :] = lp


# ============================ pallas_call wrapper =============================
def _fused_call(p, actions, qpos3, keybias3, eps3, pixels3):
    B = qpos3.shape[0]
    w32, w64, w96, w128 = p["w32"], p["w64"], p["w96"], p["w128"]

    in_specs = [
        pl.BlockSpec((None, NUM_QUERIES, ACTION_DIM), lambda b: (b, 0, 0)),
        pl.BlockSpec((None, 1, STATE_DIM), lambda b: (b, 0, 0)),
        pl.BlockSpec((None, 1, S_ENC), lambda b: (b, 0, 0)),
        pl.BlockSpec((None, 1, LATENT_DIM), lambda b: (b, 0, 0)),
        pl.BlockSpec((None, HW, 3), lambda b: (b, 0, 0)),
        pl.BlockSpec(w32.shape, lambda b: (0, 0)),
        pl.BlockSpec(w64.shape, lambda b: (0, 0)),
        pl.BlockSpec(w96.shape, lambda b: (0, 0)),
        pl.BlockSpec(w128.shape, lambda b: (0, 0)),
    ]

    # advisory cost hint so XLA overlaps the call with surrounding glue ops
    flops_per_b = 2 * (
        NUM_QUERIES * ACTION_DIM * HIDDEN + STATE_DIM * 2 * HIDDEN
        + S_ENC * HIDDEN * (3 * HIDDEN + HIDDEN + 2 * DIM_FFN)
        + S_TR * HIDDEN * (3 * HIDDEN + HIDDEN + 2 * DIM_FFN + 2 * HIDDEN)
        + NHEADS * DH * 2 * (S_ENC * S_ENC + S_TR * S_TR + NUM_QUERIES * S_TR)
        + NUM_QUERIES * HIDDEN * (2 * DIM_FFN + HIDDEN + OUT_W)
        + HW * 3 * HIDDEN + HIDDEN * OUT_W + LATENT_DIM * HIDDEN)
    trans_per_b = NHEADS * (S_ENC * S_ENC + S_TR * S_TR
                            + NUM_QUERIES * S_TR) + LATENT_DIM
    bytes_accessed = 4 * (w32.size + w64.size + w96.size + w128.size
                          + B * (NUM_QUERIES * ACTION_DIM + STATE_DIM + S_ENC
                                 + LATENT_DIM + HW * 3
                                 + (NUM_QUERIES + 1) * OUT_W))

    return pl.pallas_call(
        _fused_kernel,
        out_shape=jax.ShapeDtypeStruct((B, NUM_QUERIES + 1, OUT_W), jnp.float32),
        grid=(B,),
        in_specs=in_specs,
        out_specs=pl.BlockSpec((None, NUM_QUERIES + 1, OUT_W),
                               lambda b: (b, 0, 0)),
        scratch_shapes=[pltpu.VMEM((S_ENC, HIDDEN), jnp.float32),
                        pltpu.VMEM((S_TR, HIDDEN), jnp.float32)],
        compiler_params=pltpu.CompilerParams(
            dimension_semantics=("parallel",)),
        cost_estimate=pl.CostEstimate(flops=B * flops_per_b,
                                      transcendentals=B * trans_per_b,
                                      bytes_accessed=bytes_accessed),
    )(actions, qpos3, keybias3, eps3, pixels3, w32, w64, w96, w128)


# ------------------------- positional tables ---------------------------------
def get_sinusoid_encoding_table(n_position, d_hid):
    def angle_vec(pos):
        return [pos / np.power(10000, 2 * (j // 2) / d_hid) for j in range(d_hid)]
    tab = np.array([angle_vec(p) for p in range(n_position)])
    tab[:, 0::2] = np.sin(tab[:, 0::2])
    tab[:, 1::2] = np.cos(tab[:, 1::2])
    return jnp.asarray(tab[None], dtype=jnp.float32)          # (1, n_pos, d_hid)


def position_embedding_sine(h, w, d_model, temperature=10000.0):
    npf = d_model // 2
    mask = np.ones((1, h, w))
    y_embed = mask.cumsum(1)
    x_embed = mask.cumsum(2)
    eps = 1e-6
    scale = 2 * math.pi
    y_embed = y_embed / (y_embed[:, -1:, :] + eps) * scale
    x_embed = x_embed / (x_embed[:, :, -1:] + eps) * scale
    dim_t = temperature ** (2 * (np.arange(npf) // 2) / npf)
    pos_x = x_embed[..., None] / dim_t
    pos_y = y_embed[..., None] / dim_t
    pos_x = np.stack((np.sin(pos_x[..., 0::2]), np.cos(pos_x[..., 1::2])),
                     axis=4).reshape(1, h, w, npf)
    pos_y = np.stack((np.sin(pos_y[..., 0::2]), np.cos(pos_y[..., 1::2])),
                     axis=4).reshape(1, h, w, npf)
    pos = np.concatenate((pos_y, pos_x), axis=3).transpose(0, 3, 1, 2)
    return jnp.asarray(pos, dtype=jnp.float32)                 # (1, d_model, h, w)


# ------------------------- parameter init (pre-packed slabs) ------------------
def init_params(key):
    kit = iter(jax.random.split(key, 128))

    def nrm(shape, s=0.05):
        return jax.random.normal(next(kit), shape, jnp.float32) * s

    def attn_raw():
        return dict(wq=nrm((HIDDEN, HIDDEN)), bq=nrm((HIDDEN,)),
                    wk=nrm((HIDDEN, HIDDEN)), bk=nrm((HIDDEN,)),
                    wv=nrm((HIDDEN, HIDDEN)), bv=nrm((HIDDEN,)),
                    wo=nrm((HIDDEN, HIDDEN)), bo=nrm((HIDDEN,)))

    def norm_raw():
        return 1.0 + nrm((HIDDEN,)), nrm((HIDDEN,))

    def ffn_raw():
        return dict(w1=nrm((DIM_FFN, HIDDEN)), b1=nrm((DIM_FFN,)),
                    w2=nrm((HIDDEN, DIM_FFN)), b2=nrm((HIDDEN,)))

    def qkv_weight(a):
        return jnp.concatenate([a["wq"].T, a["wk"].T, a["wv"].T], axis=1)

    def qkv_posbias(a, pos):
        # (x+pos)Wq^T + bq = xWq^T + (pos Wq^T + bq); same for K; V gets bv.
        s = pos.shape[0]
        return jnp.concatenate(
            [pos @ a["wq"].T + a["bq"],
             pos @ a["wk"].T + a["bk"],
             jnp.broadcast_to(a["bv"], (s, HIDDEN))], axis=1)

    def mha_ref(a, q_in, k_in, v_in):
        q = q_in @ a["wq"].T + a["bq"]
        k = k_in @ a["wk"].T + a["bk"]
        v = v_in @ a["wv"].T + a["bv"]
        outs = []
        for h in range(NHEADS):
            sl = slice(h * DH, (h + 1) * DH)
            p = jax.nn.softmax((q[:, sl] @ k[:, sl].T) * ATT_SCALE, axis=-1)
            outs.append(p @ v[:, sl])
        return jnp.concatenate(outs, axis=-1) @ a["wo"].T + a["bo"]

    def lnorm(x, g, b, eps=1e-5):
        m = x.mean(-1, keepdims=True)
        v = ((x - m) ** 2).mean(-1, keepdims=True)
        return (x - m) * jax.lax.rsqrt(v + eps) * g + b

    # ---- raw module parameters (torch-conventional (out,in) weights) --------
    aproj_w, aproj_b = nrm((HIDDEN, ACTION_DIM)), nrm((HIDDEN,))
    jproj_w, jproj_b = nrm((HIDDEN, STATE_DIM)), nrm((HIDDEN,))
    rproj_w, rproj_b = nrm((HIDDEN, STATE_DIM)), nrm((HIDDEN,))
    cls_embed = nrm((1, HIDDEN), 1.0)
    latent_proj_w, latent_proj_b = nrm((2 * LATENT_DIM, HIDDEN)), nrm((2 * LATENT_DIM,))
    latent_out_w, latent_out_b = nrm((HIDDEN, LATENT_DIM)), nrm((HIDDEN,))
    action_head_w, action_head_b = nrm((ACTION_DIM, HIDDEN)), nrm((ACTION_DIM,))
    is_pad_head_w, is_pad_head_b = nrm((1, HIDDEN)), nrm((1,))
    query_embed = nrm((NUM_QUERIES, HIDDEN), 1.0)
    additional_pos = nrm((2, HIDDEN), 1.0)

    # linear backbone 1x1 conv composed with input_proj 1x1 conv:
    # y = Wp (Wb x + bb) + bp  ->  W = Wp Wb, b = Wp bb + bp
    backbone_w, backbone_b = nrm((BACKBONE_CH, 3)), nrm((BACKBONE_CH,))
    inproj_w, inproj_b = nrm((HIDDEN, BACKBONE_CH)), nrm((HIDDEN,))
    conv_w = inproj_w @ backbone_w
    conv_b = inproj_w @ backbone_b + inproj_b

    e0_attn = attn_raw(); e0_n1g, e0_n1b = norm_raw()
    e0_ffn = ffn_raw();   e0_n2g, e0_n2b = norm_raw()
    e1_attn = attn_raw(); e1_n1g, e1_n1b = norm_raw()
    e1_ffn = ffn_raw();   e1_n2g, e1_n2b = norm_raw()
    d_sa = attn_raw();    d_n1g, d_n1b = norm_raw()
    d_ca = attn_raw();    d_n2g, d_n2b = norm_raw()
    d_ffn = ffn_raw();    d_n3g, d_n3b = norm_raw()

    # ---- positional tables (permuted to the kernel token orders) ------------
    pt = get_sinusoid_encoding_table(S_ENC, HIDDEN)[0]          # [cls,qpos,act]
    pos_enc = jnp.concatenate([pt[2:], pt[0:2]], axis=0)        # [act...,cls,qpos]
    img_pos = position_embedding_sine(IMG_H, IMG_W, HIDDEN)
    pos_cams = jnp.concatenate([img_pos] * len(CAMERAS), axis=3)
    pos_seq = pos_cams[0].reshape(HIDDEN, -1).T                 # (HW, H)
    pos_tr = jnp.concatenate([pos_seq, additional_pos], axis=0)  # [img...,lat,prop]

    # ---- decoder hoisting: self-attn(tgt=0) + norm1 and cross-attn queries --
    tgt0 = jnp.zeros((NUM_QUERIES, HIDDEN), jnp.float32)
    sa_out = mha_ref(d_sa, query_embed, query_embed, tgt0)
    tgt1 = lnorm(tgt0 + sa_out, d_n1g, d_n1b)
    d_qc = (tgt1 + query_embed) @ d_ca["wq"].T + d_ca["bq"]
    d_wkv = jnp.concatenate([d_ca["wk"].T, d_ca["wv"].T], axis=1)
    d_kvb = jnp.concatenate(
        [pos_tr @ d_ca["wk"].T + d_ca["bk"],
         jnp.broadcast_to(d_ca["bv"], (S_TR, HIDDEN))], axis=1)

    def stack2(g, b):
        return jnp.stack([g, b], axis=0)

    ent32 = {
        "cls": cls_embed,
        "aproj_w": aproj_w.T, "aproj_b": aproj_b[None, :],
        "lo_w": latent_out_w.T, "lo_b": latent_out_b[None, :],
        "conv_w": conv_w.T, "conv_b": conv_b[None, :],
        "e0_wo": e0_attn["wo"].T, "e0_bo": e0_attn["bo"][None, :],
        "e0_n1": stack2(e0_n1g, e0_n1b), "e0_w2": e0_ffn["w2"].T,
        "e0_b2": e0_ffn["b2"][None, :], "e0_n2": stack2(e0_n2g, e0_n2b),
        "e1_wo": e1_attn["wo"].T, "e1_bo": e1_attn["bo"][None, :],
        "e1_n1": stack2(e1_n1g, e1_n1b), "e1_w2": e1_ffn["w2"].T,
        "e1_b2": e1_ffn["b2"][None, :], "e1_n2": stack2(e1_n2g, e1_n2b),
        "d_wo": d_ca["wo"].T, "d_bo": d_ca["bo"][None, :],
        "d_n2": stack2(d_n2g, d_n2b), "d_w2": d_ffn["w2"].T,
        "d_b2": d_ffn["b2"][None, :], "d_n3": stack2(d_n3g, d_n3b),
        "tgt1": tgt1, "d_qc": d_qc,
    }
    ent64 = {
        "jr_w": jnp.concatenate([jproj_w.T, rproj_w.T], axis=1),
        "jr_b": jnp.concatenate([jproj_b, rproj_b])[None, :],
        "e0_w1": e0_ffn["w1"].T, "e0_b1": e0_ffn["b1"][None, :],
        "e1_w1": e1_ffn["w1"].T, "e1_b1": e1_ffn["b1"][None, :],
        "d_w1": d_ffn["w1"].T, "d_b1": d_ffn["b1"][None, :],
        "d_wkv": d_wkv, "d_kvb": d_kvb,
    }
    ent96 = {
        "e0_wqkv": qkv_weight(e0_attn), "e0_qkvb": qkv_posbias(e0_attn, pos_enc),
        "e1_wqkv": qkv_weight(e1_attn), "e1_qkvb": qkv_posbias(e1_attn, pos_tr),
    }
    lp_w = jnp.concatenate(
        [latent_proj_w.T, jnp.zeros((HIDDEN, OUT_W - 2 * LATENT_DIM), jnp.float32)],
        axis=1)
    lp_b = jnp.concatenate(
        [latent_proj_b, jnp.zeros((OUT_W - 2 * LATENT_DIM,), jnp.float32)])[None, :]
    head_w = jnp.concatenate(
        [action_head_w.T, is_pad_head_w.T,
         jnp.zeros((HIDDEN, OUT_W - ACTION_DIM - 1), jnp.float32)], axis=1)
    head_b = jnp.concatenate(
        [action_head_b, is_pad_head_b,
         jnp.zeros((OUT_W - ACTION_DIM - 1,), jnp.float32)])[None, :]
    ent128 = {"lp_w": lp_w, "lp_b": lp_b, "head_w": head_w, "head_b": head_b}

    return {
        "w32": _pack_slab(ent32, _W32_ITEMS, OFF32, ROWS32, HIDDEN),
        "w64": _pack_slab(ent64, _W64_ITEMS, OFF64, ROWS64, 2 * HIDDEN),
        "w96": _pack_slab(ent96, _W96_ITEMS, OFF96, ROWS96, 3 * HIDDEN),
        "w128": _pack_slab(ent128, _W128_ITEMS, OFF128, ROWS128, OUT_W),
    }


# ------------------------- DETRVAE forward ------------------------------------
def detrvae_forward(params, qpos, image, env_state, actions, is_pad, noise_key):
    """Matches DETRVAE.forward (backbones is not None, vq=False, training path)."""
    del env_state  # unused in the backbones-not-None branch (as in PyTorch)
    B = qpos.shape[0]
    num_cam = image.shape[1]

    # key-padding bias in kernel token order [actions..., cls, qpos]
    key_bias = jnp.concatenate(
        [jnp.where(is_pad, -1e9, 0.0).astype(jnp.float32),
         jnp.zeros((B, 2), jnp.float32)], axis=1)[:, None, :]      # (B,1,S_ENC)
    eps = jax.random.normal(noise_key, (B, 1, LATENT_DIM), jnp.float32)
    qpos3 = qpos.astype(jnp.float32)[:, None, :]

    # cameras concatenated along width, flattened to (B, H*ncam*W, 3) matching
    # DETR's flatten(2) token order
    pixels = jnp.transpose(image.astype(jnp.float32),
                           (0, 3, 1, 4, 2)).reshape(B, IMG_H * num_cam * IMG_W, 3)

    out = _fused_call(params, actions.astype(jnp.float32),
                      qpos3, key_bias, eps, pixels)                # (B,NQ+1,128)
    a_hat = out[:, :NUM_QUERIES, :ACTION_DIM]
    is_pad_hat = out[:, :NUM_QUERIES, ACTION_DIM:ACTION_DIM + 1]
    mu = out[:, NUM_QUERIES, :LATENT_DIM]
    logvar = out[:, NUM_QUERIES, LATENT_DIM:2 * LATENT_DIM]
    return a_hat, is_pad_hat, [mu, logvar], None, None


# ============================== main ==========================================
if __name__ == "__main__":
    key = jax.random.PRNGKey(0)
    pkey, qk, ik, ak, nk = jax.random.split(key, 5)
    params = init_params(pkey)

    qpos = jax.random.normal(qk, (BATCH, STATE_DIM), jnp.float32)
    image = jax.random.normal(
        ik, (BATCH, len(CAMERAS), 3, IMG_H, IMG_W), jnp.float32)
    actions = jax.random.normal(ak, (BATCH, NUM_QUERIES, ACTION_DIM), jnp.float32)
    is_pad = jnp.broadcast_to(jnp.arange(NUM_QUERIES) >= 6,
                              (BATCH, NUM_QUERIES))
    env_state = None

    fwd = jax.jit(detrvae_forward)
    a_hat, is_pad_hat, (mu, logvar), probs, binaries = fwd(
        params, qpos, image, env_state, actions, is_pad, nk)
    jax.block_until_ready((a_hat, is_pad_hat, mu, logvar))

    assert a_hat.shape == (BATCH, NUM_QUERIES, ACTION_DIM)
    assert is_pad_hat.shape == (BATCH, NUM_QUERIES, 1)
    assert mu.shape == (BATCH, LATENT_DIM) and logvar.shape == (BATCH, LATENT_DIM)
    assert bool(jnp.all(jnp.isfinite(a_hat)))
    assert bool(jnp.all(jnp.isfinite(is_pad_hat)))
    print("KERNEL_OK")
</pallas_src>

<mosaic_0001>
module attributes {stable_mosaic.version = 11 : i64} {
  func.func @_fused_kernel(%arg0: i32, %arg1: memref<1x8x8xf32, #tpu.memory_space<vmem>>, %arg2: memref<1x1x8xf32, #tpu.memory_space<vmem>>, %arg3: memref<1x1x10xf32, #tpu.memory_space<vmem>>, %arg4: memref<1x1x32xf32, #tpu.memory_space<vmem>>, %arg5: memref<1x64x3xf32, #tpu.memory_space<vmem>>, %arg6: memref<480x32xf32, #tpu.memory_space<vmem>>, %arg7: memref<240x64xf32, #tpu.memory_space<vmem>>, %arg8: memref<152x96xf32, #tpu.memory_space<vmem>>, %arg9: memref<80x128xf32, #tpu.memory_space<vmem>>, %arg10: memref<1x9x128xf32, #tpu.memory_space<vmem>>, %arg11: memref<10x32xf32, #tpu.memory_space<vmem>>, %arg12: memref<66x32xf32, #tpu.memory_space<vmem>>) attributes {dimension_semantics = [#tpu.dimension_semantics<parallel>], iteration_bounds = array<i64: 2>, scalar_prefetch = 0 : i64, scratch_operands = 2 : i64, tpu.core_type = #tpu.core_type<tc>, window_params = [{transform_indices = @transform_0, window_bounds = array<i64: 1, 8, 8>}, {transform_indices = @transform_1, window_bounds = array<i64: 1, 1, 8>}, {transform_indices = @transform_2, window_bounds = array<i64: 1, 1, 10>}, {transform_indices = @transform_3, window_bounds = array<i64: 1, 1, 32>}, {transform_indices = @transform_4, window_bounds = array<i64: 1, 64, 3>}, {pipeline_mode = #tpu.pipeline_mode<synchronous>, transform_indices = @transform_5, window_bounds = array<i64: 480, 32>}, {pipeline_mode = #tpu.pipeline_mode<synchronous>, transform_indices = @transform_6, window_bounds = array<i64: 240, 64>}, {pipeline_mode = #tpu.pipeline_mode<synchronous>, transform_indices = @transform_7, window_bounds = array<i64: 152, 96>}, {pipeline_mode = #tpu.pipeline_mode<synchronous>, transform_indices = @transform_8, window_bounds = array<i64: 80, 128>}, {transform_indices = @transform_9, window_bounds = array<i64: 1, 9, 128>}]} {
    %c0 = arith.constant 0 : index
    %c0_0 = arith.constant 0 : index
    %c0_1 = arith.constant 0 : index
    %0 = vector.load %arg1[%c0, %c0_0, %c0_1] : memref<1x8x8xf32, #tpu.memory_space<vmem>>, vector<1x8x8xf32>
    %1 = vector.shape_cast %0 : vector<1x8x8xf32> to vector<8x8xf32>
    %c8 = arith.constant 8 : index
    %c0_2 = arith.constant 0 : index
    %2 = vector.load %arg6[%c8, %c0_2] : memref<480x32xf32, #tpu.memory_space<vmem>>, vector<8x32xf32>
    %cst = arith.constant dense<0.000000e+00> : vector<8x32xf32>
    %3 = tpu.matmul %1, %2, %cst {dimension_numbers = #tpu.dot_dimension_numbers<[1], [0], [0], [1], [0, 0, 1, 1], [], []>} : vector<8x8xf32>, vector<8x32xf32>, vector<8x32xf32> -> vector<8x32xf32>
    %c16 = arith.constant 16 : index
    %c0_3 = arith.constant 0 : index
    %4 = vector.load %arg6[%c16, %c0_3] : memref<480x32xf32, #tpu.memory_space<vmem>>, vector<1x32xf32>
    %5 = vector.broadcast %4 : vector<1x32xf32> to vector<8x32xf32>
    %6 = arith.addf %3, %5 : vector<8x32xf32>
    %c0_4 = arith.constant 0 : index
    %c0_5 = arith.constant 0 : index
    %c0_6 = arith.constant 0 : index
    %7 = vector.load %arg2[%c0_4, %c0_5, %c0_6] : memref<1x1x8xf32, #tpu.memory_space<vmem>>, vector<1x1x8xf32>
    %8 = vector.shape_cast %7 : vector<1x1x8xf32> to vector<1x8xf32>
    %c0_7 = arith.constant 0 : index
    %c0_8 = arith.constant 0 : index
    %9 = vector.load %arg7[%c0_7, %c0_8] : memref<240x64xf32, #tpu.memory_space<vmem>>, vector<8x64xf32>
    %cst_9 = arith.constant dense<0.000000e+00> : vector<1x64xf32>
    %10 = tpu.matmul %8, %9, %cst_9 {dimension_numbers = #tpu.dot_dimension_numbers<[1], [0], [0], [1], [0, 0, 1, 1], [], []>} : vector<1x8xf32>, vector<8x64xf32>, vector<1x64xf32> -> vector<1x64xf32>
    %c8_10 = arith.constant 8 : index
    %c0_11 = arith.constant 0 : index
    %11 = vector.load %arg7[%c8_10, %c0_11] : memref<240x64xf32, #tpu.memory_space<vmem>>, vector<1x64xf32>
    %12 = arith.addf %10, %11 : vector<1x64xf32>
    %13 = vector.extract_strided_slice %12 {offsets = [0, 0], sizes = [1, 32], strides = [1, 1]} : vector<1x64xf32> to vector<1x32xf32>
    %14 = vector.extract_strided_slice %12 {offsets = [0, 32], sizes = [1, 32], strides = [1, 1]} : vector<1x64xf32> to vector<1x32xf32>
    %c0_12 = arith.constant 0 : index
    %c0_13 = arith.constant 0 : index
    %15 = vector.load %arg11[%c0_12, %c0_13] : memref<10x32xf32, #tpu.memory_space<vmem>>, vector<8x32xf32>
    tpu.vector_store %arg11[%c0_12, %c0_13], %6 {strides = array<i32>} : memref<10x32xf32, #tpu.memory_space<vmem>>, vector<8x32xf32>,
    %c0_14 = arith.constant 0 : index
    %c0_15 = arith.constant 0 : index
    %16 = vector.load %arg6[%c0_14, %c0_15] : memref<480x32xf32, #tpu.memory_space<vmem>>, vector<1x32xf32>
    %c8_16 = arith.constant 8 : index
    %c0_17 = arith.constant 0 : index
    %17 = vector.load %arg11[%c8_16, %c0_17] : memref<10x32xf32, #tpu.memory_space<vmem>>, vector<1x32xf32>
    tpu.vector_store %arg11[%c8_16, %c0_17], %16 {strides = array<i32>} : memref<10x32xf32, #tpu.memory_space<vmem>>, vector<1x32xf32>,
    %c9 = arith.constant 9 : index
    %c0_18 = arith.constant 0 : index
    %18 = vector.load %arg11[%c9, %c0_18] : memref<10x32xf32, #tpu.memory_space<vmem>>, vector<1x32xf32>
    tpu.vector_store %arg11[%c9, %c0_18], %13 {strides = array<i32>} : memref<10x32xf32, #tpu.memory_space<vmem>>, vector<1x32xf32>,
    %c0_19 = arith.constant 0 : index
    %c0_20 = arith.constant 0 : index
    %19 = vector.load %arg11[%c0_19, %c0_20] : memref<10x32xf32, #tpu.memory_space<vmem>>, vector<10x32xf32>
    %c0_21 = arith.constant 0 : index
    %c0_22 = arith.constant 0 : index
    %c0_23 = arith.constant 0 : index
    %20 = vector.load %arg3[%c0_21, %c0_22, %c0_23] : memref<1x1x10xf32, #tpu.memory_space<vmem>>, vector<1x1x10xf32>
    %21 = vector.shape_cast %20 : vector<1x1x10xf32> to vector<1x10xf32>
    %c0_24 = arith.constant 0 : index
    %c0_25 = arith.constant 0 : index
    %22 = vector.load %arg8[%c0_24, %c0_25] : memref<152x96xf32, #tpu.memory_space<vmem>>, vector<32x96xf32>
    %cst_26 = arith.constant dense<0.000000e+00> : vector<10x96xf32>
    %23 = tpu.matmul %19, %22, %cst_26 {dimension_numbers = #tpu.dot_dimension_numbers<[1], [0], [0], [1], [0, 0, 1, 1], [], []>} : vector<10x32xf32>, vector<32x96xf32>, vector<10x96xf32> -> vector<10x96xf32>
    %c32 = arith.constant 32 : index
    %c0_27 = arith.constant 0 : index
    %24 = vector.load %arg8[%c32, %c0_27] : memref<152x96xf32, #tpu.memory_space<vmem>>, vector<10x96xf32>
    %25 = arith.addf %23, %24 : vector<10x96xf32>
    %26 = vector.extract_strided_slice %25 {offsets = [0, 0], sizes = [10, 32], strides = [1, 1]} : vector<10x96xf32> to vector<10x32xf32>
    %27 = vector.extract_strided_slice %25 {offsets = [0, 32], sizes = [10, 64], strides = [1, 1]} : vector<10x96xf32> to vector<10x64xf32>
    %c80 = arith.constant 80 : index
    %c0_28 = arith.constant 0 : index
    %28 = vector.load %arg6[%c80, %c0_28] : memref<480x32xf32, #tpu.memory_space<vmem>>, vector<32x32xf32>
    %c112 = arith.constant 112 : index
    %c0_29 = arith.constant 0 : index
    %29 = vector.load %arg6[%c112, %c0_29] : memref<480x32xf32, #tpu.memory_space<vmem>>, vector<1x32xf32>
    %30 = vector.extract_strided_slice %26 {offsets = [0, 0], sizes = [10, 8], strides = [1, 1]} : vector<10x32xf32> to vector<10x8xf32>
    %31 = vector.extract_strided_slice %27 {offsets = [0, 0], sizes = [10, 8], strides = [1, 1]} : vector<10x64xf32> to vector<10x8xf32>
    %32 = vector.extract_strided_slice %27 {offsets = [0, 32], sizes = [10, 8], strides = [1, 1]} : vector<10x64xf32> to vector<10x8xf32>
    %cst_30 = arith.constant dense<0.000000e+00> : vector<10x10xf32>
    %33 = tpu.matmul %30, %31, %cst_30 {dimension_numbers = #tpu.dot_dimension_numbers<[1], [1], [0], [0], [0, 0, 1, 0], [], []>} : vector<10x8xf32>, vector<10x8xf32>, vector<10x10xf32> -> vector<10x10xf32>
    %cst_31 = arith.constant 0.353553385 : f32
    %34 = vector.broadcast %cst_31 : f32 to vector<10x10xf32>
    %35 = arith.mulf %33, %34 : vector<10x10xf32>
    %36 = vector.broadcast %21 : vector<1x10xf32> to vector<10x10xf32>
    %37 = arith.addf %35, %36 : vector<10x10xf32>
    %cst_32 = arith.constant dense<0xFF800000> : vector<10xf32>
    %38 = vector.multi_reduction <maximumf>, %37, %cst_32 [1] : vector<10x10xf32> to vector<10xf32>
    %39 = vector.shape_cast %38 : vector<10xf32> to vector<10x1xf32>
    %40 = vector.broadcast %39 : vector<10x1xf32> to vector<10x10xf32>
    %41 = arith.subf %37, %40 : vector<10x10xf32>
    %42 = math.exp %41 : vector<10x10xf32>
    %cst_33 = arith.constant dense<0.000000e+00> : vector<10xf32>
    %43 = vector.multi_reduction <add>, %42, %cst_33 [1] : vector<10x10xf32> to vector<10xf32>
    %44 = vector.shape_cast %43 : vector<10xf32> to vector<10x1xf32>
    %45 = tpu.reciprocal %44 {approx = true} : vector<10x1xf32> -> vector<10x1xf32>
    %46 = vector.broadcast %45 : vector<10x1xf32> to vector<10x10xf32>
    %47 = arith.mulf %42, %46 : vector<10x10xf32>
    %cst_34 = arith.constant dense<0.000000e+00> : vector<10x8xf32>
    %48 = tpu.matmul %47, %32, %cst_34 {dimension_numbers = #tpu.dot_dimension_numbers<[1], [0], [0], [1], [0, 0, 1, 1], [], []>} : vector<10x10xf32>, vector<10x8xf32>, vector<10x8xf32> -> vector<10x8xf32>
    %49 = vector.extract_strided_slice %28 {offsets = [0, 0], sizes = [8, 32], strides = [1, 1]} : vector<32x32xf32> to vector<8x32xf32>
    %cst_35 = arith.constant dense<0.000000e+00> : vector<10x32xf32>
    %50 = tpu.matmul %48, %49, %cst_35 {dimension_numbers = #tpu.dot_dimension_numbers<[1], [0], [0], [1], [0, 0, 1, 1], [], []>} : vector<10x8xf32>, vector<8x32xf32>, vector<10x32xf32> -> vector<10x32xf32>
    %51 = vector.extract_strided_slice %26 {offsets = [0, 8], sizes = [10, 8], strides = [1, 1]} : vector<10x32xf32> to vector<10x8xf32>
    %52 = vector.extract_strided_slice %27 {offsets = [0, 8], sizes = [10, 8], strides = [1, 1]} : vector<10x64xf32> to vector<10x8xf32>
    %53 = vector.extract_strided_slice %27 {offsets = [0, 40], sizes = [10, 8], strides = [1, 1]} : vector<10x64xf32> to vector<10x8xf32>
    %cst_36 = arith.constant dense<0.000000e+00> : vector<10x10xf32>
    %54 = tpu.matmul %51, %52, %cst_36 {dimension_numbers = #tpu.dot_dimension_numbers<[1], [1], [0], [0], [0, 0, 1, 0], [], []>} : vector<10x8xf32>, vector<10x8xf32>, vector<10x10xf32> -> vector<10x10xf32>
    %cst_37 = arith.constant 0.353553385 : f32
    %55 = vector.broadcast %cst_37 : f32 to vector<10x10xf32>
    %56 = arith.mulf %54, %55 : vector<10x10xf32>
    %57 = vector.broadcast %21 : vector<1x10xf32> to vector<10x10xf32>
    %58 = arith.addf %56, %57 : vector<10x10xf32>
    %cst_38 = arith.constant dense<0xFF800000> : vector<10xf32>
    %59 = vector.multi_reduction <maximumf>, %58, %cst_38 [1] : vector<10x10xf32> to vector<10xf32>
    %60 = vector.shape_cast %59 : vector<10xf32> to vector<10x1xf32>
    %61 = vector.broadcast %60 : vector<10x1xf32> to vector<10x10xf32>
    %62 = arith.subf %58, %61 : vector<10x10xf32>
    %63 = math.exp %62 : vector<10x10xf32>
    %cst_39 = arith.constant dense<0.000000e+00> : vector<10xf32>
    %64 = vector.multi_reduction <add>, %63, %cst_39 [1] : vector<10x10xf32> to vector<10xf32>
    %65 = vector.shape_cast %64 : vector<10xf32> to vector<10x1xf32>
    %66 = tpu.reciprocal %65 {approx = true} : vector<10x1xf32> -> vector<10x1xf32>
    %67 = vector.broadcast %66 : vector<10x1xf32> to vector<10x10xf32>
    %68 = arith.mulf %63, %67 : vector<10x10xf32>
    %cst_40 = arith.constant dense<0.000000e+00> : vector<10x8xf32>
    %69 = tpu.matmul %68, %53, %cst_40 {dimension_numbers = #tpu.dot_dimension_numbers<[1], [0], [0], [1], [0, 0, 1, 1], [], []>} : vector<10x10xf32>, vector<10x8xf32>, vector<10x8xf32> -> vector<10x8xf32>
    %70 = vector.extract_strided_slice %28 {offsets = [8, 0], sizes = [8, 32], strides = [1, 1]} : vector<32x32xf32> to vector<8x32xf32>
    %cst_41 = arith.constant dense<0.000000e+00> : vector<10x32xf32>
    %71 = tpu.matmul %69, %70, %cst_41 {dimension_numbers = #tpu.dot_dimension_numbers<[1], [0], [0], [1], [0, 0, 1, 1], [], []>} : vector<10x8xf32>, vector<8x32xf32>, vector<10x32xf32> -> vector<10x32xf32>
    %72 = arith.addf %50, %71 : vector<10x32xf32>
    %73 = vector.extract_strided_slice %26 {offsets = [0, 16], sizes = [10, 8], strides = [1, 1]} : vector<10x32xf32> to vector<10x8xf32>
    %74 = vector.extract_strided_slice %27 {offsets = [0, 16], sizes = [10, 8], strides = [1, 1]} : vector<10x64xf32> to vector<10x8xf32>
    %75 = vector.extract_strided_slice %27 {offsets = [0, 48], sizes = [10, 8], strides = [1, 1]} : vector<10x64xf32> to vector<10x8xf32>
    %cst_42 = arith.constant dense<0.000000e+00> : vector<10x10xf32>
    %76 = tpu.matmul %73, %74, %cst_42 {dimension_numbers = #tpu.dot_dimension_numbers<[1], [1], [0], [0], [0, 0, 1, 0], [], []>} : vector<10x8xf32>, vector<10x8xf32>, vector<10x10xf32> -> vector<10x10xf32>
    %cst_43 = arith.constant 0.353553385 : f32
    %77 = vector.broadcast %cst_43 : f32 to vector<10x10xf32>
    %78 = arith.mulf %76, %77 : vector<10x10xf32>
    %79 = vector.broadcast %21 : vector<1x10xf32> to vector<10x10xf32>
    %80 = arith.addf %78, %79 : vector<10x10xf32>
    %cst_44 = arith.constant dense<0xFF800000> : vector<10xf32>
    %81 = vector.multi_reduction <maximumf>, %80, %cst_44 [1] : vector<10x10xf32> to vector<10xf32>
    %82 = vector.shape_cast %81 : vector<10xf32> to vector<10x1xf32>
    %83 = vector.broadcast %82 : vector<10x1xf32> to vector<10x10xf32>
    %84 = arith.subf %80, %83 : vector<10x10xf32>
    %85 = math.exp %84 : vector<10x10xf32>
    %cst_45 = arith.constant dense<0.000000e+00> : vector<10xf32>
    %86 = vector.multi_reduction <add>, %85, %cst_45 [1] : vector<10x10xf32> to vector<10xf32>
    %87 = vector.shape_cast %86 : vector<10xf32> to vector<10x1xf32>
    %88 = tpu.reciprocal %87 {approx = true} : vector<10x1xf32> -> vector<10x1xf32>
    %89 = vector.broadcast %88 : vector<10x1xf32> to vector<10x10xf32>
    %90 = arith.mulf %85, %89 : vector<10x10xf32>
    %cst_46 = arith.constant dense<0.000000e+00> : vector<10x8xf32>
    %91 = tpu.matmul %90, %75, %cst_46 {dimension_numbers = #tpu.dot_dimension_numbers<[1], [0], [0], [1], [0, 0, 1, 1], [], []>} : vector<10x10xf32>, vector<10x8xf32>, vector<10x8xf32> -> vector<10x8xf32>
    %92 = vector.extract_strided_slice %28 {offsets = [16, 0], sizes = [8, 32], strides = [1, 1]} : vector<32x32xf32> to vector<8x32xf32>
    %cst_47 = arith.constant dense<0.000000e+00> : vector<10x32xf32>
    %93 = tpu.matmul %91, %92, %cst_47 {dimension_numbers = #tpu.dot_dimension_numbers<[1], [0], [0], [1], [0, 0, 1, 1], [], []>} : vector<10x8xf32>, vector<8x32xf32>, vector<10x32xf32> -> vector<10x32xf32>
    %94 = arith.addf %72, %93 : vector<10x32xf32>
    %95 = vector.extract_strided_slice %26 {offsets = [0, 24], sizes = [10, 8], strides = [1, 1]} : vector<10x32xf32> to vector<10x8xf32>
    %96 = vector.extract_strided_slice %27 {offsets = [0, 24], sizes = [10, 8], strides = [1, 1]} : vector<10x64xf32> to vector<10x8xf32>
    %97 = vector.extract_strided_slice %27 {offsets = [0, 56], sizes = [10, 8], strides = [1, 1]} : vector<10x64xf32> to vector<10x8xf32>
    %cst_48 = arith.constant dense<0.000000e+00> : vector<10x10xf32>
    %98 = tpu.matmul %95, %96, %cst_48 {dimension_numbers = #tpu.dot_dimension_numbers<[1], [1], [0], [0], [0, 0, 1, 0], [], []>} : vector<10x8xf32>, vector<10x8xf32>, vector<10x10xf32> -> vector<10x10xf32>
    %cst_49 = arith.constant 0.353553385 : f32
    %99 = vector.broadcast %cst_49 : f32 to vector<10x10xf32>
    %100 = arith.mulf %98, %99 : vector<10x10xf32>
    %101 = vector.broadcast %21 : vector<1x10xf32> to vector<10x10xf32>
    %102 = arith.addf %100, %101 : vector<10x10xf32>
    %cst_50 = arith.constant dense<0xFF800000> : vector<10xf32>
    %103 = vector.multi_reduction <maximumf>, %102, %cst_50 [1] : vector<10x10xf32> to vector<10xf32>
    %104 = vector.shape_cast %103 : vector<10xf32> to vector<10x1xf32>
    %105 = vector.broadcast %104 : vector<10x1xf32> to vector<10x10xf32>
    %106 = arith.subf %102, %105 : vector<10x10xf32>
    %107 = math.exp %106 : vector<10x10xf32>
    %cst_51 = arith.constant dense<0.000000e+00> : vector<10xf32>
    %108 = vector.multi_reduction <add>, %107, %cst_51 [1] : vector<10x10xf32> to vector<10xf32>
    %109 = vector.shape_cast %108 : vector<10xf32> to vector<10x1xf32>
    %110 = tpu.reciprocal %109 {approx = true} : vector<10x1xf32> -> vector<10x1xf32>
    %111 = vector.broadcast %110 : vector<10x1xf32> to vector<10x10xf32>
    %112 = arith.mulf %107, %111 : vector<10x10xf32>
    %cst_52 = arith.constant dense<0.000000e+00> : vector<10x8xf32>
    %113 = tpu.matmul %112, %97, %cst_52 {dimension_numbers = #tpu.dot_dimension_numbers<[1], [0], [0], [1], [0, 0, 1, 1], [], []>} : vector<10x10xf32>, vector<10x8xf32>, vector<10x8xf32> -> vector<10x8xf32>
    %114 = vector.extract_strided_slice %28 {offsets = [24, 0], sizes = [8, 32], strides = [1, 1]} : vector<32x32xf32> to vector<8x32xf32>
    %cst_53 = arith.constant dense<0.000000e+00> : vector<10x32xf32>
    %115 = tpu.matmul %113, %114, %cst_53 {dimension_numbers = #tpu.dot_dimension_numbers<[1], [0], [0], [1], [0, 0, 1, 1], [], []>} : vector<10x8xf32>, vector<8x32xf32>, vector<10x32xf32> -> vector<10x32xf32>
    %116 = arith.addf %94, %115 : vector<10x32xf32>
    %117 = vector.broadcast %29 : vector<1x32xf32> to vector<10x32xf32>
    %118 = arith.addf %116, %117 : vector<10x32xf32>
    %c120 = arith.constant 120 : index
    %c0_54 = arith.constant 0 : index
    %119 = vector.load %arg6[%c120, %c0_54] : memref<480x32xf32, #tpu.memory_space<vmem>>, vector<2x32xf32>
    %120 = arith.addf %19, %118 : vector<10x32xf32>
    %121 = vector.extract_strided_slice %119 {offsets = [0, 0], sizes = [1, 32], strides = [1, 1]} : vector<2x32xf32> to vector<1x32xf32>
    %122 = vector.extract_strided_slice %119 {offsets = [1, 0], sizes = [1, 32], strides = [1, 1]} : vector<2x32xf32> to vector<1x32xf32>
    %cst_55 = arith.constant dense<0.000000e+00> : vector<10xf32>
    %123 = vector.multi_reduction <add>, %120, %cst_55 [1] : vector<10x32xf32> to vector<10xf32>
    %124 = vector.shape_cast %123 : vector<10xf32> to vector<10x1xf32>
    %cst_56 = arith.constant 3.200000e+01 : f32
    %125 = vector.broadcast %cst_56 : f32 to vector<10x1xf32>
    %126 = arith.divf %124, %125 : vector<10x1xf32>
    %127 = vector.broadcast %126 : vector<10x1xf32> to vector<10x32xf32>
    %128 = arith.subf %120, %127 : vector<10x32xf32>
    %129 = arith.mulf %128, %128 : vector<10x32xf32>
    %cst_57 = arith.constant dense<0.000000e+00> : vector<10xf32>
    %130 = vector.multi_reduction <add>, %129, %cst_57 [1] : vector<10x32xf32> to vector<10xf32>
    %131 = vector.shape_cast %130 : vector<10xf32> to vector<10x1xf32>
    %cst_58 = arith.constant 3.200000e+01 : f32
    %132 = vector.broadcast %cst_58 : f32 to vector<10x1xf32>
    %133 = arith.divf %131, %132 : vector<10x1xf32>
    %134 = vector.broadcast %126 : vector<10x1xf32> to vector<10x32xf32>
    %135 = arith.subf %120, %134 : vector<10x32xf32>
    %cst_59 = arith.constant 9.99999974E-6 : f32
    %136 = vector.broadcast %cst_59 : f32 to vector<10x1xf32>
    %137 = arith.addf %133, %136 : vector<10x1xf32>
    %138 = math.rsqrt %137 : vector<10x1xf32>
    %139 = vector.broadcast %138 : vector<10x1xf32> to vector<10x32xf32>
    %140 = arith.mulf %135, %139 : vector<10x32xf32>
    %141 = vector.broadcast %121 : vector<1x32xf32> to vector<10x32xf32>
    %142 = arith.mulf %140, %141 : vector<10x32xf32>
    %143 = vector.broadcast %122 : vector<1x32xf32> to vector<10x32xf32>
    %144 = arith.addf %142, %143 : vector<10x32xf32>
    %c16_60 = arith.constant 16 : index
    %c0_61 = arith.constant 0 : index
    %145 = vector.load %arg7[%c16_60, %c0_61] : memref<240x64xf32, #tpu.memory_space<vmem>>, vector<32x64xf32>
    %cst_62 = arith.constant dense<0.000000e+00> : vector<10x64xf32>
    %146 = tpu.matmul %144, %145, %cst_62 {dimension_numbers = #tpu.dot_dimension_numbers<[1], [0], [0], [1], [0, 0, 1, 1], [], []>} : vector<10x32xf32>, vector<32x64xf32>, vector<10x64xf32> -> vector<10x64xf32>
    %c48 = arith.constant 48 : index
    %c0_63 = arith.constant 0 : index
    %147 = vector.load %arg7[%c48, %c0_63] : memref<240x64xf32, #tpu.memory_space<vmem>>, vector<1x64xf32>
    %148 = vector.broadcast %147 : vector<1x64xf32> to vector<10x64xf32>
    %149 = arith.addf %146, %148 : vector<10x64xf32>
    %cst_64 = arith.constant 0.000000e+00 : f32
    %150 = vector.broadcast %cst_64 : f32 to vector<10x64xf32>
    %151 = arith.maximumf %149, %150 : vector<10x64xf32>
    %c128 = arith.constant 128 : index
    %c0_65 = arith.constant 0 : index
    %152 = vector.load %arg6[%c128, %c0_65] : memref<480x32xf32, #tpu.memory_space<vmem>>, vector<64x32xf32>
    %cst_66 = arith.constant dense<0.000000e+00> : vector<10x32xf32>
    %153 = tpu.matmul %151, %152, %cst_66 {dimension_numbers = #tpu.dot_dimension_numbers<[1], [0], [0], [1], [0, 0, 1, 1], [], []>} : vector<10x64xf32>, vector<64x32xf32>, vector<10x32xf32> -> vector<10x32xf32>
    %c192 = arith.constant 192 : index
    %c0_67 = arith.constant 0 : index
    %154 = vector.load %arg6[%c192, %c0_67] : memref<480x32xf32, #tpu.memory_space<vmem>>, vector<1x32xf32>
    %155 = vector.broadcast %154 : vector<1x32xf32> to vector<10x32xf32>
    %156 = arith.addf %153, %155 : vector<10x32xf32>
    %c200 = arith.constant 200 : index
    %c0_68 = arith.constant 0 : index
    %157 = vector.load %arg6[%c200, %c0_68] : memref<480x32xf32, #tpu.memory_space<vmem>>, vector<2x32xf32>
    %158 = arith.addf %144, %156 : vector<10x32xf32>
    %159 = vector.extract_strided_slice %157 {offsets = [0, 0], sizes = [1, 32], strides = [1, 1]} : vector<2x32xf32> to vector<1x32xf32>
    %160 = vector.extract_strided_slice %157 {offsets = [1, 0], sizes = [1, 32], strides = [1, 1]} : vector<2x32xf32> to vector<1x32xf32>
    %cst_69 = arith.constant dense<0.000000e+00> : vector<10xf32>
    %161 = vector.multi_reduction <add>, %158, %cst_69 [1] : vector<10x32xf32> to vector<10xf32>
    %162 = vector.shape_cast %161 : vector<10xf32> to vector<10x1xf32>
    %cst_70 = arith.constant 3.200000e+01 : f32
    %163 = vector.broadcast %cst_70 : f32 to vector<10x1xf32>
    %164 = arith.divf %162, %163 : vector<10x1xf32>
    %165 = vector.broadcast %164 : vector<10x1xf32> to vector<10x32xf32>
    %166 = arith.subf %158, %165 : vector<10x32xf32>
    %167 = arith.mulf %166, %166 : vector<10x32xf32>
    %cst_71 = arith.constant dense<0.000000e+00> : vector<10xf32>
    %168 = vector.multi_reduction <add>, %167, %cst_71 [1] : vector<10x32xf32> to vector<10xf32>
    %169 = vector.shape_cast %168 : vector<10xf32> to vector<10x1xf32>
    %cst_72 = arith.constant 3.200000e+01 : f32
    %170 = vector.broadcast %cst_72 : f32 to vector<10x1xf32>
    %171 = arith.divf %169, %170 : vector<10x1xf32>
    %172 = vector.broadcast %164 : vector<10x1xf32> to vector<10x32xf32>
    %173 = arith.subf %158, %172 : vector<10x32xf32>
    %cst_73 = arith.constant 9.99999974E-6 : f32
    %174 = vector.broadcast %cst_73 : f32 to vector<10x1xf32>
    %175 = arith.addf %171, %174 : vector<10x1xf32>
    %176 = math.rsqrt %175 : vector<10x1xf32>
    %177 = vector.broadcast %176 : vector<10x1xf32> to vector<10x32xf32>
    %178 = arith.mulf %173, %177 : vector<10x32xf32>
    %179 = vector.broadcast %159 : vector<1x32xf32> to vector<10x32xf32>
    %180 = arith.mulf %178, %179 : vector<10x32xf32>
    %181 = vector.broadcast %160 : vector<1x32xf32> to vector<10x32xf32>
    %182 = arith.addf %180, %181 : vector<10x32xf32>
    %183 = vector.extract_strided_slice %182 {offsets = [8, 0], sizes = [1, 32], strides = [1, 1]} : vector<10x32xf32> to vector<1x32xf32>
    %c0_74 = arith.constant 0 : index
    %c0_75 = arith.constant 0 : index
    %184 = vector.load %arg9[%c0_74, %c0_75] : memref<80x128xf32, #tpu.memory_space<vmem>>, vector<32x128xf32>
    %cst_76 = arith.constant dense<0.000000e+00> : vector<1x128xf32>
    %185 = tpu.matmul %183, %184, %cst_76 {dimension_numbers = #tpu.dot_dimension_numbers<[1], [0], [0], [1], [0, 0, 1, 1], [], []>} : vector<1x32xf32>, vector<32x128xf32>, vector<1x128xf32> -> vector<1x128xf32>
    %c32_77 = arith.constant 32 : index
    %c0_78 = arith.constant 0 : index
    %186 = vector.load %arg9[%c32_77, %c0_78] : memref<80x128xf32, #tpu.memory_space<vmem>>, vector<1x128xf32>
    %187 = arith.addf %185, %186 : vector<1x128xf32>
    %188 = vector.extract_strided_slice %187 {offsets = [0, 0], sizes = [1, 32], strides = [1, 1]} : vector<1x128xf32> to vector<1x32xf32>
    %189 = vector.extract_strided_slice %187 {offsets = [0, 32], sizes = [1, 32], strides = [1, 1]} : vector<1x128xf32> to vector<1x32xf32>
    %cst_79 = arith.constant 5.000000e-01 : f32
    %190 = vector.broadcast %cst_79 : f32 to vector<1x32xf32>
    %191 = arith.mulf %190, %189 : vector<1x32xf32>
    %192 = math.exp %191 : vector<1x32xf32>
    %c0_80 = arith.constant 0 : index
    %c0_81 = arith.constant 0 : index
    %c0_82 = arith.constant 0 : index
    %193 = vector.load %arg4[%c0_80, %c0_81, %c0_82] : memref<1x1x32xf32, #tpu.memory_space<vmem>>, vector<1x1x32xf32>
    %194 = vector.shape_cast %193 : vector<1x1x32xf32> to vector<1x32xf32>
    %195 = arith.mulf %192, %194 : vector<1x32xf32>
    %196 = arith.addf %188, %195 : vector<1x32xf32>
    %c24 = arith.constant 24 : index
    %c0_83 = arith.constant 0 : index
    %197 = vector.load %arg6[%c24, %c0_83] : memref<480x32xf32, #tpu.memory_space<vmem>>, vector<32x32xf32>
    %cst_84 = arith.constant dense<0.000000e+00> : vector<1x32xf32>
    %198 = tpu.matmul %196, %197, %cst_84 {dimension_numbers = #tpu.dot_dimension_numbers<[1], [0], [0], [1], [0, 0, 1, 1], [], []>} : vector<1x32xf32>, vector<32x32xf32>, vector<1x32xf32> -> vector<1x32xf32>
    %c56 = arith.constant 56 : index
    %c0_85 = arith.constant 0 : index
    %199 = vector.load %arg6[%c56, %c0_85] : memref<480x32xf32, #tpu.memory_space<vmem>>, vector<1x32xf32>
    %200 = arith.addf %198, %199 : vector<1x32xf32>
    %c0_86 = arith.constant 0 : index
    %c0_87 = arith.constant 0 : index
    %c0_88 = arith.constant 0 : index
    %201 = vector.load %arg5[%c0_86, %c0_87, %c0_88] : memref<1x64x3xf32, #tpu.memory_space<vmem>>, vector<1x64x3xf32>
    %202 = vector.shape_cast %201 : vector<1x64x3xf32> to vector<64x3xf32>
    %c64 = arith.constant 64 : index
    %c0_89 = arith.constant 0 : index
    %203 = vector.load %arg6[%c64, %c0_89] : memref<480x32xf32, #tpu.memory_space<vmem>>, vector<3x32xf32>
    %cst_90 = arith.constant dense<0.000000e+00> : vector<64x32xf32>
    %204 = tpu.matmul %202, %203, %cst_90 {dimension_numbers = #tpu.dot_dimension_numbers<[1], [0], [0], [1], [0, 0, 1, 1], [], []>} : vector<64x3xf32>, vector<3x32xf32>, vector<64x32xf32> -> vector<64x32xf32>
    %c72 = arith.constant 72 : index
    %c0_91 = arith.constant 0 : index
    %205 = vector.load %arg6[%c72, %c0_91] : memref<480x32xf32, #tpu.memory_space<vmem>>, vector<1x32xf32>
    %206 = vector.broadcast %205 : vector<1x32xf32> to vector<64x32xf32>
    %207 = arith.addf %204, %206 : vector<64x32xf32>
    %c0_92 = arith.constant 0 : index
    %c0_93 = arith.constant 0 : index
    %208 = vector.load %arg12[%c0_92, %c0_93] : memref<66x32xf32, #tpu.memory_space<vmem>>, vector<64x32xf32>
    tpu.vector_store %arg12[%c0_92, %c0_93], %207 {strides = array<i32>} : memref<66x32xf32, #tpu.memory_space<vmem>>, vector<64x32xf32>,
    %c64_94 = arith.constant 64 : index
    %c0_95 = arith.constant 0 : index
    %209 = vector.load %arg12[%c64_94, %c0_95] : memref<66x32xf32, #tpu.memory_space<vmem>>, vector<1x32xf32>
    tpu.vector_store %arg12[%c64_94, %c0_95], %200 {strides = array<i32>} : memref<66x32xf32, #tpu.memory_space<vmem>>, vector<1x32xf32>,
    %c65 = arith.constant 65 : index
    %c0_96 = arith.constant 0 : index
    %210 = vector.load %arg12[%c65, %c0_96] : memref<66x32xf32, #tpu.memory_space<vmem>>, vector<1x32xf32>
    tpu.vector_store %arg12[%c65, %c0_96], %14 {strides = array<i32>} : memref<66x32xf32, #tpu.memory_space<vmem>>, vector<1x32xf32>,
    %c0_97 = arith.constant 0 : index
    %c0_98 = arith.constant 0 : index
    %211 = vector.load %arg12[%c0_97, %c0_98] : memref<66x32xf32, #tpu.memory_space<vmem>>, vector<66x32xf32>
    %c48_99 = arith.constant 48 : index
    %c0_100 = arith.constant 0 : index
    %212 = vector.load %arg8[%c48_99, %c0_100] : memref<152x96xf32, #tpu.memory_space<vmem>>, vector<32x96xf32>
    %cst_101 = arith.constant dense<0.000000e+00> : vector<66x96xf32>
    %213 = tpu.matmul %211, %212, %cst_101 {dimension_numbers = #tpu.dot_dimension_numbers<[1], [0], [0], [1], [0, 0, 1, 1], [], []>} : vector<66x32xf32>, vector<32x96xf32>, vector<66x96xf32> -> vector<66x96xf32>
    %c80_102 = arith.constant 80 : index
    %c0_103 = arith.constant 0 : index
    %214 = vector.load %arg8[%c80_102, %c0_103] : memref<152x96xf32, #tpu.memory_space<vmem>>, vector<66x96xf32>
    %215 = arith.addf %213, %214 : vector<66x96xf32>
    %216 = vector.extract_strided_slice %215 {offsets = [0, 0], sizes = [66, 32], strides = [1, 1]} : vector<66x96xf32> to vector<66x32xf32>
    %217 = vector.extract_strided_slice %215 {offsets = [0, 32], sizes = [66, 64], strides = [1, 1]} : vector<66x96xf32> to vector<66x64xf32>
    %c208 = arith.constant 208 : index
    %c0_104 = arith.constant 0 : index
    %218 = vector.load %arg6[%c208, %c0_104] : memref<480x32xf32, #tpu.memory_space<vmem>>, vector<32x32xf32>
    %c240 = arith.constant 240 : index
    %c0_105 = arith.constant 0 : index
    %219 = vector.load %arg6[%c240, %c0_105] : memref<480x32xf32, #tpu.memory_space<vmem>>, vector<1x32xf32>
    %220 = vector.extract_strided_slice %216 {offsets = [0, 0], sizes = [66, 8], strides = [1, 1]} : vector<66x32xf32> to vector<66x8xf32>
    %221 = vector.extract_strided_slice %217 {offsets = [0, 0], sizes = [66, 8], strides = [1, 1]} : vector<66x64xf32> to vector<66x8xf32>
    %222 = vector.extract_strided_slice %217 {offsets = [0, 32], sizes = [66, 8], strides = [1, 1]} : vector<66x64xf32> to vector<66x8xf32>
    %cst_106 = arith.constant dense<0.000000e+00> : vector<66x66xf32>
    %223 = tpu.matmul %220, %221, %cst_106 {dimension_numbers = #tpu.dot_dimension_numbers<[1], [1], [0], [0], [0, 0, 1, 0], [], []>} : vector<66x8xf32>, vector<66x8xf32>, vector<66x66xf32> -> vector<66x66xf32>
    %cst_107 = arith.constant 0.353553385 : f32
    %224 = vector.broadcast %cst_107 : f32 to vector<66x66xf32>
    %225 = arith.mulf %223, %224 : vector<66x66xf32>
    %cst_108 = arith.constant dense<0xFF800000> : vector<66xf32>
    %226 = vector.multi_reduction <maximumf>, %225, %cst_108 [1] : vector<66x66xf32> to vector<66xf32>
    %227 = vector.shape_cast %226 : vector<66xf32> to vector<66x1xf32>
    %228 = vector.broadcast %227 : vector<66x1xf32> to vector<66x66xf32>
    %229 = arith.subf %225, %228 : vector<66x66xf32>
    %230 = math.exp %229 : vector<66x66xf32>
    %cst_109 = arith.constant dense<0.000000e+00> : vector<66xf32>
    %231 = vector.multi_reduction <add>, %230, %cst_109 [1] : vector<66x66xf32> to vector<66xf32>
    %232 = vector.shape_cast %231 : vector<66xf32> to vector<66x1xf32>
    %233 = tpu.reciprocal %232 {approx = true} : vector<66x1xf32> -> vector<66x1xf32>
    %234 = vector.broadcast %233 : vector<66x1xf32> to vector<66x66xf32>
    %235 = arith.mulf %230, %234 : vector<66x66xf32>
    %cst_110 = arith.constant dense<0.000000e+00> : vector<66x8xf32>
    %236 = tpu.matmul %235, %222, %cst_110 {dimension_numbers = #tpu.dot_dimension_numbers<[1], [0], [0], [1], [0, 0, 1, 1], [], []>} : vector<66x66xf32>, vector<66x8xf32>, vector<66x8xf32> -> vector<66x8xf32>
    %237 = vector.extract_strided_slice %218 {offsets = [0, 0], sizes = [8, 32], strides = [1, 1]} : vector<32x32xf32> to vector<8x32xf32>
    %cst_111 = arith.constant dense<0.000000e+00> : vector<66x32xf32>
    %238 = tpu.matmul %236, %237, %cst_111 {dimension_numbers = #tpu.dot_dimension_numbers<[1], [0], [0], [1], [0, 0, 1, 1], [], []>} : vector<66x8xf32>, vector<8x32xf32>, vector<66x32xf32> -> vector<66x32xf32>
    %239 = vector.extract_strided_slice %216 {offsets = [0, 8], sizes = [66, 8], strides = [1, 1]} : vector<66x32xf32> to vector<66x8xf32>
    %240 = vector.extract_strided_slice %217 {offsets = [0, 8], sizes = [66, 8], strides = [1, 1]} : vector<66x64xf32> to vector<66x8xf32>
    %241 = vector.extract_strided_slice %217 {offsets = [0, 40], sizes = [66, 8], strides = [1, 1]} : vector<66x64xf32> to vector<66x8xf32>
    %cst_112 = arith.constant dense<0.000000e+00> : vector<66x66xf32>
    %242 = tpu.matmul %239, %240, %cst_112 {dimension_numbers = #tpu.dot_dimension_numbers<[1], [1], [0], [0], [0, 0, 1, 0], [], []>} : vector<66x8xf32>, vector<66x8xf32>, vector<66x66xf32> -> vector<66x66xf32>
    %cst_113 = arith.constant 0.353553385 : f32
    %243 = vector.broadcast %cst_113 : f32 to vector<66x66xf32>
    %244 = arith.mulf %242, %243 : vector<66x66xf32>
    %cst_114 = arith.constant dense<0xFF800000> : vector<66xf32>
    %245 = vector.multi_reduction <maximumf>, %244, %cst_114 [1] : vector<66x66xf32> to vector<66xf32>
    %246 = vector.shape_cast %245 : vector<66xf32> to vector<66x1xf32>
    %247 = vector.broadcast %246 : vector<66x1xf32> to vector<66x66xf32>
    %248 = arith.subf %244, %247 : vector<66x66xf32>
    %249 = math.exp %248 : vector<66x66xf32>
    %cst_115 = arith.constant dense<0.000000e+00> : vector<66xf32>
    %250 = vector.multi_reduction <add>, %249, %cst_115 [1] : vector<66x66xf32> to vector<66xf32>
    %251 = vector.shape_cast %250 : vector<66xf32> to vector<66x1xf32>
    %252 = tpu.reciprocal %251 {approx = true} : vector<66x1xf32> -> vector<66x1xf32>
    %253 = vector.broadcast %252 : vector<66x1xf32> to vector<66x66xf32>
    %254 = arith.mulf %249, %253 : vector<66x66xf32>
    %cst_116 = arith.constant dense<0.000000e+00> : vector<66x8xf32>
    %255 = tpu.matmul %254, %241, %cst_116 {dimension_numbers = #tpu.dot_dimension_numbers<[1], [0], [0], [1], [0, 0, 1, 1], [], []>} : vector<66x66xf32>, vector<66x8xf32>, vector<66x8xf32> -> vector<66x8xf32>
    %256 = vector.extract_strided_slice %218 {offsets = [8, 0], sizes = [8, 32], strides = [1, 1]} : vector<32x32xf32> to vector<8x32xf32>
    %cst_117 = arith.constant dense<0.000000e+00> : vector<66x32xf32>
    %257 = tpu.matmul %255, %256, %cst_117 {dimension_numbers = #tpu.dot_dimension_numbers<[1], [0], [0], [1], [0, 0, 1, 1], [], []>} : vector<66x8xf32>, vector<8x32xf32>, vector<66x32xf32> -> vector<66x32xf32>
    %258 = arith.addf %238, %257 : vector<66x32xf32>
    %259 = vector.extract_strided_slice %216 {offsets = [0, 16], sizes = [66, 8], strides = [1, 1]} : vector<66x32xf32> to vector<66x8xf32>
    %260 = vector.extract_strided_slice %217 {offsets = [0, 16], sizes = [66, 8], strides = [1, 1]} : vector<66x64xf32> to vector<66x8xf32>
    %261 = vector.extract_strided_slice %217 {offsets = [0, 48], sizes = [66, 8], strides = [1, 1]} : vector<66x64xf32> to vector<66x8xf32>
    %cst_118 = arith.constant dense<0.000000e+00> : vector<66x66xf32>
    %262 = tpu.matmul %259, %260, %cst_118 {dimension_numbers = #tpu.dot_dimension_numbers<[1], [1], [0], [0], [0, 0, 1, 0], [], []>} : vector<66x8xf32>, vector<66x8xf32>, vector<66x66xf32> -> vector<66x66xf32>
    %cst_119 = arith.constant 0.353553385 : f32
    %263 = vector.broadcast %cst_119 : f32 to vector<66x66xf32>
    %264 = arith.mulf %262, %263 : vector<66x66xf32>
    %cst_120 = arith.constant dense<0xFF800000> : vector<66xf32>
    %265 = vector.multi_reduction <maximumf>, %264, %cst_120 [1] : vector<66x66xf32> to vector<66xf32>
    %266 = vector.shape_cast %265 : vector<66xf32> to vector<66x1xf32>
    %267 = vector.broadcast %266 : vector<66x1xf32> to vector<66x66xf32>
    %268 = arith.subf %264, %267 : vector<66x66xf32>
    %269 = math.exp %268 : vector<66x66xf32>
    %cst_121 = arith.constant dense<0.000000e+00> : vector<66xf32>
    %270 = vector.multi_reduction <add>, %269, %cst_121 [1] : vector<66x66xf32> to vector<66xf32>
    %271 = vector.shape_cast %270 : vector<66xf32> to vector<66x1xf32>
    %272 = tpu.reciprocal %271 {approx = true} : vector<66x1xf32> -> vector<66x1xf32>
    %273 = vector.broadcast %272 : vector<66x1xf32> to vector<66x66xf32>
    %274 = arith.mulf %269, %273 : vector<66x66xf32>
    %cst_122 = arith.constant dense<0.000000e+00> : vector<66x8xf32>
    %275 = tpu.matmul %274, %261, %cst_122 {dimension_numbers = #tpu.dot_dimension_numbers<[1], [0], [0], [1], [0, 0, 1, 1], [], []>} : vector<66x66xf32>, vector<66x8xf32>, vector<66x8xf32> -> vector<66x8xf32>
    %276 = vector.extract_strided_slice %218 {offsets = [16, 0], sizes = [8, 32], strides = [1, 1]} : vector<32x32xf32> to vector<8x32xf32>
    %cst_123 = arith.constant dense<0.000000e+00> : vector<66x32xf32>
    %277 = tpu.matmul %275, %276, %cst_123 {dimension_numbers = #tpu.dot_dimension_numbers<[1], [0], [0], [1], [0, 0, 1, 1], [], []>} : vector<66x8xf32>, vector<8x32xf32>, vector<66x32xf32> -> vector<66x32xf32>
    %278 = arith.addf %258, %277 : vector<66x32xf32>
    %279 = vector.extract_strided_slice %216 {offsets = [0, 24], sizes = [66, 8], strides = [1, 1]} : vector<66x32xf32> to vector<66x8xf32>
    %280 = vector.extract_strided_slice %217 {offsets = [0, 24], sizes = [66, 8], strides = [1, 1]} : vector<66x64xf32> to vector<66x8xf32>
    %281 = vector.extract_strided_slice %217 {offsets = [0, 56], sizes = [66, 8], strides = [1, 1]} : vector<66x64xf32> to vector<66x8xf32>
    %cst_124 = arith.constant dense<0.000000e+00> : vector<66x66xf32>
    %282 = tpu.matmul %279, %280, %cst_124 {dimension_numbers = #tpu.dot_dimension_numbers<[1], [1], [0], [0], [0, 0, 1, 0], [], []>} : vector<66x8xf32>, vector<66x8xf32>, vector<66x66xf32> -> vector<66x66xf32>
    %cst_125 = arith.constant 0.353553385 : f32
    %283 = vector.broadcast %cst_125 : f32 to vector<66x66xf32>
    %284 = arith.mulf %282, %283 : vector<66x66xf32>
    %cst_126 = arith.constant dense<0xFF800000> : vector<66xf32>
    %285 = vector.multi_reduction <maximumf>, %284, %cst_126 [1] : vector<66x66xf32> to vector<66xf32>
    %286 = vector.shape_cast %285 : vector<66xf32> to vector<66x1xf32>
    %287 = vector.broadcast %286 : vector<66x1xf32> to vector<66x66xf32>
    %288 = arith.subf %284, %287 : vector<66x66xf32>
    %289 = math.exp %288 : vector<66x66xf32>
    %cst_127 = arith.constant dense<0.000000e+00> : vector<66xf32>
    %290 = vector.multi_reduction <add>, %289, %cst_127 [1] : vector<66x66xf32> to vector<66xf32>
    %291 = vector.shape_cast %290 : vector<66xf32> to vector<66x1xf32>
    %292 = tpu.reciprocal %291 {approx = true} : vector<66x1xf32> -> vector<66x1xf32>
    %293 = vector.broadcast %292 : vector<66x1xf32> to vector<66x66xf32>
    %294 = arith.mulf %289, %293 : vector<66x66xf32>
    %cst_128 = arith.constant dense<0.000000e+00> : vector<66x8xf32>
    %295 = tpu.matmul %294, %281, %cst_128 {dimension_numbers = #tpu.dot_dimension_numbers<[1], [0], [0], [1], [0, 0, 1, 1], [], []>} : vector<66x66xf32>, vector<66x8xf32>, vector<66x8xf32> -> vector<66x8xf32>
    %296 = vector.extract_strided_slice %218 {offsets = [24, 0], sizes = [8, 32], strides = [1, 1]} : vector<32x32xf32> to vector<8x32xf32>
    %cst_129 = arith.constant dense<0.000000e+00> : vector<66x32xf32>
    %297 = tpu.matmul %295, %296, %cst_129 {dimension_numbers = #tpu.dot_dimension_numbers<[1], [0], [0], [1], [0, 0, 1, 1], [], []>} : vector<66x8xf32>, vector<8x32xf32>, vector<66x32xf32> -> vector<66x32xf32>
    %298 = arith.addf %278, %297 : vector<66x32xf32>
    %299 = vector.broadcast %219 : vector<1x32xf32> to vector<66x32xf32>
    %300 = arith.addf %298, %299 : vector<66x32xf32>
    %c248 = arith.constant 248 : index
    %c0_130 = arith.constant 0 : index
    %301 = vector.load %arg6[%c248, %c0_130] : memref<480x32xf32, #tpu.memory_space<vmem>>, vector<2x32xf32>
    %302 = arith.addf %211, %300 : vector<66x32xf32>
    %303 = vector.extract_strided_slice %301 {offsets = [0, 0], sizes = [1, 32], strides = [1, 1]} : vector<2x32xf32> to vector<1x32xf32>
    %304 = vector.extract_strided_slice %301 {offsets = [1, 0], sizes = [1, 32], strides = [1, 1]} : vector<2x32xf32> to vector<1x32xf32>
    %cst_131 = arith.constant dense<0.000000e+00> : vector<66xf32>
    %305 = vector.multi_reduction <add>, %302, %cst_131 [1] : vector<66x32xf32> to vector<66xf32>
    %306 = vector.shape_cast %305 : vector<66xf32> to vector<66x1xf32>
    %cst_132 = arith.constant 3.200000e+01 : f32
    %307 = vector.broadcast %cst_132 : f32 to vector<66x1xf32>
    %308 = arith.divf %306, %307 : vector<66x1xf32>
    %309 = vector.broadcast %308 : vector<66x1xf32> to vector<66x32xf32>
    %310 = arith.subf %302, %309 : vector<66x32xf32>
    %311 = arith.mulf %310, %310 : vector<66x32xf32>
    %cst_133 = arith.constant dense<0.000000e+00> : vector<66xf32>
    %312 = vector.multi_reduction <add>, %311, %cst_133 [1] : vector<66x32xf32> to vector<66xf32>
    %313 = vector.shape_cast %312 : vector<66xf32> to vector<66x1xf32>
    %cst_134 = arith.constant 3.200000e+01 : f32
    %314 = vector.broadcast %cst_134 : f32 to vector<66x1xf32>
    %315 = arith.divf %313, %314 : vector<66x1xf32>
    %316 = vector.broadcast %308 : vector<66x1xf32> to vector<66x32xf32>
    %317 = arith.subf %302, %316 : vector<66x32xf32>
    %cst_135 = arith.constant 9.99999974E-6 : f32
    %318 = vector.broadcast %cst_135 : f32 to vector<66x1xf32>
    %319 = arith.addf %315, %318 : vector<66x1xf32>
    %320 = math.rsqrt %319 : vector<66x1xf32>
    %321 = vector.broadcast %320 : vector<66x1xf32> to vector<66x32xf32>
    %322 = arith.mulf %317, %321 : vector<66x32xf32>
    %323 = vector.broadcast %303 : vector<1x32xf32> to vector<66x32xf32>
    %324 = arith.mulf %322, %323 : vector<66x32xf32>
    %325 = vector.broadcast %304 : vector<1x32xf32> to vector<66x32xf32>
    %326 = arith.addf %324, %325 : vector<66x32xf32>
    %c56_136 = arith.constant 56 : index
    %c0_137 = arith.constant 0 : index
    %327 = vector.load %arg7[%c56_136, %c0_137] : memref<240x64xf32, #tpu.memory_space<vmem>>, vector<32x64xf32>
    %cst_138 = arith.constant dense<0.000000e+00> : vector<66x64xf32>
    %328 = tpu.matmul %326, %327, %cst_138 {dimension_numbers = #tpu.dot_dimension_numbers<[1], [0], [0], [1], [0, 0, 1, 1], [], []>} : vector<66x32xf32>, vector<32x64xf32>, vector<66x64xf32> -> vector<66x64xf32>
    %c88 = arith.constant 88 : index
    %c0_139 = arith.constant 0 : index
    %329 = vector.load %arg7[%c88, %c0_139] : memref<240x64xf32, #tpu.memory_space<vmem>>, vector<1x64xf32>
    %330 = vector.broadcast %329 : vector<1x64xf32> to vector<66x64xf32>
    %331 = arith.addf %328, %330 : vector<66x64xf32>
    %cst_140 = arith.constant 0.000000e+00 : f32
    %332 = vector.broadcast %cst_140 : f32 to vector<66x64xf32>
    %333 = arith.maximumf %331, %332 : vector<66x64xf32>
    %c256 = arith.constant 256 : index
    %c0_141 = arith.constant 0 : index
    %334 = vector.load %arg6[%c256, %c0_141] : memref<480x32xf32, #tpu.memory_space<vmem>>, vector<64x32xf32>
    %cst_142 = arith.constant dense<0.000000e+00> : vector<66x32xf32>
    %335 = tpu.matmul %333, %334, %cst_142 {dimension_numbers = #tpu.dot_dimension_numbers<[1], [0], [0], [1], [0, 0, 1, 1], [], []>} : vector<66x64xf32>, vector<64x32xf32>, vector<66x32xf32> -> vector<66x32xf32>
    %c320 = arith.constant 320 : index
    %c0_143 = arith.constant 0 : index
    %336 = vector.load %arg6[%c320, %c0_143] : memref<480x32xf32, #tpu.memory_space<vmem>>, vector<1x32xf32>
    %337 = vector.broadcast %336 : vector<1x32xf32> to vector<66x32xf32>
    %338 = arith.addf %335, %337 : vector<66x32xf32>
    %c328 = arith.constant 328 : index
    %c0_144 = arith.constant 0 : index
    %339 = vector.load %arg6[%c328, %c0_144] : memref<480x32xf32, #tpu.memory_space<vmem>>, vector<2x32xf32>
    %340 = arith.addf %326, %338 : vector<66x32xf32>
    %341 = vector.extract_strided_slice %339 {offsets = [0, 0], sizes = [1, 32], strides = [1, 1]} : vector<2x32xf32> to vector<1x32xf32>
    %342 = vector.extract_strided_slice %339 {offsets = [1, 0], sizes = [1, 32], strides = [1, 1]} : vector<2x32xf32> to vector<1x32xf32>
    %cst_145 = arith.constant dense<0.000000e+00> : vector<66xf32>
    %343 = vector.multi_reduction <add>, %340, %cst_145 [1] : vector<66x32xf32> to vector<66xf32>
    %344 = vector.shape_cast %343 : vector<66xf32> to vector<66x1xf32>
    %cst_146 = arith.constant 3.200000e+01 : f32
    %345 = vector.broadcast %cst_146 : f32 to vector<66x1xf32>
    %346 = arith.divf %344, %345 : vector<66x1xf32>
    %347 = vector.broadcast %346 : vector<66x1xf32> to vector<66x32xf32>
    %348 = arith.subf %340, %347 : vector<66x32xf32>
    %349 = arith.mulf %348, %348 : vector<66x32xf32>
    %cst_147 = arith.constant dense<0.000000e+00> : vector<66xf32>
    %350 = vector.multi_reduction <add>, %349, %cst_147 [1] : vector<66x32xf32> to vector<66xf32>
    %351 = vector.shape_cast %350 : vector<66xf32> to vector<66x1xf32>
    %cst_148 = arith.constant 3.200000e+01 : f32
    %352 = vector.broadcast %cst_148 : f32 to vector<66x1xf32>
    %353 = arith.divf %351, %352 : vector<66x1xf32>
    %354 = vector.broadcast %346 : vector<66x1xf32> to vector<66x32xf32>
    %355 = arith.subf %340, %354 : vector<66x32xf32>
    %cst_149 = arith.constant 9.99999974E-6 : f32
    %356 = vector.broadcast %cst_149 : f32 to vector<66x1xf32>
    %357 = arith.addf %353, %356 : vector<66x1xf32>
    %358 = math.rsqrt %357 : vector<66x1xf32>
    %359 = vector.broadcast %358 : vector<66x1xf32> to vector<66x32xf32>
    %360 = arith.mulf %355, %359 : vector<66x32xf32>
    %361 = vector.broadcast %341 : vector<1x32xf32> to vector<66x32xf32>
    %362 = arith.mulf %360, %361 : vector<66x32xf32>
    %363 = vector.broadcast %342 : vector<1x32xf32> to vector<66x32xf32>
    %364 = arith.addf %362, %363 : vector<66x32xf32>
    %c136 = arith.constant 136 : index
    %c0_150 = arith.constant 0 : index
    %365 = vector.load %arg7[%c136, %c0_150] : memref<240x64xf32, #tpu.memory_space<vmem>>, vector<32x64xf32>
    %cst_151 = arith.constant dense<0.000000e+00> : vector<66x64xf32>
    %366 = tpu.matmul %364, %365, %cst_151 {dimension_numbers = #tpu.dot_dimension_numbers<[1], [0], [0], [1], [0, 0, 1, 1], [], []>} : vector<66x32xf32>, vector<32x64xf32>, vector<66x64xf32> -> vector<66x64xf32>
    %c168 = arith.constant 168 : index
    %c0_152 = arith.constant 0 : index
    %367 = vector.load %arg7[%c168, %c0_152] : memref<240x64xf32, #tpu.memory_space<vmem>>, vector<66x64xf32>
    %368 = arith.addf %366, %367 : vector<66x64xf32>
    %c472 = arith.constant 472 : index
    %c0_153 = arith.constant 0 : index
    %369 = vector.load %arg6[%c472, %c0_153] : memref<480x32xf32, #tpu.memory_space<vmem>>, vector<8x32xf32>
    %c336 = arith.constant 336 : index
    %c0_154 = arith.constant 0 : index
    %370 = vector.load %arg6[%c336, %c0_154] : memref<480x32xf32, #tpu.memory_space<vmem>>, vector<32x32xf32>
    %c368 = arith.constant 368 : index
    %c0_155 = arith.constant 0 : index
    %371 = vector.load %arg6[%c368, %c0_155] : memref<480x32xf32, #tpu.memory_space<vmem>>, vector<1x32xf32>
    %372 = vector.extract_strided_slice %369 {offsets = [0, 0], sizes = [8, 8], strides = [1, 1]} : vector<8x32xf32> to vector<8x8xf32>
    %373 = vector.extract_strided_slice %368 {offsets = [0, 0], sizes = [66, 8], strides = [1, 1]} : vector<66x64xf32> to vector<66x8xf32>
    %374 = vector.extract_strided_slice %368 {offsets = [0, 32], sizes = [66, 8], strides = [1, 1]} : vector<66x64xf32> to vector<66x8xf32>
    %cst_156 = arith.constant dense<0.000000e+00> : vector<8x66xf32>
    %375 = tpu.matmul %372, %373, %cst_156 {dimension_numbers = #tpu.dot_dimension_numbers<[1], [1], [0], [0], [0, 0, 1, 0], [], []>} : vector<8x8xf32>, vector<66x8xf32>, vector<8x66xf32> -> vector<8x66xf32>
    %cst_157 = arith.constant 0.353553385 : f32
    %376 = vector.broadcast %cst_157 : f32 to vector<8x66xf32>
    %377 = arith.mulf %375, %376 : vector<8x66xf32>
    %cst_158 = arith.constant dense<0xFF800000> : vector<8xf32>
    %378 = vector.multi_reduction <maximumf>, %377, %cst_158 [1] : vector<8x66xf32> to vector<8xf32>
    %379 = vector.shape_cast %378 : vector<8xf32> to vector<8x1xf32>
    %380 = vector.broadcast %379 : vector<8x1xf32> to vector<8x66xf32>
    %381 = arith.subf %377, %380 : vector<8x66xf32>
    %382 = math.exp %381 : vector<8x66xf32>
    %cst_159 = arith.constant dense<0.000000e+00> : vector<8xf32>
    %383 = vector.multi_reduction <add>, %382, %cst_159 [1] : vector<8x66xf32> to vector<8xf32>
    %384 = vector.shape_cast %383 : vector<8xf32> to vector<8x1xf32>
    %385 = tpu.reciprocal %384 {approx = true} : vector<8x1xf32> -> vector<8x1xf32>
    %386 = vector.broadcast %385 : vector<8x1xf32> to vector<8x66xf32>
    %387 = arith.mulf %382, %386 : vector<8x66xf32>
    %cst_160 = arith.constant dense<0.000000e+00> : vector<8x8xf32>
    %388 = tpu.matmul %387, %374, %cst_160 {dimension_numbers = #tpu.dot_dimension_numbers<[1], [0], [0], [1], [0, 0, 1, 1], [], []>} : vector<8x66xf32>, vector<66x8xf32>, vector<8x8xf32> -> vector<8x8xf32>
    %389 = vector.extract_strided_slice %370 {offsets = [0, 0], sizes = [8, 32], strides = [1, 1]} : vector<32x32xf32> to vector<8x32xf32>
    %cst_161 = arith.constant dense<0.000000e+00> : vector<8x32xf32>
    %390 = tpu.matmul %388, %389, %cst_161 {dimension_numbers = #tpu.dot_dimension_numbers<[1], [0], [0], [1], [0, 0, 1, 1], [], []>} : vector<8x8xf32>, vector<8x32xf32>, vector<8x32xf32> -> vector<8x32xf32>
    %391 = vector.extract_strided_slice %369 {offsets = [0, 8], sizes = [8, 8], strides = [1, 1]} : vector<8x32xf32> to vector<8x8xf32>
    %392 = vector.extract_strided_slice %368 {offsets = [0, 8], sizes = [66, 8], strides = [1, 1]} : vector<66x64xf32> to vector<66x8xf32>
    %393 = vector.extract_strided_slice %368 {offsets = [0, 40], sizes = [66, 8], strides = [1, 1]} : vector<66x64xf32> to vector<66x8xf32>
    %cst_162 = arith.constant dense<0.000000e+00> : vector<8x66xf32>
    %394 = tpu.matmul %391, %392, %cst_162 {dimension_numbers = #tpu.dot_dimension_numbers<[1], [1], [0], [0], [0, 0, 1, 0], [], []>} : vector<8x8xf32>, vector<66x8xf32>, vector<8x66xf32> -> vector<8x66xf32>
    %cst_163 = arith.constant 0.353553385 : f32
    %395 = vector.broadcast %cst_163 : f32 to vector<8x66xf32>
    %396 = arith.mulf %394, %395 : vector<8x66xf32>
    %cst_164 = arith.constant dense<0xFF800000> : vector<8xf32>
    %397 = vector.multi_reduction <maximumf>, %396, %cst_164 [1] : vector<8x66xf32> to vector<8xf32>
    %398 = vector.shape_cast %397 : vector<8xf32> to vector<8x1xf32>
    %399 = vector.broadcast %398 : vector<8x1xf32> to vector<8x66xf32>
    %400 = arith.subf %396, %399 : vector<8x66xf32>
    %401 = math.exp %400 : vector<8x66xf32>
    %cst_165 = arith.constant dense<0.000000e+00> : vector<8xf32>
    %402 = vector.multi_reduction <add>, %401, %cst_165 [1] : vector<8x66xf32> to vector<8xf32>
    %403 = vector.shape_cast %402 : vector<8xf32> to vector<8x1xf32>
    %404 = tpu.reciprocal %403 {approx = true} : vector<8x1xf32> -> vector<8x1xf32>
    %405 = vector.broadcast %404 : vector<8x1xf32> to vector<8x66xf32>
    %406 = arith.mulf %401, %405 : vector<8x66xf32>
    %cst_166 = arith.constant dense<0.000000e+00> : vector<8x8xf32>
    %407 = tpu.matmul %406, %393, %cst_166 {dimension_numbers = #tpu.dot_dimension_numbers<[1], [0], [0], [1], [0, 0, 1, 1], [], []>} : vector<8x66xf32>, vector<66x8xf32>, vector<8x8xf32> -> vector<8x8xf32>
    %408 = vector.extract_strided_slice %370 {offsets = [8, 0], sizes = [8, 32], strides = [1, 1]} : vector<32x32xf32> to vector<8x32xf32>
    %cst_167 = arith.constant dense<0.000000e+00> : vector<8x32xf32>
    %409 = tpu.matmul %407, %408, %cst_167 {dimension_numbers = #tpu.dot_dimension_numbers<[1], [0], [0], [1], [0, 0, 1, 1], [], []>} : vector<8x8xf32>, vector<8x32xf32>, vector<8x32xf32> -> vector<8x32xf32>
    %410 = arith.addf %390, %409 : vector<8x32xf32>
    %411 = vector.extract_strided_slice %369 {offsets = [0, 16], sizes = [8, 8], strides = [1, 1]} : vector<8x32xf32> to vector<8x8xf32>
    %412 = vector.extract_strided_slice %368 {offsets = [0, 16], sizes = [66, 8], strides = [1, 1]} : vector<66x64xf32> to vector<66x8xf32>
    %413 = vector.extract_strided_slice %368 {offsets = [0, 48], sizes = [66, 8], strides = [1, 1]} : vector<66x64xf32> to vector<66x8xf32>
    %cst_168 = arith.constant dense<0.000000e+00> : vector<8x66xf32>
    %414 = tpu.matmul %411, %412, %cst_168 {dimension_numbers = #tpu.dot_dimension_numbers<[1], [1], [0], [0], [0, 0, 1, 0], [], []>} : vector<8x8xf32>, vector<66x8xf32>, vector<8x66xf32> -> vector<8x66xf32>
    %cst_169 = arith.constant 0.353553385 : f32
    %415 = vector.broadcast %cst_169 : f32 to vector<8x66xf32>
    %416 = arith.mulf %414, %415 : vector<8x66xf32>
    %cst_170 = arith.constant dense<0xFF800000> : vector<8xf32>
    %417 = vector.multi_reduction <maximumf>, %416, %cst_170 [1] : vector<8x66xf32> to vector<8xf32>
    %418 = vector.shape_cast %417 : vector<8xf32> to vector<8x1xf32>
    %419 = vector.broadcast %418 : vector<8x1xf32> to vector<8x66xf32>
    %420 = arith.subf %416, %419 : vector<8x66xf32>
    %421 = math.exp %420 : vector<8x66xf32>
    %cst_171 = arith.constant dense<0.000000e+00> : vector<8xf32>
    %422 = vector.multi_reduction <add>, %421, %cst_171 [1] : vector<8x66xf32> to vector<8xf32>
    %423 = vector.shape_cast %422 : vector<8xf32> to vector<8x1xf32>
    %424 = tpu.reciprocal %423 {approx = true} : vector<8x1xf32> -> vector<8x1xf32>
    %425 = vector.broadcast %424 : vector<8x1xf32> to vector<8x66xf32>
    %426 = arith.mulf %421, %425 : vector<8x66xf32>
    %cst_172 = arith.constant dense<0.000000e+00> : vector<8x8xf32>
    %427 = tpu.matmul %426, %413, %cst_172 {dimension_numbers = #tpu.dot_dimension_numbers<[1], [0], [0], [1], [0, 0, 1, 1], [], []>} : vector<8x66xf32>, vector<66x8xf32>, vector<8x8xf32> -> vector<8x8xf32>
    %428 = vector.extract_strided_slice %370 {offsets = [16, 0], sizes = [8, 32], strides = [1, 1]} : vector<32x32xf32> to vector<8x32xf32>
    %cst_173 = arith.constant dense<0.000000e+00> : vector<8x32xf32>
    %429 = tpu.matmul %427, %428, %cst_173 {dimension_numbers = #tpu.dot_dimension_numbers<[1], [0], [0], [1], [0, 0, 1, 1], [], []>} : vector<8x8xf32>, vector<8x32xf32>, vector<8x32xf32> -> vector<8x32xf32>
    %430 = arith.addf %410, %429 : vector<8x32xf32>
    %431 = vector.extract_strided_slice %369 {offsets = [0, 24], sizes = [8, 8], strides = [1, 1]} : vector<8x32xf32> to vector<8x8xf32>
    %432 = vector.extract_strided_slice %368 {offsets = [0, 24], sizes = [66, 8], strides = [1, 1]} : vector<66x64xf32> to vector<66x8xf32>
    %433 = vector.extract_strided_slice %368 {offsets = [0, 56], sizes = [66, 8], strides = [1, 1]} : vector<66x64xf32> to vector<66x8xf32>
    %cst_174 = arith.constant dense<0.000000e+00> : vector<8x66xf32>
    %434 = tpu.matmul %431, %432, %cst_174 {dimension_numbers = #tpu.dot_dimension_numbers<[1], [1], [0], [0], [0, 0, 1, 0], [], []>} : vector<8x8xf32>, vector<66x8xf32>, vector<8x66xf32> -> vector<8x66xf32>
    %cst_175 = arith.constant 0.353553385 : f32
    %435 = vector.broadcast %cst_175 : f32 to vector<8x66xf32>
    %436 = arith.mulf %434, %435 : vector<8x66xf32>
    %cst_176 = arith.constant dense<0xFF800000> : vector<8xf32>
    %437 = vector.multi_reduction <maximumf>, %436, %cst_176 [1] : vector<8x66xf32> to vector<8xf32>
    %438 = vector.shape_cast %437 : vector<8xf32> to vector<8x1xf32>
    %439 = vector.broadcast %438 : vector<8x1xf32> to vector<8x66xf32>
    %440 = arith.subf %436, %439 : vector<8x66xf32>
    %441 = math.exp %440 : vector<8x66xf32>
    %cst_177 = arith.constant dense<0.000000e+00> : vector<8xf32>
    %442 = vector.multi_reduction <add>, %441, %cst_177 [1] : vector<8x66xf32> to vector<8xf32>
    %443 = vector.shape_cast %442 : vector<8xf32> to vector<8x1xf32>
    %444 = tpu.reciprocal %443 {approx = true} : vector<8x1xf32> -> vector<8x1xf32>
    %445 = vector.broadcast %444 : vector<8x1xf32> to vector<8x66xf32>
    %446 = arith.mulf %441, %445 : vector<8x66xf32>
    %cst_178 = arith.constant dense<0.000000e+00> : vector<8x8xf32>
    %447 = tpu.matmul %446, %433, %cst_178 {dimension_numbers = #tpu.dot_dimension_numbers<[1], [0], [0], [1], [0, 0, 1, 1], [], []>} : vector<8x66xf32>, vector<66x8xf32>, vector<8x8xf32> -> vector<8x8xf32>
    %448 = vector.extract_strided_slice %370 {offsets = [24, 0], sizes = [8, 32], strides = [1, 1]} : vector<32x32xf32> to vector<8x32xf32>
    %cst_179 = arith.constant dense<0.000000e+00> : vector<8x32xf32>
    %449 = tpu.matmul %447, %448, %cst_179 {dimension_numbers = #tpu.dot_dimension_numbers<[1], [0], [0], [1], [0, 0, 1, 1], [], []>} : vector<8x8xf32>, vector<8x32xf32>, vector<8x32xf32> -> vector<8x32xf32>
    %450 = arith.addf %430, %449 : vector<8x32xf32>
    %451 = vector.broadcast %371 : vector<1x32xf32> to vector<8x32xf32>
    %452 = arith.addf %450, %451 : vector<8x32xf32>
    %c376 = arith.constant 376 : index
    %c0_180 = arith.constant 0 : index
    %453 = vector.load %arg6[%c376, %c0_180] : memref<480x32xf32, #tpu.memory_space<vmem>>, vector<2x32xf32>
    %c464 = arith.constant 464 : index
    %c0_181 = arith.constant 0 : index
    %454 = vector.load %arg6[%c464, %c0_181] : memref<480x32xf32, #tpu.memory_space<vmem>>, vector<8x32xf32>
    %455 = arith.addf %454, %452 : vector<8x32xf32>
    %456 = vector.extract_strided_slice %453 {offsets = [0, 0], sizes = [1, 32], strides = [1, 1]} : vector<2x32xf32> to vector<1x32xf32>
    %457 = vector.extract_strided_slice %453 {offsets = [1, 0], sizes = [1, 32], strides = [1, 1]} : vector<2x32xf32> to vector<1x32xf32>
    %cst_182 = arith.constant dense<0.000000e+00> : vector<8xf32>
    %458 = vector.multi_reduction <add>, %455, %cst_182 [1] : vector<8x32xf32> to vector<8xf32>
    %459 = vector.shape_cast %458 : vector<8xf32> to vector<8x1xf32>
    %cst_183 = arith.constant 3.200000e+01 : f32
    %460 = vector.broadcast %cst_183 : f32 to vector<8x1xf32>
    %461 = arith.divf %459, %460 : vector<8x1xf32>
    %462 = vector.broadcast %461 : vector<8x1xf32> to vector<8x32xf32>
    %463 = arith.subf %455, %462 : vector<8x32xf32>
    %464 = arith.mulf %463, %463 : vector<8x32xf32>
    %cst_184 = arith.constant dense<0.000000e+00> : vector<8xf32>
    %465 = vector.multi_reduction <add>, %464, %cst_184 [1] : vector<8x32xf32> to vector<8xf32>
    %466 = vector.shape_cast %465 : vector<8xf32> to vector<8x1xf32>
    %cst_185 = arith.constant 3.200000e+01 : f32
    %467 = vector.broadcast %cst_185 : f32 to vector<8x1xf32>
    %468 = arith.divf %466, %467 : vector<8x1xf32>
    %469 = vector.broadcast %461 : vector<8x1xf32> to vector<8x32xf32>
    %470 = arith.subf %455, %469 : vector<8x32xf32>
    %cst_186 = arith.constant 9.99999974E-6 : f32
    %471 = vector.broadcast %cst_186 : f32 to vector<8x1xf32>
    %472 = arith.addf %468, %471 : vector<8x1xf32>
    %473 = math.rsqrt %472 : vector<8x1xf32>
    %474 = vector.broadcast %473 : vector<8x1xf32> to vector<8x32xf32>
    %475 = arith.mulf %470, %474 : vector<8x32xf32>
    %476 = vector.broadcast %456 : vector<1x32xf32> to vector<8x32xf32>
    %477 = arith.mulf %475, %476 : vector<8x32xf32>
    %478 = vector.broadcast %457 : vector<1x32xf32> to vector<8x32xf32>
    %479 = arith.addf %477, %478 : vector<8x32xf32>
    %c96 = arith.constant 96 : index
    %c0_187 = arith.constant 0 : index
    %480 = vector.load %arg7[%c96, %c0_187] : memref<240x64xf32, #tpu.memory_space<vmem>>, vector<32x64xf32>
    %cst_188 = arith.constant dense<0.000000e+00> : vector<8x64xf32>
    %481 = tpu.matmul %479, %480, %cst_188 {dimension_numbers = #tpu.dot_dimension_numbers<[1], [0], [0], [1], [0, 0, 1, 1], [], []>} : vector<8x32xf32>, vector<32x64xf32>, vector<8x64xf32> -> vector<8x64xf32>
    %c128_189 = arith.constant 128 : index
    %c0_190 = arith.constant 0 : index
    %482 = vector.load %arg7[%c128_189, %c0_190] : memref<240x64xf32, #tpu.memory_space<vmem>>, vector<1x64xf32>
    %483 = vector.broadcast %482 : vector<1x64xf32> to vector<8x64xf32>
    %484 = arith.addf %481, %483 : vector<8x64xf32>
    %cst_191 = arith.constant 0.000000e+00 : f32
    %485 = vector.broadcast %cst_191 : f32 to vector<8x64xf32>
    %486 = arith.maximumf %484, %485 : vector<8x64xf32>
    %c384 = arith.constant 384 : index
    %c0_192 = arith.constant 0 : index
    %487 = vector.load %arg6[%c384, %c0_192] : memref<480x32xf32, #tpu.memory_space<vmem>>, vector<64x32xf32>
    %cst_193 = arith.constant dense<0.000000e+00> : vector<8x32xf32>
    %488 = tpu.matmul %486, %487, %cst_193 {dimension_numbers = #tpu.dot_dimension_numbers<[1], [0], [0], [1], [0, 0, 1, 1], [], []>} : vector<8x64xf32>, vector<64x32xf32>, vector<8x32xf32> -> vector<8x32xf32>
    %c448 = arith.constant 448 : index
    %c0_194 = arith.constant 0 : index
    %489 = vector.load %arg6[%c448, %c0_194] : memref<480x32xf32, #tpu.memory_space<vmem>>, vector<1x32xf32>
    %490 = vector.broadcast %489 : vector<1x32xf32> to vector<8x32xf32>
    %491 = arith.addf %488, %490 : vector<8x32xf32>
    %c456 = arith.constant 456 : index
    %c0_195 = arith.constant 0 : index
    %492 = vector.load %arg6[%c456, %c0_195] : memref<480x32xf32, #tpu.memory_space<vmem>>, vector<2x32xf32>
    %493 = arith.addf %479, %491 : vector<8x32xf32>
    %494 = vector.extract_strided_slice %492 {offsets = [0, 0], sizes = [1, 32], strides = [1, 1]} : vector<2x32xf32> to vector<1x32xf32>
    %495 = vector.extract_strided_slice %492 {offsets = [1, 0], sizes = [1, 32], strides = [1, 1]} : vector<2x32xf32> to vector<1x32xf32>
    %cst_196 = arith.constant dense<0.000000e+00> : vector<8xf32>
    %496 = vector.multi_reduction <add>, %493, %cst_196 [1] : vector<8x32xf32> to vector<8xf32>
    %497 = vector.shape_cast %496 : vector<8xf32> to vector<8x1xf32>
    %cst_197 = arith.constant 3.200000e+01 : f32
    %498 = vector.broadcast %cst_197 : f32 to vector<8x1xf32>
    %499 = arith.divf %497, %498 : vector<8x1xf32>
    %500 = vector.broadcast %499 : vector<8x1xf32> to vector<8x32xf32>
    %501 = arith.subf %493, %500 : vector<8x32xf32>
    %502 = arith.mulf %501, %501 : vector<8x32xf32>
    %cst_198 = arith.constant dense<0.000000e+00> : vector<8xf32>
    %503 = vector.multi_reduction <add>, %502, %cst_198 [1] : vector<8x32xf32> to vector<8xf32>
    %504 = vector.shape_cast %503 : vector<8xf32> to vector<8x1xf32>
    %cst_199 = arith.constant 3.200000e+01 : f32
    %505 = vector.broadcast %cst_199 : f32 to vector<8x1xf32>
    %506 = arith.divf %504, %505 : vector<8x1xf32>
    %507 = vector.broadcast %499 : vector<8x1xf32> to vector<8x32xf32>
    %508 = arith.subf %493, %507 : vector<8x32xf32>
    %cst_200 = arith.constant 9.99999974E-6 : f32
    %509 = vector.broadcast %cst_200 : f32 to vector<8x1xf32>
    %510 = arith.addf %506, %509 : vector<8x1xf32>
    %511 = math.rsqrt %510 : vector<8x1xf32>
    %512 = vector.broadcast %511 : vector<8x1xf32> to vector<8x32xf32>
    %513 = arith.mulf %508, %512 : vector<8x32xf32>
    %514 = vector.broadcast %494 : vector<1x32xf32> to vector<8x32xf32>
    %515 = arith.mulf %513, %514 : vector<8x32xf32>
    %516 = vector.broadcast %495 : vector<1x32xf32> to vector<8x32xf32>
    %517 = arith.addf %515, %516 : vector<8x32xf32>
    %c40 = arith.constant 40 : index
    %c0_201 = arith.constant 0 : index
    %518 = vector.load %arg9[%c40, %c0_201] : memref<80x128xf32, #tpu.memory_space<vmem>>, vector<32x128xf32>
    %cst_202 = arith.constant dense<0.000000e+00> : vector<8x128xf32>
    %519 = tpu.matmul %517, %518, %cst_202 {dimension_numbers = #tpu.dot_dimension_numbers<[1], [0], [0], [1], [0, 0, 1, 1], [], []>} : vector<8x32xf32>, vector<32x128xf32>, vector<8x128xf32> -> vector<8x128xf32>
    %c72_203 = arith.constant 72 : index
    %c0_204 = arith.constant 0 : index
    %520 = vector.load %arg9[%c72_203, %c0_204] : memref<80x128xf32, #tpu.memory_space<vmem>>, vector<1x128xf32>
    %521 = vector.broadcast %520 : vector<1x128xf32> to vector<8x128xf32>
    %522 = arith.addf %519, %521 : vector<8x128xf32>
    %c0_205 = arith.constant 0 : index
    %c0_206 = arith.constant 0 : index
    %c0_207 = arith.constant 0 : index
    %523 = vector.load %arg10[%c0_205, %c0_206, %c0_207] : memref<1x9x128xf32, #tpu.memory_space<vmem>>, vector<1x8x128xf32>
    %524 = vector.shape_cast %523 : vector<1x8x128xf32> to vector<8x128xf32>
    %525 = vector.shape_cast %522 : vector<8x128xf32> to vector<1x8x128xf32>
    tpu.vector_store %arg10[%c0_205, %c0_206, %c0_207], %525 {strides = array<i32>} : memref<1x9x128xf32, #tpu.memory_space<vmem>>, vector<1x8x128xf32>,
    %c0_208 = arith.constant 0 : index
    %c8_209 = arith.constant 8 : index
    %c0_210 = arith.constant 0 : index
    %526 = vector.load %arg10[%c0_208, %c8_209, %c0_210] : memref<1x9x128xf32, #tpu.memory_space<vmem>>, vector<1x1x128xf32>
    %527 = vector.shape_cast %526 : vector<1x1x128xf32> to vector<1x128xf32>
    %528 = vector.shape_cast %187 : vector<1x128xf32> to vector<1x1x128xf32>
    tpu.vector_store %arg10[%c0_208, %c8_209, %c0_210], %528 {strides = array<i32>} : memref<1x9x128xf32, #tpu.memory_space<vmem>>, vector<1x1x128xf32>,
    return
  }
  func.func @transform_0(%arg0: i32) -> (i32, i32, i32) {
    %c0_i32 = arith.constant 0 : i32
    %c0_i32_0 = arith.constant 0 : i32
    %c0_i32_1 = arith.constant 0 : i32
    return %arg0, %c0_i32, %c0_i32_0 : i32, i32, i32
  }
  func.func @transform_1(%arg0: i32) -> (i32, i32, i32) {
    %c0_i32 = arith.constant 0 : i32
    %c0_i32_0 = arith.constant 0 : i32
    %c0_i32_1 = arith.constant 0 : i32
    return %arg0, %c0_i32, %c0_i32_0 : i32, i32, i32
  }
  func.func @transform_2(%arg0: i32) -> (i32, i32, i32) {
    %c0_i32 = arith.constant 0 : i32
    %c0_i32_0 = arith.constant 0 : i32
    %c0_i32_1 = arith.constant 0 : i32
    return %arg0, %c0_i32, %c0_i32_0 : i32, i32, i32
  }
  func.func @transform_3(%arg0: i32) -> (i32, i32, i32) {
    %c0_i32 = arith.constant 0 : i32
    %c0_i32_0 = arith.constant 0 : i32
    %c0_i32_1 = arith.constant 0 : i32
    return %arg0, %c0_i32, %c0_i32_0 : i32, i32, i32
  }
  func.func @transform_4(%arg0: i32) -> (i32, i32, i32) {
    %c0_i32 = arith.constant 0 : i32
    %c0_i32_0 = arith.constant 0 : i32
    %c0_i32_1 = arith.constant 0 : i32
    return %arg0, %c0_i32, %c0_i32_0 : i32, i32, i32
  }
  func.func @transform_5(%arg0: i32) -> (i32, i32) {
    %c0_i32 = arith.constant 0 : i32
    %c0_i32_0 = arith.constant 0 : i32
    %c0_i32_1 = arith.constant 0 : i32
    return %c0_i32, %c0_i32_0 : i32, i32
  }
  func.func @transform_6(%arg0: i32) -> (i32, i32) {
    %c0_i32 = arith.constant 0 : i32
    %c0_i32_0 = arith.constant 0 : i32
    %c0_i32_1 = arith.constant 0 : i32
    return %c0_i32, %c0_i32_0 : i32, i32
  }
  func.func @transform_7(%arg0: i32) -> (i32, i32) {
    %c0_i32 = arith.constant 0 : i32
    %c0_i32_0 = arith.constant 0 : i32
    %c0_i32_1 = arith.constant 0 : i32
    return %c0_i32, %c0_i32_0 : i32, i32
  }
  func.func @transform_8(%arg0: i32) -> (i32, i32) {
    %c0_i32 = arith.constant 0 : i32
    %c0_i32_0 = arith.constant 0 : i32
    %c0_i32_1 = arith.constant 0 : i32
    return %c0_i32, %c0_i32_0 : i32, i32
  }
  func.func @transform_9(%arg0: i32) -> (i32, i32, i32) {
    %c0_i32 = arith.constant 0 : i32
    %c0_i32_0 = arith.constant 0 : i32
    %c0_i32_1 = arith.constant 0 : i32
    return %arg0, %c0_i32, %c0_i32_0 : i32, i32, i32
  }
}

</mosaic_0001>

<bundles_post_ra>
// kernel: detrvae_forward.1
= control target key start
LH: loop header
LB: loop body
LE: loop exit
PB: predicated region body
PF: predicated region fallthrough
CT: control target
= control target key end

     0   :  { %s5415_s30 = smov 0   ;;  %s7446_s0 = inlined_call_operand.vmem [shape: f32[2,8,8], index: 0, kind: input, shape index: {}]   ;;  %s7447_s1 = inlined_call_operand.vmem [shape: f32[2,1,8], index: 1, kind: input, shape index: {}]   ;;  %s7448_s2 = inlined_call_operand.vmem [shape: f32[2,1,10], index: 2, kind: input, shape index: {}]   ;;  %s7449_s3 = inlined_call_operand.vmem [shape: f32[2,1,32], index: 3, kind: input, shape index: {}]   ;;  %s7450_s4 = inlined_call_operand.vmem [shape: f32[2,64,3], index: 4, kind: input, shape index: {}]   ;;  %s7451_s5 = inlined_call_operand.vmem [shape: f32[480,32], index: 5, kind: input, shape index: {}]   ;;  %s7452_s6 = inlined_call_operand.vmem [shape: f32[240,64], index: 6, kind: input, shape index: {}]   ;;  %s7453_s7 = inlined_call_operand.vmem [shape: f32[152,96], index: 7, kind: input, shape index: {}]   ;;  %s7454_s8 = inlined_call_operand.vmem [shape: f32[80,128], index: 8, kind: input, shape index: {}]   ;;  %s7455_s9 = inlined_call_operand.vmem [shape: f32[2,9,128], index: 9, kind: output, shape index: {}]  }
   0x1 LB: > { %s4588_s10 = sadd.s32 4294967295, %s5350_s30   ;;  %p4592_p0 = scmp.ge.s32.totalorder %s5350_s30, 1  ;;  %s5350_s30 = sphi %s5415_s30, %s19_s30  }
   0x2   : > { %p320_p1 = scmp.lt.s32.totalorder %s5350_s30, 3 }
   0x4   : > { %p321_p2 = pnand %p4592_p0, %p320_p1 }
   0x5   : > { %p369_p3 = scmp.lt.s32.totalorder (!%p321_p2), %s4588_s10, 1  ;;  %s5352_s19 = smov (!%p321_p2), 96  }
   0x6   : > { %324 = sbr.rel (%p321_p2) target bundleno = 7953 (0x1f11), region = 56  ;;  %s5353_s25 = smov (!%p321_p2), 64  }
   0x7   : > { %s5354_s26 = smov (!%p321_p2), 120   ;;  %s5355_s27 = smov (!%p321_p2), 80  }
   0x8   : > { %s5356_s28 = smov (!%p321_p2), 112   ;;  %s5357_s29 = smov (!%p321_p2), 104  }
   0x9   : > { %s5358_s11 = smov (!%p321_p2), 72   ;;  %s5359_s12 = smov (!%p321_p2), 88  }
   0xa   : > { %s7456_s16 = smov (!%p321_p2), 48   ;;  %s7458_s17 = smov (!%p321_p2), 40  }
   0xb   : > { %v393_v0 = vld [vmem:[%s7451_s5 + $0x8] sm:$0xff]  ;;  %v421_v1 = vld [vmem:[%s7452_s6] sm:$0xff]  ;;  %s7466_s10 = smov (!%p369_p3, %s4588_s10), 1  ;;  %vm396_vm0 = vcmask 64512   ;;  %v458_v4 = vld [vmem:[%s7453_s7 + $0x18] sm:$0xff]  ;;  %vm449_vm1 = vcmask 253952  }
   0xc   : > { %415 = vmatpush.msra.mxu3 %v393_v0  ;;  %441 = vmatpush.msra.mxu1 %v421_v1  ;;  %s4593_s15 = sshll.u32 %s7466_s10, 3  ;;  %s375_s18 = scalar_lea.vmem %s7447_s1, %s7466_s10  ;;  %v457_v5 = vld [vmem:[%s7453_s7 + $0x10] sm:$0xff]  ;;  %v448_v6 = vld [vmem:[%s7451_s5] sm:$0x1]  ;;  %v456_v7 = vld [vmem:[%s7453_s7 + $0x8] sm:$0xff]  ;;  %vm446_vm2 = vcmask 261120  }
   0xd   : > { %s372_s21 = scalar_lea.vmem %s7446_s0, %s4593_s15  ;;  %v420_v2 = vld [vmem:[%s375_s18] sm:$0x1]  ;;  %479 = vmatpush.msra.mxu2 %v458_v4  ;;  %450 = vst.msk [vmem:[#allocation2 + $0x8] sm:$0x1] %vm449_vm1, %v448_v6  ;;  %v422_v9 = vld [vmem:[%s7452_s6 + $0x8] sm:$0x1]  ;;  %s378_s24 = scalar_lea.vmem %s7448_s2, %s7466_s10 }
   0xe   : > { %v392_v3 = vld [vmem:[%s372_s21] sm:$0xff]  ;;  %4599 = vmatmul.msk.f32.vlgmr.msra.gmra.mxu1 %vm396_vm0, %v420_v2  ;;  %v5079_v12 = vld [vmem:[%s7451_s5 + $0x10] ss:$0 sm:$0xff]  ;;  %v460_v18 = vld [vmem:[%s7453_s7 + $0x28] sm:$0x3]  ;;  %vm539_vm3 = vcmask 80896   ;;  %s381_s21 = scalar_lea.vmem %s7449_s3, %s7466_s10 }
   0xf   : > { %4598 = vmatmul.msk.f32.vlgmr.msra.gmra.mxu3 %vm396_vm0, %v392_v3  ;;  %480 = vmatpush.msra.mxu2 %v457_v5  ;;  %v455_v8 = vld [vmem:[%s7453_s7] sm:$0xff]  ;;  %vm543_vm4 = vcmask 74752   ;;  %vm574_vm5 = vcmask 1041408   ;;  %v490_v50 = vld [vmem:[%s7451_s5 + $0x50] sm:$0xff]  ;;  %s7460_s15 = smov 56   ;;  %s5363_s14 = smov 32  }
  0x10   : > { %v459_v21 = vld [vmem:[%s7453_s7 + $0x20] sm:$0xff]  ;;  %vm1032_vm6 = vcmask 254976   ;;  %vm1134_vm14 = vcmask 523264   ;;  %s4894_s18 = sshll.u32 %s7466_s10, 6  ;;  %vm1298_vm15 = vcmask 1042432  }
  0x11   : > { %481 = vmatpush.msra.mxu2 %v456_v7  ;;  %v5502_v25 = vld [vmem:[%s378_s24] ss:$0 sm:$0xff]  ;;  %s5715_s23 = scalar_lea.vmem %s7450_s4, %s4894_s18  ;;  %s7464_s18 = smov 48  }
  0x13   : > { %482 = vmatpush.msra.mxu2 %v455_v8 }
  0x8b   : > { %v443_v10 = vpop.f32.mrf.mxu1 }
  0x8c   : > { %v5460_v11 = vadd.f32 %v443_v10, %v422_v9 }
  0x8e   : > { %451 = vst.msk [vmem:[#allocation2 + $0x9] sm:$0x1] %vm449_vm1, %v5460_v11 }
  0x92   : > { %v417_v13 = vpop.f32.mrf.mxu3 }
  0x93   : > { %v418_v14 = vadd.f32 %v5079_v12, %v417_v13 }
  0x95   : > { %447 = vst.msk [vmem:[#allocation2] sm:$0xff] %vm446_vm2, %v418_v14  ;;  %v5472_v16 = vld [vmem:[#allocation2 + $0x8] sm:$0x3] }
  0x9c   : > { %v5468_v15 = vld [vmem:[#allocation2] sm:$0xff] }
  0x9d   : > { %4600 = vmatmul.msk.f32.vlgmr.msra.gmra.mxu2 %vm446_vm2, %v5468_v15 }
  0xa5   : > { %4601 = vmatmul.msk.f32.gmra.mxu2 %vm446_vm2, %v5472_v16 }
 0x120   : > { %v484_v17 = vpop.f32.mrf.mxu2 }
 0x121   : > { %v5486_v22 = vadd.f32 %v484_v17, %v459_v21 }
 0x128   : > { %v487_v19 = vpop.f32.mrf.mxu2 }
 0x129   : > { %v5479_v20 = vadd.f32 %v487_v19, %v460_v18 }
 0x12b   : > { %499 = vrot.lane.b32.xlu0 %v5479_v20, %s5352_s19 }
 0x133   : > { %497 = vrot.lane.b32.xlu0 %v5486_v22, %s5352_s19 }
 0x19d   : > { %v500_v23 = vpop.permute.xlu0 %499 }
 0x19e   : > { %4602 = vmatpush.xpose.msk.msrb.mxu1 %vm396_vm0, %v500_v23  ;;  %4896 = vmatpush.xpose.msk.msrb.mxu3 %vm396_vm0, %v500_v23 }
 0x1a5   : > { %v498_v24 = vpop.permute.xlu0 %497 }
 0x1a6   : > { %4603 = vmatpush.xpose.msk.msrb.mxu1 %vm396_vm0, %v498_v24  ;;  %4897 = vmatpush.xpose.msk.msrb.mxu3 %vm396_vm0, %v498_v24 }
 0x1a9   : > { %4604 = vmatmul.msk.f32.vlgmr.msrb.gmra.mxu1 %vm396_vm0, %v5486_v22  ;;  %4605 = vmatmul.msk.f32.vlgmr.msrb.gmra.mxu3 %vm396_vm0, %v5479_v20 }
 0x226   : > { %v526_v26 = vpop.f32.mrf.mxu1 }
 0x227   : > { %v532_v27 = vmul.f32 0.35355338, %v526_v26 }
 0x229   : > { %v537_v28 = vadd.f32 %v5502_v25, %v532_v27 }
 0x22b   : > { %v540_v29 = vsel %vm539_vm3, %v537_v28, -inf }
 0x22c   : > { %v529_v30 = vpop.f32.mrf.mxu3  ;;  %541 = vmax.xlane.f32.xlu1 %v540_v29 }
 0x22d   : > { %v533_v31 = vmul.f32 0.35355338, %v529_v30 }
 0x22f   : > { %v538_v32 = vadd.f32 %v5502_v25, %v533_v31 }
 0x231   : > { %v544_v33 = vsel %vm543_vm4, %v538_v32, -inf }
 0x234   : > { %545 = vmax.xlane.f32.xlu1 %v544_v33 }
 0x24d   : > { %563 = vrot.lane.b32.xlu1 %v5486_v22, %s5353_s25 }
 0x255   : > { %600 = vrot.lane.b32.xlu1 %v5486_v22, %s5354_s26 }
 0x25d   : > { %765 = vrot.lane.b32.xlu1 %v5479_v20, %s5355_s27 }
 0x265   : > { %759 = vrot.lane.b32.xlu1 %v5486_v22, %s5356_s28 }
 0x26d   : > { %761 = vrot.lane.b32.xlu1 %v5479_v20, %s5356_s28 }
 0x275   : > { %893 = vrot.lane.b32.xlu1 %v5479_v20, %s5357_s29 }
 0x29f   : > { %v542_v34 = vpop.xlane.xlu1 %541 }
 0x2a0   : > { %v547_v35 = vsub.f32 %v537_v28, %v542_v34 }
 0x2a2   : > { %v549_v36 = vmul.f32 1.442695, %v547_v35 }
 0x2a4   : > { %5093 = vpow2.f32 %v549_v36 }
 0x2a7   : > { %v546_v37 = vpop.xlane.xlu1 %545 }
 0x2a8   : > { %v548_v38 = vsub.f32 %v538_v32, %v546_v37 }
 0x2aa   : > { %v5094_v39 = vpop.eup %5093  ;;  %v551_v40 = vmul.f32 1.442695, %v548_v38 }
 0x2ab   : > { %v553_v41 = vsel %vm539_vm3, %v5094_v39, 0.0 }
 0x2ac   : > { %5095 = vpow2.f32 %v551_v40  ;;  %554 = vadd.xlane.f32.xlu2 %v553_v41 }
 0x2b2   : > { %v5096_v42 = vpop.eup %5095 }
 0x2b3   : > { %v556_v43 = vsel %vm543_vm4, %v5096_v42, 0.0 }
 0x2b4   : > { %557 = vadd.xlane.f32.xlu0 %v556_v43 }
 0x2bf   : > { %v564_v45 = vpop.permute.xlu1 %563 }
 0x2c4   : > { %565 = vrot.lane.b32.xlu2 %v5479_v20, %s5353_s25 }
 0x2c7   : > { %v601_v52 = vpop.permute.xlu1 %600 }
 0x2c8   : > { %897 = vrot.lane.b32.xlu0 %v5479_v20, %s5358_s11 }
 0x2cc   : > { %606 = vrot.lane.b32.xlu2 %v5479_v20, %s5359_s12 }
 0x2cf   : > { %v766_v56 = vpop.permute.xlu1 %765 }
 0x2d4   : > { %604 = vrot.lane.b32.xlu2 %v5486_v22, %s5359_s12 }
 0x2d7   : > { %v760_v60 = vpop.permute.xlu1 %759 }
 0x2dc   : > { %602 = vrot.lane.b32.xlu2 %v5479_v20, %s5354_s26 }
 0x2df   : > { %v762_v62 = vpop.permute.xlu1 %761 }
 0x2e4   : > { %763 = vrot.lane.b32.xlu2 %v5486_v22, %s5355_s27 }
 0x2e7   : > { %v894_v6 = vpop.permute.xlu1 %893 }
 0x2ec   : > { %895 = vrot.lane.b32.xlu2 %v5486_v22, %s5358_s11 }
 0x2f4   : > { %891 = vrot.lane.b32.xlu2 %v5486_v22, %s5357_s29 }
 0x31f   : > { %v555_v44 = vpop.xlane.xlu2 %554 }
 0x320   : > { %5097 = vrcp.f32 %v555_v44 }
 0x326   : > { %v5098_v46 = vpop.eup %5097 }
 0x327   : > { %v566_v47 = vpop.permute.xlu2 %565  ;;  %v558_v48 = vpop.xlane.xlu0 %557  ;;  %v561_v49 = vmul.f32 %v5098_v46, %v5094_v39 }
 0x328   : > { %5099 = vrcp.f32 %v558_v48  ;;  %4606 = vmatpush.msk.msra.mxu0 %vm574_vm5, %v566_v47 }
 0x32a   : > { %592 = vmatpush.msra.mxu0 %v564_v45 }
 0x32b   : > { %4607 = vmatmul.msk.f32.vlgmr.msra.gmra.mxu0 %vm539_vm3, %v561_v49 }
 0x32c   : > { %751 = vmatpush.msrb.mxu0 %v490_v50 }
 0x32e   : > { %v5100_v51 = vpop.eup %5099 }
 0x32f   : > { %v607_v53 = vpop.permute.xlu2 %606  ;;  %v562_v54 = vmul.f32 %v5100_v51, %v5096_v42 }
 0x330   : > { %4609 = vmatpush.xpose.msk.msra.mxu1 %vm396_vm0, %v607_v53 }
 0x333   : > { %4608 = vmatmul.msk.f32.gmra.mxu0 %vm539_vm3, %v562_v54 }
 0x337   : > { %v605_v55 = vpop.permute.xlu2 %604 }
 0x338   : > { %4610 = vmatpush.xpose.msk.msra.mxu1 %vm396_vm0, %v605_v55 }
 0x33a   : > { %v898_v57 = vpop.permute.xlu0 %897 }
 0x33b   : > { %4611 = vmatmul.msk.f32.vlgmr.msra.gmra.mxu1 %vm396_vm0, %v601_v52  ;;  %4629 = vmatpush.xpose.msk.msra.mxu0 %vm396_vm0, %v898_v57 }
 0x33c   : > { %4620 = vmatpush.xpose.msk.msrb.mxu1 %vm396_vm0, %v766_v56 }
 0x33f   : > { %v603_v58 = vpop.permute.xlu2 %602 }
 0x343   : > { %4612 = vmatmul.msk.f32.gmra.mxu1 %vm396_vm0, %v603_v58 }
 0x347   : > { %v764_v59 = vpop.permute.xlu2 %763 }
 0x348   : > { %4621 = vmatpush.xpose.msk.msrb.mxu1 %vm396_vm0, %v764_v59 }
 0x34b   : > { %4622 = vmatmul.msk.f32.vlgmr.msrb.gmra.mxu1 %vm396_vm0, %v760_v60 }
 0x34f   : > { %v896_v61 = vpop.permute.xlu2 %895 }
 0x350   : > { %4630 = vmatpush.xpose.msk.msra.mxu0 %vm396_vm0, %v896_v61 }
 0x353   : > { %4623 = vmatmul.msk.f32.gmra.mxu1 %vm396_vm0, %v762_v62 }
 0x357   : > { %v892_v1 = vpop.permute.xlu2 %891 }
 0x3a8   : > { %v594_v63 = vpop.f32.mrf.mxu0 }
 0x3a9   : > { %4618 = vmatmul.msk.f32.vlgmr.msrb.gmra.mxu0 %vm396_vm0, %v594_v63 }
 0x3b0   : > { %v597_v0 = vpop.f32.mrf.mxu0 }
 0x3b1   : > { %4619 = vmatmul.msk.f32.gmra.mxu0 %vm396_vm0, %v597_v0 }
 0x3b8   : > { %v633_v2 = vpop.f32.mrf.mxu1 }
 0x3b9   : > { %v639_v3 = vmul.f32 0.35355338, %v633_v2  ;;  %4631 = vmatmul.msk.f32.vlgmr.msra.gmra.mxu0 %vm396_vm0, %v892_v1 }
 0x3bb   : > { %v641_v4 = vadd.f32 %v5502_v25, %v639_v3 }
 0x3bd   : > { %v643_v5 = vsel %vm539_vm3, %v641_v4, -inf }
 0x3be   : > { %644 = vmax.xlane.f32.xlu0 %v643_v5 }
 0x3c0   : > { %v636_v7 = vpop.f32.mrf.mxu1 }
 0x3c1   : > { %v640_v8 = vmul.f32 0.35355338, %v636_v7  ;;  %4632 = vmatmul.msk.f32.gmra.mxu0 %vm396_vm0, %v894_v6 }
 0x3c3   : > { %v642_v9 = vadd.f32 %v5502_v25, %v640_v8 }
 0x3c5   : > { %v646_v10 = vsel %vm543_vm4, %v642_v9, -inf }
 0x3c6   : > { %647 = vmax.xlane.f32.xlu2 %v646_v10 }
 0x3c8   : > { %v792_v12 = vpop.f32.mrf.mxu1 }
 0x3c9   : > { %v798_v13 = vmul.f32 0.35355338, %v792_v12 }
 0x3cb   : > { %v800_v14 = vadd.f32 %v5502_v25, %v798_v13 }
 0x3cd   : > { %v802_v17 = vsel %vm539_vm3, %v800_v14, -inf }
 0x3ce   : > { %803 = vmax.xlane.f32.xlu1 %v802_v17 }
 0x3d0   : > { %v795_v18 = vpop.f32.mrf.mxu1 }
 0x3d1   : > { %v799_v19 = vmul.f32 0.35355338, %v795_v18 }
 0x3d3   : > { %v801_v21 = vadd.f32 %v5502_v25, %v799_v19  ;;  %v5081_v19 = vld [vmem:[%s381_s21] ss:$0 sm:$0xff] }
 0x3d5   : > { %v805_v23 = vsel %vm543_vm4, %v801_v21, -inf }
 0x3d6   : > { %806 = vmax.xlane.f32.xlu0 %v805_v23 }
 0x426   : > { %v5566_v24 = vpop.f32.mrf.mxu0 }
 0x42e   : > { %v5568_v26 = vpop.f32.mrf.mxu0 }
 0x431   : > { %v645_v27 = vpop.xlane.xlu0 %644 }
 0x432   : > { %v649_v28 = vsub.f32 %v641_v4, %v645_v27 }
 0x434   : > { %v651_v29 = vmul.f32 1.442695, %v649_v28 }
 0x436   : > { %5101 = vpow2.f32 %v651_v29  ;;  %v924_v30 = vpop.f32.mrf.mxu0 }
 0x437   : > { %v930_v31 = vmul.f32 0.35355338, %v924_v30 }
 0x439   : > { %v648_v32 = vpop.xlane.xlu2 %647  ;;  %v932_v33 = vadd.f32 %v5502_v25, %v930_v31  ;;  %v492_v31 = vld [vmem:[%s7451_s5 + $0x60] sm:$0xff] }
 0x43a   : > { %v650_v34 = vsub.f32 %v642_v9, %v648_v32 }
 0x43b   : > { %v934_v35 = vsel %vm539_vm3, %v932_v33, -inf }
 0x43c   : > { %v5102_v36 = vpop.eup %5101  ;;  %v653_v37 = vmul.f32 1.442695, %v650_v34  ;;  %935 = vmax.xlane.f32.xlu2 %v934_v35 }
 0x43d   : > { %v655_v38 = vsel %vm539_vm3, %v5102_v36, 0.0 }
 0x43e   : > { %5103 = vpow2.f32 %v653_v37  ;;  %656 = vadd.xlane.f32.xlu0 %v655_v38  ;;  %v927_v51 = vpop.f32.mrf.mxu0 }
 0x43f   : > { %v931_v52 = vmul.f32 0.35355338, %v927_v51 }
 0x441   : > { %v804_v39 = vpop.xlane.xlu1 %803  ;;  %v933_v53 = vadd.f32 %v5502_v25, %v931_v52 }
 0x442   : > { %v808_v40 = vsub.f32 %v800_v14, %v804_v39 }
 0x443   : > { %v937_v54 = vsel %vm543_vm4, %v933_v53, -inf }
 0x444   : > { %v5104_v41 = vpop.eup %5103  ;;  %v810_v42 = vmul.f32 1.442695, %v808_v40 }
 0x445   : > { %v658_v43 = vsel %vm543_vm4, %v5104_v41, 0.0 }
 0x446   : > { %5105 = vpow2.f32 %v810_v42  ;;  %659 = vadd.xlane.f32.xlu1 %v658_v43 }
 0x449   : > { %v807_v46 = vpop.xlane.xlu0 %806 }
 0x44a   : > { %v809_v47 = vsub.f32 %v801_v21, %v807_v46  ;;  %v491_v21 = vld [vmem:[%s7451_s5 + $0x58] sm:$0xff]  ;;  %v5082_v46 = vld [vmem:[%s7451_s5 + $0x70] ss:$0 sm:$0xff] }
 0x44b   : > { %722 = vmatpush.msra.mxu3 %v491_v21  ;;  %v1026_v21 = vld [vmem:[%s7451_s5 + $0x78] sm:$0x3] }
 0x44c   : > { %v5106_v44 = vpop.eup %5105  ;;  %v812_v48 = vmul.f32 1.442695, %v809_v47 }
 0x44d   : > { %v814_v45 = vsel %vm539_vm3, %v5106_v44, 0.0  ;;  %881 = vmatpush.msrb.mxu3 %v492_v31  ;;  %v1084_v31 = vperm.slane %v1026_v21, 1 }
 0x44e   : > { %815 = vadd.xlane.f32.xlu1 %v814_v45  ;;  %5107 = vpow2.f32 %v812_v48 }
 0x452   : > { %665 = vrot.lane.b32.xlu0 %v5486_v22, %s7460_s15 }
 0x454   : > { %667 = vrot.lane.b32.xlu2 %v5479_v20, %s7460_s15  ;;  %v5108_v49 = vpop.eup %5107 }
 0x455   : > { %v817_v50 = vsel %vm543_vm4, %v5108_v49, 0.0 }
 0x467   : > { %826 = vrot.lane.b32.xlu1 %v5479_v20, %s7456_s16 }
 0x47d   : > { %818 = vadd.xlane.f32.xlu2 %v817_v50 }
 0x491   : > { %938 = vmax.xlane.f32.xlu1 %v937_v54 }
 0x495   : > { %956 = vrot.lane.b32.xlu2 %v5486_v22, %s7458_s17 }
 0x4aa   : > { %824 = vrot.lane.b32.xlu1 %v5486_v22, %s7456_s16 }
 0x4af   : > { %v936_v55 = vpop.xlane.xlu2 %935 }
 0x4b0   : > { %v940_v56 = vsub.f32 %v932_v33, %v936_v55 }
 0x4b1   : > { %v657_v58 = vpop.xlane.xlu0 %656 }
 0x4b2   : > { %v942_v57 = vmul.f32 1.442695, %v940_v56  ;;  %958 = vrot.lane.b32.xlu1 %v5479_v20, %s7458_s17  ;;  %s7462_s17 = smov 56  }
 0x4b4   : > { %5109 = vpow2.f32 %v942_v57 }
 0x4b5   : > { %5111 = vrcp.f32 %v657_v58  ;;  %v5364_v58 = vmov 32.0  }
 0x4b7   : > { %v668_v25 = vpop.permute.xlu2 %667 }
 0x4b8   : > { %4613 = vmatpush.msk.msrb.mxu2 %vm574_vm5, %v668_v25 }
 0x4b9   : > { %v660_v61 = vpop.xlane.xlu1 %659 }
 0x4ba   : > { %v5110_v59 = vpop.eup %5109  ;;  %5113 = vrcp.f32 %v660_v61 }
 0x4bb   : > { %v946_v60 = vsel %vm539_vm3, %v5110_v59, 0.0  ;;  %v5112_v62 = vpop.eup %5111 }
 0x4bc   : > { %947 = vadd.xlane.f32.xlu0 %v946_v60  ;;  %v663_v63 = vmul.f32 %v5112_v62, %v5102_v36 }
 0x4c0   : > { %v5114_v0 = vpop.eup %5113 }
 0x4c1   : > { %v664_v20 = vmul.f32 %v5114_v0, %v5104_v41  ;;  %v816_v1 = vpop.xlane.xlu1 %815 }
 0x4c4   : > { %v666_v22 = vpop.permute.xlu0 %665 }
 0x4c5   : > { %693 = vmatpush.msrb.mxu2 %v666_v22 }
 0x4c6   : > { %4614 = vmatmul.msk.f32.vlgmr.msrb.gmra.mxu2 %vm539_vm3, %v663_v63 }
 0x4ce   : > { %4615 = vmatmul.msk.f32.gmra.mxu2 %vm539_vm3, %v664_v20 }
 0x4d9   : > { %v827_v2 = vpop.permute.xlu1 %826 }
 0x4da   : > { %4624 = vmatpush.msk.msra.mxu2 %vm574_vm5, %v827_v2 }
 0x4f0   : > { %v819_v8 = vpop.xlane.xlu2 %818 }
 0x4f8   : > { %v957_v18 = vpop.permute.xlu2 %956 }
 0x504   : > { %v939_v3 = vpop.xlane.xlu1 %938 }
 0x505   : > { %v941_v4 = vsub.f32 %v933_v53, %v939_v3 }
 0x507   : > { %v944_v5 = vmul.f32 1.442695, %v941_v4 }
 0x509   : > { %5115 = vpow2.f32 %v944_v5 }
 0x50a   : > { %5117 = vrcp.f32 %v816_v1 }
 0x50b   : > { %5119 = vrcp.f32 %v819_v8  ;;  %v1088_v8 = vld [vmem:[%s7452_s6 + $0x18] sm:$0xff] }
 0x50f   : > { %v5116_v6 = vpop.eup %5115 }
 0x510   : > { %v949_v7 = vsel %vm543_vm4, %v5116_v6, 0.0  ;;  %v5118_v9 = vpop.eup %5117 }
 0x511   : > { %950 = vadd.xlane.f32.xlu1 %v949_v7  ;;  %v822_v10 = vmul.f32 %v5118_v9, %v5106_v44  ;;  %v5120_v13 = vpop.eup %5119  ;;  %v1089_v7 = vld [vmem:[%s7452_s6 + $0x20] sm:$0xff]  ;;  %v1087_v9 = vld [vmem:[%s7452_s6 + $0x10] sm:$0xff] }
 0x512   : > { %v823_v17 = vmul.f32 %v5120_v13, %v5108_v49 }
 0x51c   : > { %v825_v12 = vpop.permute.xlu1 %824 }
 0x51d   : > { %852 = vmatpush.msra.mxu2 %v825_v12 }
 0x51e   : > { %4625 = vmatmul.msk.f32.vlgmr.msra.gmra.mxu2 %vm539_vm3, %v822_v10 }
 0x524   : > { %v959_v14 = vpop.permute.xlu1 %958 }
 0x525   : > { %4633 = vmatpush.msk.msra.mxu1 %vm574_vm5, %v959_v14 }
 0x526   : > { %4626 = vmatmul.msk.f32.gmra.mxu2 %vm539_vm3, %v823_v17 }
 0x527   : > { %984 = vmatpush.msra.mxu1 %v957_v18 }
 0x52a   : > { %1225 = vrot.lane.b32.xlu1 %v5081_v19, %s5363_s14  ;;  %s4895_s14 = sshll.u32 %s7466_s10, 4 }
 0x52b   : > { %s5766_s21 = scalar_lea.vmem %s7455_s9, %s4895_s14  ;;  %s7463_s14 = smov 40  }
 0x52f   : > { %v948_v23 = vpop.xlane.xlu0 %947 }
 0x530   : > { %5121 = vrcp.f32 %v948_v23 }
 0x532   : > { %1353 = vrot.lane.b32.xlu1 %v5460_v11, %s5352_s19  ;;  %v493_v11 = vld [vmem:[%s7451_s5 + $0x68] sm:$0xff] }
 0x533   : > { %1013 = vmatpush.msrb.mxu2 %v493_v11  ;;  %v1130_v11 = vld [vmem:[%s7451_s5 + $0xb0] sm:$0xff] }
 0x536   : > { %v5122_v27 = vpop.eup %5121 }
 0x537   : > { %v954_v28 = vmul.f32 %v5122_v27, %v5110_v59 }
 0x539   : > { %4634 = vmatmul.msk.f32.vlgmr.msra.gmra.mxu1 %vm539_vm3, %v954_v28  ;;  %v1081_v28 = vperm.slane %v1026_v21, 0 }
 0x549   : > { %v695_v29 = vpop.f32.mrf.mxu2 }
 0x54a   : > { %4616 = vmatmul.msk.f32.vlgmr.msra.gmra.mxu3 %vm396_vm0, %v695_v29 }
 0x551   : > { %v698_v30 = vpop.f32.mrf.mxu2 }
 0x552   : > { %4617 = vmatmul.msk.f32.gmra.mxu3 %vm396_vm0, %v698_v30 }
 0x584   : > { %v951_v32 = vpop.xlane.xlu1 %950 }
 0x585   : > { %5123 = vrcp.f32 %v951_v32 }
 0x586   : > { %5125 = vrcp.f32 %v5364_v58 }
 0x58b   : > { %v5124_v33 = vpop.eup %5123 }
 0x58c   : > { %v955_v34 = vmul.f32 %v5124_v33, %v5116_v6  ;;  %v5126_v59 = vpop.eup %5125  ;;  %v1090_v6 = vld [vmem:[%s7452_s6 + $0x28] sm:$0xff] }
 0x58d   : > { %vm1041_vm7 = vweird.f32 %v5126_v59  ;;  %1111 = vmatpush.msra.mxu3 %v1090_v6  ;;  %v1191_v6 = vld [vmem:[%s7454_s8] sm:$0xff] }
 0x58e   : > { %4635 = vmatmul.msk.f32.gmra.mxu1 %vm539_vm3, %v955_v34  ;;  %v1131_v34 = vld [vmem:[%s7451_s5 + $0xb8] sm:$0xff]  ;;  %vm1273_vm3 = vcmask 23552  }
 0x58f   : > { %1112 = vmatpush.msra.mxu3 %v1089_v7  ;;  %1149 = vmatpush.msrb.mxu0 %v1131_v34  ;;  %v1270_v7 = vld [vmem:[%s7451_s5 + $0x40] sm:$0x7] }
 0x590   : > { %4644 = vmatpush.msk.msra.mxu2 %vm1298_vm15, %v1270_v7 }
 0x591   : > { %1113 = vmatpush.msra.mxu3 %v1088_v8  ;;  %1150 = vmatpush.msrb.mxu0 %v1130_v11  ;;  %v1262_v8 = vld [vmem:[%s5715_s23] sm:$0xff] }
 0x593   : > { %1114 = vmatpush.msra.mxu3 %v1087_v9 }
 0x59c   : > { %v5623_v35 = vpop.permute.xlu1 %1225 }
 0x5a1   : > { %v854_v36 = vpop.f32.mrf.mxu2 }
 0x5a2   : > { %4627 = vmatmul.msk.f32.vlgmr.msrb.gmra.mxu3 %vm396_vm0, %v854_v36  ;;  %v1129_v36 = vld [vmem:[%s7451_s5 + $0xa8] sm:$0xff] }
 0x5a3   : > { %1151 = vmatpush.msrb.mxu0 %v1129_v36  ;;  %v1266_v36 = vld [vmem:[%s5715_s23 + $0x20] sm:$0xff] }
 0x5a4   : > { %v1354_v37 = vpop.permute.xlu1 %1353 }
 0x5a5   : > { %1356 = vst.msk [vmem:[#allocation3 + $0x41] sm:$0x1] %vm449_vm1, %v1354_v37 }
 0x5a9   : > { %v857_v38 = vpop.f32.mrf.mxu2 }
 0x5aa   : > { %4628 = vmatmul.msk.f32.gmra.mxu3 %vm396_vm0, %v857_v38 }
 0x5b6   : > { %v986_v39 = vpop.f32.mrf.mxu1 }
 0x5b7   : > { %4636 = vmatmul.msk.f32.vlgmr.msrb.gmra.mxu2 %vm396_vm0, %v986_v39  ;;  %v1128_v39 = vld [vmem:[%s7451_s5 + $0xa0] sm:$0xff] }
 0x5b8   : > { %1152 = vmatpush.msrb.mxu0 %v1128_v39  ;;  %v1269_v39 = vld [vmem:[%s5715_s23 + $0x38] sm:$0xff] }
 0x5cd   : > { %v724_v41 = vpop.f32.mrf.mxu3 }
 0x5ce   : > { %v754_v44 = vadd.f32 %v5566_v24, %v724_v41  ;;  %v1127_v41 = vld [vmem:[%s7451_s5 + $0x98] sm:$0xff] }
 0x5cf   : > { %1153 = vmatpush.msrb.mxu0 %v1127_v41 }
 0x5d5   : > { %v727_v42 = vpop.f32.mrf.mxu3 }
 0x5d6   : > { %v757_v53 = vadd.f32 %v5568_v26, %v727_v42 }
 0x60b   : > { %v989_v40 = vpop.f32.mrf.mxu1 }
 0x60c   : > { %4637 = vmatmul.msk.f32.gmra.mxu2 %vm396_vm0, %v989_v40 }
 0x614   : > { %4645 = vmatmul.msk.f32.vlgmr.msra.gmra.mxu2 %vm1273_vm3, %v1262_v8  ;;  %v1234_v8 = vld [vmem:[%s7451_s5 + $0x18] sm:$0xff] }
 0x625   : > { %v883_v43 = vpop.f32.mrf.mxu3 }
 0x626   : > { %v889_v45 = vadd.f32 %v883_v43, %v754_v44 }
 0x62d   : > { %v886_v52 = vpop.f32.mrf.mxu3 }
 0x62e   : > { %v890_v54 = vadd.f32 %v886_v52, %v757_v53  ;;  %v1126_v52 = vld [vmem:[%s7451_s5 + $0x90] sm:$0xff]  ;;  %v1125_v53 = vld [vmem:[%s7451_s5 + $0x88] sm:$0xff] }
 0x62f   : > { %1154 = vmatpush.msrb.mxu0 %v1126_v52 }
 0x631   : > { %1155 = vmatpush.msrb.mxu0 %v1125_v53 }
 0x63a   : > { %v1015_v47 = vpop.f32.mrf.mxu2 }
 0x63b   : > { %v1021_v48 = vadd.f32 %v1015_v47, %v889_v45 }
 0x63d   : > { %v1024_v49 = vadd.f32 %v5082_v46, %v1021_v48 }
 0x63f   : > { %v1027_v50 = vadd.f32 %v1024_v49, %v5468_v15  ;;  %v1037_v15 = vmul.f32 32.0, %v5126_v59 }
 0x641   : > { %v1029_v51 = vsel %vm446_vm2, %v1027_v50, 0.0  ;;  %v1038_v60 = vsub.f32 1.0, %v1037_v15 }
 0x642   : > { %1030 = vadd.xlane.f32.xlu0 %v1029_v51 }
 0x643   : > { %v1039_v61 = vmul.f32 %v5126_v59, %v1038_v60  ;;  %v5084_v60 = vld [vmem:[%s7451_s5 + $0xc0] ss:$0 sm:$0xff] }
 0x645   : > { %v1040_v62 = vadd.f32 %v5126_v59, %v1039_v61 }
 0x647   : > { %v5639_v22 = vsel %vm1041_vm7, %v5126_v59, %v1040_v62 }
 0x68f   : > { %v1018_v55 = vpop.f32.mrf.mxu2 }
 0x690   : > { %v1022_v56 = vadd.f32 %v1018_v55, %v890_v54  ;;  %v1124_v54 = vld [vmem:[%s7451_s5 + $0x80] sm:$0xff]  ;;  %v5083_v55 = vld [vmem:[%s7452_s6 + $0x30] ss:$0 sm:$0xff] }
 0x691   : > { %1156 = vmatpush.msrb.mxu0 %v1124_v54 }
 0x692   : > { %v1025_v24 = vadd.f32 %v5082_v46, %v1022_v56 }
 0x694   : > { %v1028_v57 = vadd.f32 %v1025_v24, %v5472_v16 }
 0x696   : > { %v1033_v25 = vsel %vm1032_vm6, %v1028_v57, 0.0 }
 0x697   : > { %1034 = vadd.xlane.f32.xlu0 %v1033_v25  ;;  %v1319_v41 = vpop.f32.mrf.mxu2 }
 0x6b5   : > { %v1031_v26 = vpop.xlane.xlu0 %1030 }
 0x6b6   : > { %v1043_v63 = vmul.f32 %v5639_v22, %v1031_v26 }
 0x6b8   : > { %v1045_v0 = vsub.f32 %v1027_v50, %v1043_v63 }
 0x6ba   : > { %v1047_v20 = vmul.f32 %v1045_v0, %v1045_v0 }
 0x6bc   : > { %v1049_v16 = vsel %vm446_vm2, %v1047_v20, 0.0 }
 0x6bd   : > { %1050 = vadd.xlane.f32.xlu0 %v1049_v16 }
 0x70a   : > { %v1035_v1 = vpop.xlane.xlu0 %1034 }
 0x70b   : > { %v1044_v2 = vmul.f32 %v5639_v22, %v1035_v1 }
 0x70d   : > { %v1046_v3 = vsub.f32 %v1028_v57, %v1044_v2 }
 0x70f   : > { %v1048_v4 = vmul.f32 %v1046_v3, %v1046_v3 }
 0x711   : > { %v1052_v5 = vsel %vm1032_vm6, %v1048_v4, 0.0  ;;  %v1193_v4 = vld [vmem:[%s7454_s8 + $0x10] sm:$0xff] }
 0x712   : > { %1053 = vadd.xlane.f32.xlu2 %v1052_v5  ;;  %v1192_v5 = vld [vmem:[%s7454_s8 + $0x8] sm:$0xff] }
 0x730   : > { %v1051_v10 = vpop.xlane.xlu0 %1050 }
 0x731   : > { %v1055_v12 = vmul.f32 %v1051_v10, %v5639_v22 }
 0x733   : > { %v1057_v13 = vadd.f32 1e-05, %v1055_v12 }
 0x735   : > { %5127 = vrsqrt.f32 %v1057_v13  ;;  %vm1065_vm9 = vweird.f32 %v1057_v13 }
 0x73b   : > { %v5128_v14 = vpop.eup %5127 }
 0x73c   : > { %v1060_v17 = vmul.f32 %v5128_v14, %v1057_v13  ;;  %vm1066_vm8 = vweird.f32 %v5128_v14  ;;  %v1263_v13 = vld [vmem:[%s5715_s23 + $0x8] sm:$0xff] }
 0x73d   : > { %vm1067_vm10 = vmor %vm1065_vm9, %vm1066_vm8  ;;  %4646 = vmatmul.msk.f32.gmra.mxu2 %vm1273_vm3, %v1263_v13  ;;  %vm1596_vm9 = vcmask 533504  }
 0x73e   : > { %v1061_v18 = vmul.f32 %v5128_v14, %v1060_v17 }
 0x740   : > { %v1062_v19 = vmul.f32 0.5, %v1061_v18  ;;  %v1264_v18 = vld [vmem:[%s5715_s23 + $0x10] sm:$0xff] }
 0x742   : > { %v1063_v23 = vsub.f32 1.5, %v1062_v19 }
 0x744   : > { %v1064_v27 = vmul.f32 %v5128_v14, %v1063_v23  ;;  %v1163_v23 = vld [vmem:[%s7451_s5 + $0xc8] sm:$0x3] }
 0x745   : > { %4647 = vmatmul.msk.f32.gmra.mxu2 %vm1273_vm3, %v1264_v18 }
 0x746   : > { %v1068_v29 = vsel %vm1067_vm10, %v5128_v14, %v1064_v27 }
 0x747   : > { %v1079_v30 = vmul.f32 %v1068_v29, %v1045_v0  ;;  %v1265_v29 = vld [vmem:[%s5715_s23 + $0x18] sm:$0xff] }
 0x749   : > { %v1082_v32 = vmul.f32 %v1081_v28, %v1079_v30  ;;  %v1187_v30 = vperm.slane %v1163_v23, 0 }
 0x74b   : > { %v1085_v33 = vadd.f32 %v1084_v31, %v1082_v32 }
 0x74d   : > { %4638 = vmatmul.msk.f32.vlgmr.msra.gmra.mxu3 %vm446_vm2, %v1085_v33  ;;  %v1189_v33 = vperm.slane %v1163_v23, 1  ;;  %4648 = vmatmul.msk.f32.gmra.mxu2 %vm1273_vm3, %v1265_v29  ;;  %v1377_v29 = vld [vmem:[%s7453_s7 + $0x88] sm:$0xff] }
 0x755   : > { %4649 = vmatmul.msk.f32.gmra.mxu2 %vm1273_vm3, %v1266_v36 }
 0x785   : > { %v1054_v37 = vpop.xlane.xlu2 %1053 }
 0x786   : > { %v1056_v38 = vmul.f32 %v1054_v37, %v5639_v22  ;;  %v1267_v37 = vld [vmem:[%s5715_s23 + $0x28] sm:$0xff] }
 0x787   : > { %4650 = vmatmul.msk.f32.gmra.mxu2 %vm1273_vm3, %v1267_v37  ;;  %v1375_v37 = vld [vmem:[%s7453_s7 + $0x78] sm:$0xff] }
 0x788   : > { %v1058_v40 = vadd.f32 1e-05, %v1056_v38  ;;  %v1268_v38 = vld [vmem:[%s5715_s23 + $0x30] sm:$0xff] }
 0x78a   : > { %5129 = vrsqrt.f32 %v1058_v40  ;;  %vm1075_vm12 = vweird.f32 %v1058_v40 }
 0x78f   : > { %4651 = vmatmul.msk.f32.gmra.mxu2 %vm1273_vm3, %v1268_v38 }
 0x790   : > { %v5130_v42 = vpop.eup %5129 }
 0x791   : > { %v1070_v43 = vmul.f32 %v5130_v42, %v1058_v40  ;;  %vm1076_vm11 = vweird.f32 %v5130_v42  ;;  %v5085_v40 = vld [vmem:[%s7451_s5 + $0x48] ss:$0 sm:$0xff] }
 0x792   : > { %vm1077_vm13 = vmor %vm1075_vm12, %vm1076_vm11 }
 0x793   : > { %v1071_v44 = vmul.f32 %v5130_v42, %v1070_v43  ;;  %v1368_v43 = vld [vmem:[%s7453_s7 + $0x40] sm:$0xff] }
 0x795   : > { %v1072_v45 = vmul.f32 0.5, %v1071_v44  ;;  %v1320_v44 = vadd.f32 %v5085_v40, %v1319_v41 }
 0x797   : > { %v1073_v46 = vsub.f32 1.5, %v1072_v45  ;;  %4652 = vmatmul.msk.f32.gmra.mxu2 %vm1273_vm3, %v1269_v39  ;;  %v1367_v45 = vld [vmem:[%s7453_s7 + $0x38] sm:$0xff]  ;;  %1343 = vst.msk [vmem:[#allocation3] sm:$0xff] %vm446_vm2, %v1320_v44  ;;  %v1373_v39 = vld [vmem:[%s7453_s7 + $0x68] sm:$0xff] }
 0x799   : > { %v1074_v47 = vmul.f32 %v5130_v42, %v1073_v46  ;;  %v1366_v46 = vld [vmem:[%s7453_s7 + $0x30] sm:$0xff] }
 0x79b   : > { %v1078_v48 = vsel %vm1077_vm13, %v5130_v42, %v1074_v47  ;;  %v1369_v42 = vld [vmem:[%s7453_s7 + $0x48] sm:$0xff] }
 0x79c   : > { %v1080_v49 = vmul.f32 %v1078_v48, %v1046_v3  ;;  %v1194_v3 = vld [vmem:[%s7454_s8 + $0x18] sm:$0xff]  ;;  %1418 = vmatpush.msrb.mxu3 %v1369_v42 }
 0x79d   : > { %1211 = vmatpush.msrb.mxu1 %v1194_v3 }
 0x79e   : > { %v1083_v50 = vmul.f32 %v1081_v28, %v1080_v49  ;;  %1419 = vmatpush.msrb.mxu3 %v1368_v43  ;;  %v1357_v49 = vld [vmem:[#allocation3] sm:$0xff] }
 0x79f   : > { %1212 = vmatpush.msrb.mxu1 %v1193_v4 }
 0x7a0   : > { %v1086_v51 = vadd.f32 %v1084_v31, %v1083_v50  ;;  %1420 = vmatpush.msrb.mxu3 %v1367_v45  ;;  %v1195_v50 = vld [vmem:[%s7454_s8 + $0x20] sm:$0x1] }
 0x7a1   : > { %1213 = vmatpush.msrb.mxu1 %v1192_v5 }
 0x7a2   : > { %4639 = vmatmul.msk.f32.gmra.mxu3 %vm446_vm2, %v1086_v51 }
 0x7a3   : > { %1214 = vmatpush.msrb.mxu1 %v1191_v6  ;;  %1421 = vmatpush.msrb.mxu3 %v1366_v46  ;;  %v1238_v46 = vld [vmem:[%s7451_s5 + $0x38] sm:$0x1] }
 0x7aa   : > { %4653 = vmatmul.msk.f32.vlgmr.msrb.gmra.mxu3 %vm446_vm2, %v1357_v49 }
 0x7c0   : > { %v1322_v47 = vpop.f32.mrf.mxu2 }
 0x7c1   : > { %v1323_v48 = vadd.f32 %v5085_v40, %v1322_v47 }
 0x7c3   : > { %1344 = vst.msk [vmem:[#allocation3 + $0x8] sm:$0xff] %vm446_vm2, %v1323_v48 }
 0x7c8   : > { %v1325_v52 = vpop.f32.mrf.mxu2 }
 0x7c9   : > { %v1326_v54 = vadd.f32 %v5085_v40, %v1325_v52 }
 0x7cb   : > { %1345 = vst.msk [vmem:[#allocation3 + $0x10] sm:$0xff] %vm446_vm2, %v1326_v54 }
 0x7d0   : > { %v1116_v56 = vpop.f32.mrf.mxu3 }
 0x7d1   : > { %v1117_v24 = vadd.f32 %v5083_v55, %v1116_v56 }
 0x7d3   : > { %v1122_v57 = vmax.f32 %v1117_v24, 0.0 }
 0x7d5   : > { %4640 = vmatmul.msk.f32.vlgmr.msrb.gmra.mxu0 %vm1134_vm14, %v1122_v57  ;;  %v1328_v57 = vpop.f32.mrf.mxu2 }
 0x825   : > { %v1119_v25 = vpop.f32.mrf.mxu3 }
 0x826   : > { %v1120_v58 = vadd.f32 %v5083_v55, %v1119_v25  ;;  %v1358_v55 = vld [vmem:[#allocation3 + $0x8] sm:$0xff]  ;;  %v1329_v25 = vadd.f32 %v5085_v40, %v1328_v57 }
 0x827   : > { %4654 = vmatmul.msk.f32.gmra.mxu3 %vm446_vm2, %v1358_v55 }
 0x828   : > { %v1123_v59 = vmax.f32 %v1120_v58, 0.0  ;;  %v1359_v58 = vld [vmem:[#allocation3 + $0x10] sm:$0xff]  ;;  %1346 = vst.msk [vmem:[#allocation3 + $0x18] sm:$0xff] %vm446_vm2, %v1329_v25 }
 0x82a   : > { %4641 = vmatmul.msk.f32.gmra.mxu0 %vm1134_vm14, %v1123_v59 }
 0x82f   : > { %4655 = vmatmul.msk.f32.gmra.mxu3 %vm446_vm2, %v1359_v58 }
 0x852   : > { %v1158_v15 = vpop.f32.mrf.mxu0 }
 0x8a7   : > { %v1160_v61 = vpop.f32.mrf.mxu0 }
 0x8a8   : > { %v1161_v62 = vadd.f32 %v5084_v60, %v1160_v61  ;;  %v1331_v60 = vpop.f32.mrf.mxu2 }
 0x8a9   : > { %v1332_v61 = vadd.f32 %v5085_v40, %v1331_v60 }
 0x8aa   : > { %v1164_v26 = vadd.f32 %v1161_v62, %v1086_v51  ;;  %v1360_v62 = vld [vmem:[#allocation3 + $0x18] sm:$0xff] }
 0x8ab   : > { %1347 = vst.msk [vmem:[#allocation3 + $0x20] sm:$0xff] %vm446_vm2, %v1332_v61  ;;  %4656 = vmatmul.msk.f32.gmra.mxu3 %vm446_vm2, %v1360_v62 }
 0x8ac   : > { %v1165_v63 = vsel %vm1032_vm6, %v1164_v26, 0.0 }
 0x8ad   : > { %1166 = vadd.xlane.f32.xlu0 %v1165_v63  ;;  %v1236_v63 = vld [vmem:[%s7451_s5 + $0x28] sm:$0xff] }
 0x920   : > { %v1167_v0 = vpop.xlane.xlu0 %1166 }
 0x921   : > { %v1168_v20 = vmul.f32 %v1167_v0, %v5639_v22  ;;  %v1334_v0 = vpop.f32.mrf.mxu2 }
 0x923   : > { %v1169_v16 = vsub.f32 %v1164_v26, %v1168_v20  ;;  %v1237_v26 = vld [vmem:[%s7451_s5 + $0x30] sm:$0xff]  ;;  %v1335_v20 = vadd.f32 %v5085_v40, %v1334_v0 }
 0x924   : > { %1254 = vmatpush.msra.mxu1 %v1237_v26 }
 0x925   : > { %v1170_v1 = vmul.f32 %v1169_v16, %v1169_v16  ;;  %1348 = vst.msk [vmem:[#allocation3 + $0x28] sm:$0xff] %vm446_vm2, %v1335_v20 }
 0x926   : > { %1255 = vmatpush.msra.mxu1 %v1236_v63 }
 0x927   : > { %v1171_v2 = vsel %vm1032_vm6, %v1170_v1, 0.0 }
 0x928   : > { %1172 = vadd.xlane.f32.xlu0 %v1171_v2 }
 0x929   : > { %v1337_v1 = vpop.f32.mrf.mxu2 }
 0x92a   : > { %v1338_v2 = vadd.f32 %v5085_v40, %v1337_v1 }
 0x92c   : > { %v1362_v3 = vld [vmem:[#allocation3 + $0x28] sm:$0xff]  ;;  %1349 = vst.msk [vmem:[#allocation3 + $0x30] sm:$0xff] %vm446_vm2, %v1338_v2 }
 0x931   : > { %v1340_v4 = vpop.f32.mrf.mxu2 }
 0x932   : > { %v1341_v5 = vadd.f32 %v5085_v40, %v1340_v4  ;;  %v1371_v40 = vld [vmem:[%s7453_s7 + $0x58] sm:$0xff] }
 0x933   : > { %v1363_v6 = vld [vmem:[#allocation3 + $0x30] sm:$0xff] }
 0x934   : > { %1350 = vst.msk [vmem:[#allocation3 + $0x38] sm:$0xff] %vm446_vm2, %v1341_v5 }
 0x93b   : > { %v1364_v7 = vld [vmem:[#allocation3 + $0x38] sm:$0xff] }
 0x99b   : > { %v1173_v9 = vpop.xlane.xlu0 %1172 }
 0x99c   : > { %v1174_v10 = vmul.f32 %v1173_v9, %v5639_v22  ;;  %v1423_v9 = vpop.f32.mrf.mxu3 }
 0x99e   : > { %v1175_v12 = vadd.f32 1e-05, %v1174_v10 }
 0x9a0   : > { %5131 = vrsqrt.f32 %v1175_v12  ;;  %vm1182_vm7 = vweird.f32 %v1175_v12 }
 0x9a4   : > { %v1426_v13 = vpop.f32.mrf.mxu3 }
 0x9a5   : > { %v5849_v43 = vadd.f32 %v1426_v13, %v1371_v40 }
 0x9a6   : > { %v5132_v14 = vpop.eup %5131 }
 0x9a7   : > { %v1177_v17 = vmul.f32 %v5132_v14, %v1175_v12  ;;  %vm1183_vm4 = vweird.f32 %v5132_v14 }
 0x9a8   : > { %vm1184_vm8 = vmor %vm1182_vm7, %vm1183_vm4 }
 0x9a9   : > { %v1178_v19 = vmul.f32 %v5132_v14, %v1177_v17 }
 0x9ab   : > { %v1179_v21 = vmul.f32 0.5, %v1178_v19 }
 0x9ad   : > { %v1180_v27 = vsub.f32 1.5, %v1179_v21  ;;  %v1376_v21 = vld [vmem:[%s7453_s7 + $0x80] sm:$0xff] }
 0x9af   : > { %v1181_v28 = vmul.f32 %v5132_v14, %v1180_v27 }
 0x9b1   : > { %v1185_v31 = vsel %vm1184_vm8, %v5132_v14, %v1181_v28  ;;  %v1429_v14 = vpop.f32.mrf.mxu3  ;;  %v1374_v28 = vld [vmem:[%s7453_s7 + $0x70] sm:$0xff] }
 0x9b2   : > { %v1186_v32 = vmul.f32 %v1185_v31, %v1169_v16  ;;  %v1361_v16 = vld [vmem:[#allocation3 + $0x20] sm:$0xff] }
 0x9b3   : > { %4657 = vmatmul.msk.f32.gmra.mxu3 %vm446_vm2, %v1361_v16 }
 0x9b4   : > { %v1188_v34 = vmul.f32 %v1187_v30, %v1186_v32 }
 0x9b6   : > { %v1190_v11 = vadd.f32 %v1189_v33, %v1188_v34  ;;  %v1370_v33 = vld [vmem:[%s7453_s7 + $0x50] sm:$0xff]  ;;  %v1372_v34 = vld [vmem:[%s7453_s7 + $0x60] sm:$0xff] }
 0x9b7   : > { %v5826_v36 = vadd.f32 %v1429_v14, %v1372_v34 }
 0x9b8   : > { %4642 = vmatmul.msk.f32.vlgmr.msrb.gmra.mxu1 %vm446_vm2, %v1190_v11  ;;  %v5824_v11 = vadd.f32 %v1423_v9, %v1370_v33 }
 0x9b9   : > { %v1432_v17 = vpop.f32.mrf.mxu3 }
 0x9ba   : > { %v5843_v41 = vadd.f32 %v1432_v17, %v1373_v39  ;;  %v5861_v45 = vpack.i.bf16 %v5824_v11, %v5849_v43 }
 0x9bb   : > { %4658 = vmatmul.msk.f32.gmra.mxu3 %vm446_vm2, %v1362_v3 }
 0x9bc   : > { %v5855_v44 = vpack.i.bf16 %v5826_v36, %v5843_v41 }
 0x9c3   : > { %4659 = vmatmul.msk.f32.gmra.mxu3 %vm446_vm2, %v1363_v6 }
 0x9cb   : > { %4660 = vmatmul.msk.f32.gmra.mxu3 %vm446_vm2, %v1364_v7 }
 0xa35   : > { %v1216_v51 = vpop.f32.mrf.mxu1 }
 0xa36   : > { %v1217_v53 = vadd.f32 %v1216_v51, %v1195_v50  ;;  %v1435_v18 = vpop.f32.mrf.mxu3 }
 0xa37   : > { %v5810_v30 = vadd.f32 %v1435_v18, %v1374_v28 }
 0xa38   : > { %v1219_v56 = vmul.f32 0.5, %v1217_v53  ;;  %4493 = vst [vmem:[%s5766_s21 + $0x8] sm:$0x1] %v1217_v53 }
 0xa3a   : > { %v1220_v24 = vmul.f32 1.442695, %v1219_v56 }
 0xa3c   : > { %5133 = vpow2.f32 %v1220_v24  ;;  %v1378_v24 = vld [vmem:[%s7453_s7 + $0x90] sm:$0x3] }
 0xa3e   : > { %v1438_v19 = vpop.f32.mrf.mxu3 }
 0xa3f   : > { %v5835_v38 = vadd.f32 %v1438_v19, %v1375_v37 }
 0xa41   : > { %v5847_v42 = vpack.i.bf16 %v5810_v30, %v5835_v38 }
 0xa42   : > { %v5134_v59 = vpop.eup %5133 }
 0xa43   : > { %v1228_v15 = vmul.f32 %v5134_v59, %v5623_v35  ;;  %v1235_v35 = vld [vmem:[%s7451_s5 + $0x20] sm:$0xff] }
 0xa44   : > { %1256 = vmatpush.msra.mxu1 %v1235_v35 }
 0xa45   : > { %1230 = vrot.lane.b32.xlu0 %v1228_v15, %s5352_s19 }
 0xa46   : > { %1257 = vmatpush.msra.mxu1 %v1234_v8  ;;  %v1441_v23 = vpop.f32.mrf.mxu3 }
 0xa47   : > { %v5800_v27 = vadd.f32 %v1441_v23, %v1376_v21  ;;  %v1450_v21 = vld [vmem:[%s7451_s5 + $0xd0] sm:$0xff] }
 0xa49   : > { %1476 = vrot.lane.b32.xlu1 %v5800_v27, %s5352_s19 }
 0xa4e   : > { %v1444_v31 = vpop.f32.mrf.mxu3 }
 0xa4f   : > { %v5812_v32 = vadd.f32 %v1444_v31, %v1377_v29 }
 0xa51   : > { %1478 = vrot.lane.b32.xlu2 %v5812_v32, %s5352_s19  ;;  %1472 = vrot.lane.b32.xlu1 %v5810_v30, %s5352_s19  ;;  %v5953_v63 = vpack.i.bf16 %v5800_v27, %v5812_v32 }
 0xa59   : > { %1464 = vrot.lane.b32.xlu2 %v5824_v11, %s5352_s19  ;;  %1468 = vrot.lane.b32.xlu1 %v5826_v36, %s5352_s19 }
 0xa61   : > { %4925 = vrot.lane.b32.xlu2 %v5847_v42, %s5353_s25  ;;  %4930 = vrot.lane.b32.xlu1 %v5855_v44, %s5353_s25 }
 0xa69   : > { %4935 = vrot.lane.b32.xlu2 %v5861_v45, %s5353_s25  ;;  %1801 = vrot.lane.b32.xlu1 %v5800_v27, %s5359_s12 }
 0xa71   : > { %1799 = vrot.lane.b32.xlu2 %v5835_v38, %s5359_s12  ;;  %1795 = vrot.lane.b32.xlu1 %v5843_v41, %s5359_s12 }
 0xa79   : > { %1793 = vrot.lane.b32.xlu2 %v5826_v36, %s5359_s12  ;;  %1789 = vrot.lane.b32.xlu1 %v5824_v11, %s5359_s12 }
 0xa81   : > { %1771 = vrot.lane.b32.xlu2 %v5824_v11, %s5354_s26  ;;  %1775 = vrot.lane.b32.xlu1 %v5826_v36, %s5354_s26 }
 0xa89   : > { %1777 = vrot.lane.b32.xlu2 %v5843_v41, %s5354_s26  ;;  %2268 = vrot.lane.b32.xlu1 %v5812_v32, %s5355_s27 }
 0xa91   : > { %2671 = vrot.lane.b32.xlu2 %v5812_v32, %s5358_s11  ;;  %2669 = vrot.lane.b32.xlu1 %v5800_v27, %s5358_s11 }
 0xa99   : > { %1783 = vrot.lane.b32.xlu2 %v5800_v27, %s5354_s26  ;;  %2667 = vrot.lane.b32.xlu1 %v5835_v38, %s5358_s11 }
 0xaa1   : > { %2262 = vrot.lane.b32.xlu2 %v5810_v30, %s5355_s27  ;;  %1785 = vrot.lane.b32.xlu1 %v5812_v32, %s5354_s26 }
 0xaa9   : > { %2260 = vrot.lane.b32.xlu2 %v5843_v41, %s5355_s27  ;;  %2258 = vrot.lane.b32.xlu1 %v5826_v36, %s5355_s27 }
 0xaab   : > { %v1479_v50 = vpop.permute.xlu2 %1478 }
 0xab1   : > { %2661 = vrot.lane.b32.xlu2 %v5826_v36, %s5358_s11  ;;  %2256 = vrot.lane.b32.xlu1 %v5849_v43, %s5355_s27 }
 0xab3   : > { %v5910_v51 = vpop.permute.xlu2 %1464 }
 0xab7   : > { %v1231_v10 = vpop.permute.xlu0 %1230 }
 0xab8   : > { %v1233_v12 = vadd.f32 %v1231_v10, %v1217_v53 }
 0xab9   : > { %2659 = vrot.lane.b32.xlu2 %v5849_v43, %s5358_s11 }
 0xaba   : > { %4643 = vmatmul.msk.f32.vlgmr.msra.gmra.mxu1 %vm446_vm2, %v1233_v12 }
 0xabb   : > { %v5912_v52 = vpop.permute.xlu2 %4925  ;;  %v1477_v53 = vpop.permute.xlu1 %1476 }
 0xabc   : > { %v4927_v33 = vunpack.i.l.bf16 %v5912_v52  ;;  %v4928_v34 = vunpack.i.h.bf16 %v5912_v52 }
 0xac3   : > { %v5914_v54 = vpop.permute.xlu2 %4935  ;;  %v1473_v55 = vpop.permute.xlu1 %1472 }
 0xacb   : > { %v5916_v56 = vpop.permute.xlu2 %1799  ;;  %v1469_v57 = vpop.permute.xlu1 %1468 }
 0xad3   : > { %v5929_v59 = vpop.permute.xlu2 %1793  ;;  %v5931_v15 = vpop.permute.xlu1 %4930 }
 0xad4   : > { %v4932_v39 = vunpack.i.l.bf16 %v5931_v15  ;;  %v4933_v40 = vunpack.i.h.bf16 %v5931_v15 }
 0xadb   : > { %v5939_v60 = vpop.permute.xlu2 %1771  ;;  %v5941_v61 = vpop.permute.xlu1 %1801 }
 0xae3   : > { %v5945_v62 = vpop.permute.xlu2 %1777  ;;  %v5949_v26 = vpop.permute.xlu1 %1795 }
 0xaeb   : > { %v2672_v35 = vpop.permute.xlu2 %2671  ;;  %v5957_v0 = vpop.permute.xlu1 %1789 }
 0xaf3   : > { %v5961_v20 = vpop.permute.xlu2 %1783  ;;  %v5963_v16 = vpop.permute.xlu1 %1775 }
 0xafb   : > { %v5967_v1 = vpop.permute.xlu2 %2262  ;;  %v5969_v2 = vpop.permute.xlu1 %2268 }
 0xb03   : > { %v5973_v3 = vpop.permute.xlu2 %2260  ;;  %v2670_v4 = vpop.permute.xlu1 %2669 }
 0xb0b   : > { %v5977_v5 = vpop.permute.xlu2 %2661  ;;  %v2668_v6 = vpop.permute.xlu1 %2667 }
 0xb13   : > { %v5983_v7 = vpop.permute.xlu2 %2659  ;;  %v5985_v8 = vpop.permute.xlu1 %1785 }
 0xb1b   : > { %v5990_v10 = vpop.permute.xlu1 %2258 }
 0xb23   : > { %v5996_v12 = vpop.permute.xlu1 %2256 }
 0xb37   : > { %v1259_v47 = vpop.f32.mrf.mxu1 }
 0xb38   : > { %v1260_v48 = vadd.f32 %v1259_v47, %v1238_v46  ;;  %v4937_v46 = vunpack.i.l.bf16 %v5914_v54  ;;  %v4938_v47 = vunpack.i.h.bf16 %v5914_v54 }
 0xb3a   : > { %1351 = vst.msk [vmem:[#allocation3 + $0x40] sm:$0x1] %vm449_vm1, %v1260_v48  ;;  %vm1571_vm1 = vcmask 539648  }
 0xb41   : > { %v1365_v49 = vld [vmem:[#allocation3 + $0x40] sm:$0x3] }
 0xb42   : > { %4661 = vmatmul.msk.f32.gmra.mxu3 %vm446_vm2, %v1365_v49 }
 0xbc5   : > { %v1447_v25 = vpop.f32.mrf.mxu3 }
 0xbc6   : > { %v5921_v58 = vadd.f32 %v1447_v25, %v1378_v24 }
 0xbc8   : > { %1805 = vrot.lane.b32.xlu2 %v5921_v58, %s5359_s12  ;;  %1688 = vrot.lane.b32.xlu1 %v5921_v58, %s5353_s25 }
 0xbc9   : > { %1480 = vrot.lane.b32.xlu0 %v5921_v58, %s5352_s19 }
 0xbd0   : > { %2673 = vrot.lane.b32.xlu2 %v5921_v58, %s5358_s11  ;;  %2270 = vrot.lane.b32.xlu1 %v5921_v58, %s5355_s27 }
 0xbd1   : > { %1474 = vrot.lane.b32.xlu0 %v5835_v38, %s5352_s19 }
 0xbd9   : > { %1470 = vrot.lane.b32.xlu0 %v5843_v41, %s5352_s19 }
 0xbe1   : > { %1466 = vrot.lane.b32.xlu0 %v5849_v43, %s5352_s19 }
 0xbe9   : > { %4920 = vrot.lane.b32.xlu0 %v5953_v63, %s5353_s25 }
 0xbf1   : > { %1803 = vrot.lane.b32.xlu0 %v5812_v32, %s5359_s12 }
 0xbf9   : > { %1797 = vrot.lane.b32.xlu0 %v5810_v30, %s5359_s12 }
 0xc01   : > { %1791 = vrot.lane.b32.xlu0 %v5849_v43, %s5359_s12 }
 0xc09   : > { %1773 = vrot.lane.b32.xlu0 %v5849_v43, %s5354_s26 }
 0xc11   : > { %1779 = vrot.lane.b32.xlu0 %v5810_v30, %s5354_s26 }
 0xc19   : > { %1781 = vrot.lane.b32.xlu0 %v5835_v38, %s5354_s26 }
 0xc21   : > { %2266 = vrot.lane.b32.xlu0 %v5800_v27, %s5355_s27 }
 0xc22   : > { %v1806_v9 = vpop.permute.xlu2 %1805 }
 0xc23   : > { %4690 = vmatpush.xpose.msk.msrb.mxu2 %vm396_vm0, %v1806_v9 }
 0xc29   : > { %2264 = vrot.lane.b32.xlu0 %v5835_v38, %s5355_s27 }
 0xc2a   : > { %v2674_v31 = vpop.permute.xlu2 %2673 }
 0xc31   : > { %2665 = vrot.lane.b32.xlu0 %v5810_v30, %s5358_s11 }
 0xc39   : > { %2663 = vrot.lane.b32.xlu0 %v5843_v41, %s5358_s11 }
 0xc3a   : > { %v1689_v13 = vpop.permute.xlu1 %1688 }
 0xc3b   : > { %v1481_v14 = vpop.permute.xlu0 %1480  ;;  %4680 = vmatpush.msk.msrb.mxu1 %vm574_vm5, %v1689_v13 }
 0xc3c   : > { %4662 = vmatpush.xpose.msk.msra.mxu0 %vm396_vm0, %v1481_v14 }
 0xc40   : > { %4663 = vmatpush.xpose.msk.msra.mxu0 %vm396_vm0, %v1479_v50 }
 0xc41   : > { %1787 = vrot.lane.b32.xlu0 %v5921_v58, %s5354_s26 }
 0xc43   : > { %v1475_v17 = vpop.permute.xlu0 %1474 }
 0xc44   : > { %4664 = vmatpush.xpose.msk.msra.mxu0 %vm396_vm0, %v1477_v53 }
 0xc48   : > { %4665 = vmatpush.xpose.msk.msra.mxu0 %vm396_vm0, %v1475_v17 }
 0xc4b   : > { %v1471_v18 = vpop.permute.xlu0 %1470 }
 0xc4c   : > { %4666 = vmatpush.xpose.msk.msra.mxu0 %vm396_vm0, %v1473_v55 }
 0xc50   : > { %4667 = vmatpush.xpose.msk.msra.mxu0 %vm396_vm0, %v1471_v18 }
 0xc53   : > { %v1467_v19 = vpop.permute.xlu0 %1466 }
 0xc54   : > { %4668 = vmatpush.xpose.msk.msra.mxu0 %vm396_vm0, %v1469_v57 }
 0xc58   : > { %4669 = vmatpush.xpose.msk.msra.mxu0 %vm396_vm0, %v1467_v19 }
 0xc5b   : > { %v4921_v23 = vpop.permute.xlu0 %4920 }
 0xc5c   : > { %v4922_v28 = vunpack.i.l.bf16 %v4921_v23  ;;  %4670 = vmatpush.xpose.msk.msra.mxu0 %vm396_vm0, %v5910_v51  ;;  %v4923_v29 = vunpack.i.h.bf16 %v4921_v23  ;;  %v2271_v51 = vpop.permute.xlu1 %2270 }
 0xc5e   : > { %1735 = vmatpush.msrb.mxu1 %v4922_v28 }
 0xc5f   : > { %4671 = vmatmul.msk.f32.vlgmr.msra.gmra.mxu0 %vm396_vm0, %v5824_v11 }
 0xc60   : > { %2207 = vmatpush.msrb.mxu0 %v1450_v21  ;;  %1736 = vmatpush.msrb.mxu1 %v4923_v29 }
 0xc62   : > { %4773 = vmatpush.xpose.msk.msra.mxu0 %vm396_vm0, %v2674_v31  ;;  %1737 = vmatpush.msrb.mxu1 %v4927_v33 }
 0xc63   : > { %v1804_v37 = vpop.permute.xlu0 %1803 }
 0xc64   : > { %1738 = vmatpush.msrb.mxu1 %v4928_v34  ;;  %4691 = vmatpush.xpose.msk.msrb.mxu2 %vm396_vm0, %v1804_v37 }
 0xc66   : > { %4774 = vmatpush.xpose.msk.msra.mxu0 %vm396_vm0, %v2672_v35  ;;  %1739 = vmatpush.msrb.mxu1 %v4932_v39 }
 0xc67   : > { %4672 = vmatmul.msk.f32.gmra.mxu0 %vm396_vm0, %v5849_v43 }
 0xc68   : > { %1740 = vmatpush.msrb.mxu1 %v4933_v40  ;;  %4692 = vmatpush.xpose.msk.msrb.mxu2 %vm396_vm0, %v5941_v61 }
 0xc6a   : > { %4775 = vmatpush.xpose.msk.msra.mxu0 %vm396_vm0, %v2670_v4  ;;  %1741 = vmatpush.msrb.mxu1 %v4937_v46 }
 0xc6b   : > { %v1798_v48 = vpop.permute.xlu0 %1797 }
 0xc6c   : > { %1742 = vmatpush.msrb.mxu1 %v4938_v47  ;;  %4693 = vmatpush.xpose.msk.msrb.mxu2 %vm396_vm0, %v5916_v56 }
 0xc6e   : > { %4776 = vmatpush.xpose.msk.msra.mxu0 %vm396_vm0, %v2668_v6 }
 0xc6f   : > { %4673 = vmatmul.msk.f32.gmra.mxu0 %vm396_vm0, %v5826_v36 }
 0xc70   : > { %4694 = vmatpush.xpose.msk.msrb.mxu2 %vm396_vm0, %v1798_v48 }
 0xc73   : > { %v1792_v49 = vpop.permute.xlu0 %1791 }
 0xc74   : > { %4695 = vmatpush.xpose.msk.msrb.mxu2 %vm396_vm0, %v5949_v26 }
 0xc77   : > { %4674 = vmatmul.msk.f32.gmra.mxu0 %vm396_vm0, %v5843_v41 }
 0xc78   : > { %4696 = vmatpush.xpose.msk.msrb.mxu2 %vm396_vm0, %v5929_v59 }
 0xc7b   : > { %v1774_v50 = vpop.permute.xlu0 %1773 }
 0xc7c   : > { %4697 = vmatpush.xpose.msk.msrb.mxu2 %vm396_vm0, %v1792_v49 }
 0xc7f   : > { %4675 = vmatmul.msk.f32.gmra.mxu0 %vm396_vm0, %v5810_v30 }
 0xc80   : > { %4698 = vmatpush.xpose.msk.msrb.mxu2 %vm396_vm0, %v5957_v0 }
 0xc83   : > { %v1780_v52 = vpop.permute.xlu0 %1779  ;;  %4699 = vmatmul.msk.f32.vlgmr.msrb.gmra.mxu2 %vm396_vm0, %v5939_v60 }
 0xc84   : > { %4736 = vmatpush.xpose.msk.msra.mxu2 %vm396_vm0, %v2271_v51 }
 0xc87   : > { %4676 = vmatmul.msk.f32.gmra.mxu0 %vm396_vm0, %v5835_v38 }
 0xc88   : > { %4737 = vmatpush.xpose.msk.msra.mxu2 %vm396_vm0, %v5969_v2 }
 0xc8b   : > { %v1782_v53 = vpop.permute.xlu0 %1781  ;;  %4700 = vmatmul.msk.f32.gmra.mxu2 %vm396_vm0, %v1774_v50 }
 0xc8f   : > { %4677 = vmatmul.msk.f32.gmra.mxu0 %vm396_vm0, %v5800_v27 }
 0xc93   : > { %v2267_v54 = vpop.permute.xlu0 %2266  ;;  %4701 = vmatmul.msk.f32.gmra.mxu2 %vm396_vm0, %v5963_v16 }
 0xc94   : > { %4738 = vmatpush.xpose.msk.msra.mxu2 %vm396_vm0, %v2267_v54 }
 0xc97   : > { %4678 = vmatmul.msk.f32.gmra.mxu0 %vm396_vm0, %v5812_v32 }
 0xc9b   : > { %v2265_v55 = vpop.permute.xlu0 %2264  ;;  %4702 = vmatmul.msk.f32.gmra.mxu2 %vm396_vm0, %v5945_v62 }
 0xc9c   : > { %4739 = vmatpush.xpose.msk.msra.mxu2 %vm396_vm0, %v2265_v55 }
 0xc9f   : > { %4679 = vmatmul.msk.f32.gmra.mxu0 %vm396_vm0, %v5921_v58 }
 0xca0   : > { %4740 = vmatpush.xpose.msk.msra.mxu2 %vm396_vm0, %v5967_v1 }
 0xca3   : > { %v2666_v56 = vpop.permute.xlu0 %2665  ;;  %4703 = vmatmul.msk.f32.gmra.mxu2 %vm396_vm0, %v1780_v52 }
 0xca4   : > { %4741 = vmatpush.xpose.msk.msra.mxu2 %vm396_vm0, %v5973_v3  ;;  %4777 = vmatpush.xpose.msk.msra.mxu0 %vm396_vm0, %v2666_v56 }
 0xca8   : > { %4742 = vmatpush.xpose.msk.msra.mxu2 %vm396_vm0, %v5990_v10 }
 0xcab   : > { %v2664_v24 = vpop.permute.xlu0 %2663  ;;  %4704 = vmatmul.msk.f32.gmra.mxu2 %vm396_vm0, %v1782_v53 }
 0xcac   : > { %4743 = vmatpush.xpose.msk.msra.mxu2 %vm396_vm0, %v5996_v12  ;;  %4778 = vmatpush.xpose.msk.msra.mxu0 %vm396_vm0, %v2664_v24 }
 0xcb0   : > { %4779 = vmatpush.xpose.msk.msra.mxu0 %vm396_vm0, %v5977_v5 }
 0xcb3   : > { %4705 = vmatmul.msk.f32.gmra.mxu2 %vm396_vm0, %v5961_v20  ;;  %v1788_v57 = vpop.permute.xlu0 %1787 }
 0xcb4   : > { %4780 = vmatpush.xpose.msk.msra.mxu0 %vm396_vm0, %v5983_v7 }
 0xcbb   : > { %4706 = vmatmul.msk.f32.gmra.mxu2 %vm396_vm0, %v5985_v8 }
 0xcc3   : > { %4707 = vmatmul.msk.f32.gmra.mxu2 %vm396_vm0, %v1788_v57 }
 0xcdc   : > { %v1535_v25 = vpop.f32.mrf.mxu0 }
 0xcdd   : > { %v1562_v59 = vmul.f32 0.35355338, %v1535_v25 }
 0xcdf   : > { %v1572_v15 = vsel %vm1571_vm1, %v1562_v59, -inf }
 0xce0   : > { %1573 = vmax.xlane.f32.xlu1 %v1572_v15 }
 0xce4   : > { %v1538_v60 = vpop.f32.mrf.mxu0 }
 0xce5   : > { %v1563_v61 = vmul.f32 0.35355338, %v1538_v60 }
 0xce7   : > { %v1575_v62 = vsel %vm1571_vm1, %v1563_v61, -inf }
 0xce8   : > { %1576 = vmax.xlane.f32.xlu0 %v1575_v62 }
 0xcec   : > { %v1541_v26 = vpop.f32.mrf.mxu0 }
 0xced   : > { %v1564_v35 = vmul.f32 0.35355338, %v1541_v26 }
 0xcef   : > { %v1578_v0 = vsel %vm1571_vm1, %v1564_v35, -inf }
 0xcf0   : > { %1579 = vmax.xlane.f32.xlu2 %v1578_v0 }
 0xcf4   : > { %v1544_v20 = vpop.f32.mrf.mxu0 }
 0xcf5   : > { %v1565_v16 = vmul.f32 0.35355338, %v1544_v20 }
 0xcf7   : > { %v1581_v1 = vsel %vm1571_vm1, %v1565_v16, -inf }
 0xcf8   : > { %1582 = vmax.xlane.f32.xlu1 %v1581_v1 }
 0xcfc   : > { %v1547_v2 = vpop.f32.mrf.mxu0 }
 0xcfd   : > { %v1566_v3 = vmul.f32 0.35355338, %v1547_v2 }
 0xcff   : > { %v1584_v4 = vsel %vm1571_vm1, %v1566_v3, -inf }
 0xd00   : > { %1585 = vmax.xlane.f32.xlu0 %v1584_v4 }
 0xd04   : > { %v1550_v5 = vpop.f32.mrf.mxu0 }
 0xd05   : > { %v6095_v6 = vmul.f32 0.35355338, %v1550_v5 }
 0xd07   : > { %v1587_v7 = vsel %vm1571_vm1, %v6095_v6, -inf }
 0xd08   : > { %1588 = vmax.xlane.f32.xlu2 %v1587_v7 }
 0xd0c   : > { %v1553_v8 = vpop.f32.mrf.mxu0 }
 0xd0d   : > { %v1568_v9 = vmul.f32 0.35355338, %v1553_v8 }
 0xd0f   : > { %v1590_v10 = vsel %vm1571_vm1, %v1568_v9, -inf }
 0xd10   : > { %1591 = vmax.xlane.f32.xlu2 %v1590_v10 }
 0xd14   : > { %v1556_v12 = vpop.f32.mrf.mxu0 }
 0xd15   : > { %v1569_v13 = vmul.f32 0.35355338, %v1556_v12 }
 0xd17   : > { %v1593_v14 = vsel %vm1571_vm1, %v1569_v13, -inf }
 0xd18   : > { %1594 = vmax.xlane.f32.xlu1 %v1593_v14 }
 0xd1c   : > { %v1559_v17 = vpop.f32.mrf.mxu0 }
 0xd1d   : > { %v6101_v18 = vmul.f32 0.35355338, %v1559_v17 }
 0xd1f   : > { %v1597_v19 = vsel %vm1596_vm9, %v6101_v18, -inf }
 0xd20   : > { %1598 = vmax.xlane.f32.xlu0 %v1597_v19 }
 0xd53   : > { %v1574_v21 = vpop.xlane.xlu1 %1573 }
 0xd54   : > { %v1600_v23 = vsub.f32 %v1562_v59, %v1574_v21 }
 0xd56   : > { %v1609_v28 = vmul.f32 1.442695, %v1600_v23 }
 0xd58   : > { %5135 = vpow2.f32 %v1609_v28 }
 0xd5b   : > { %v1577_v29 = vpop.xlane.xlu0 %1576 }
 0xd5c   : > { %v1601_v31 = vsub.f32 %v1563_v61, %v1577_v29 }
 0xd5e   : > { %v6105_v33 = vpop.eup %5135  ;;  %v1611_v34 = vmul.f32 1.442695, %v1601_v31 }
 0xd5f   : > { %v1627_v37 = vsel %vm1571_vm1, %v6105_v33, 0.0 }
 0xd60   : > { %5137 = vpow2.f32 %v1611_v34  ;;  %1628 = vadd.xlane.f32.xlu0 %v1627_v37 }
 0xd63   : > { %v1580_v39 = vpop.xlane.xlu2 %1579 }
 0xd64   : > { %v1602_v40 = vsub.f32 %v1564_v35, %v1580_v39 }
 0xd66   : > { %v6109_v46 = vpop.eup %5137  ;;  %v1613_v47 = vmul.f32 1.442695, %v1602_v40 }
 0xd67   : > { %v1630_v48 = vsel %vm1571_vm1, %v6109_v46, 0.0 }
 0xd68   : > { %5139 = vpow2.f32 %v1613_v47  ;;  %1631 = vadd.xlane.f32.xlu2 %v1630_v48 }
 0xd6b   : > { %v1583_v49 = vpop.xlane.xlu1 %1582 }
 0xd6c   : > { %v1603_v50 = vsub.f32 %v1565_v16, %v1583_v49 }
 0xd6e   : > { %v6113_v51 = vpop.eup %5139  ;;  %v1615_v52 = vmul.f32 1.442695, %v1603_v50 }
 0xd6f   : > { %v1633_v53 = vsel %vm1571_vm1, %v6113_v51, 0.0 }
 0xd70   : > { %5141 = vpow2.f32 %v1615_v52  ;;  %1634 = vadd.xlane.f32.xlu0 %v1633_v53 }
 0xd73   : > { %v1586_v54 = vpop.xlane.xlu0 %1585 }
 0xd74   : > { %v1604_v55 = vsub.f32 %v1566_v3, %v1586_v54 }
 0xd76   : > { %v6117_v56 = vpop.eup %5141  ;;  %v1617_v24 = vmul.f32 1.442695, %v1604_v55 }
 0xd77   : > { %v1636_v57 = vsel %vm1571_vm1, %v6117_v56, 0.0 }
 0xd78   : > { %5143 = vpow2.f32 %v1617_v24  ;;  %1637 = vadd.xlane.f32.xlu1 %v1636_v57 }
 0xd7b   : > { %v1589_v15 = vpop.xlane.xlu2 %1588 }
 0xd7c   : > { %v1605_v0 = vsub.f32 %v6095_v6, %v1589_v15 }
 0xd7e   : > { %v6121_v25 = vpop.eup %5143  ;;  %v1619_v1 = vmul.f32 1.442695, %v1605_v0 }
 0xd7f   : > { %v1639_v59 = vsel %vm1571_vm1, %v6121_v25, 0.0 }
 0xd80   : > { %2236 = vrot.lane.b32.xlu2 %v5824_v11, %s5356_s28  ;;  %1640 = vadd.xlane.f32.xlu0 %v1639_v59 }
 0xd83   : > { %v1592_v60 = vpop.xlane.xlu2 %1591 }
 0xd84   : > { %v1606_v61 = vsub.f32 %v1568_v9, %v1592_v60 }
 0xd86   : > { %v1621_v62 = vmul.f32 1.442695, %v1606_v61 }
 0xd88   : > { %5145 = vpow2.f32 %v1621_v62 }
 0xd89   : > { %5147 = vpow2.f32 %v1619_v1 }
 0xd8b   : > { %v1595_v20 = vpop.xlane.xlu1 %1594 }
 0xd8c   : > { %v1607_v16 = vsub.f32 %v1569_v13, %v1595_v20  ;;  %v1860_v13 = vpop.f32.mrf.mxu2 }
 0xd8d   : > { %v6186_v47 = vmul.f32 0.35355338, %v1860_v13 }
 0xd8e   : > { %v6131_v26 = vpop.eup %5145  ;;  %v1623_v2 = vmul.f32 1.442695, %v1607_v16 }
 0xd8f   : > { %v1645_v35 = vsel %vm1571_vm1, %v6131_v26, 0.0  ;;  %v6136_v3 = vpop.eup %5147 }
 0xd90   : > { %5149 = vpow2.f32 %v1623_v2  ;;  %v1642_v5 = vsel %vm1571_vm1, %v6136_v3, 0.0 }
 0xd91   : > { %2657 = vrot.lane.b32.xlu1 %v5824_v11, %s5358_s11 }
 0xd93   : > { %v1599_v6 = vpop.xlane.xlu0 %1598 }
 0xd94   : > { %2254 = vrot.lane.b32.xlu0 %v5824_v11, %s5355_s27  ;;  %v1863_v17 = vpop.f32.mrf.mxu2  ;;  %v1608_v21 = vsub.f32 %v6101_v18, %v1599_v6 }
 0xd96   : > { %v6138_v4 = vpop.eup %5149 }
 0xd97   : > { %v1648_v7 = vsel %vm1571_vm1, %v6138_v4, 0.0 }
 0xd9c   : > { %v6171_v31 = vpop.f32.mrf.mxu2 }
 0xd9d   : > { %v6243_v6 = vmul.f32 0.35355338, %v6171_v31 }
 0xda4   : > { %v1869_v40 = vpop.f32.mrf.mxu2 }
 0xda5   : > { %v6192_v52 = vmul.f32 0.35355338, %v1869_v40 }
 0xda7   : > { %v1905_v54 = vsel %vm1571_vm1, %v6192_v52, -inf }
 0xda9   : > { %1646 = vadd.xlane.f32.xlu2 %v1645_v35 }
 0xdac   : > { %v1872_v48 = vpop.f32.mrf.mxu2 }
 0xdb4   : > { %v1875_v53 = vpop.f32.mrf.mxu2 }
 0xdb5   : > { %v6196_v55 = vmul.f32 0.35355338, %v1875_v53 }
 0xdbb   : > { %1643 = vadd.xlane.f32.xlu1 %v1642_v5 }
 0xdbc   : > { %v1878_v24 = vpop.f32.mrf.mxu2 }
 0xdbd   : > { %v6202_v57 = vmul.f32 0.35355338, %v1878_v24 }
 0xdbe   : > { %1649 = vadd.xlane.f32.xlu0 %v1648_v7 }
 0xdbf   : > { %v1914_v59 = vsel %vm1571_vm1, %v6202_v57, -inf }
 0xdc1   : > { %2641 = vrot.lane.b32.xlu2 %v5849_v43, %s5357_s29 }
 0xdc9   : > { %2242 = vrot.lane.b32.xlu2 %v5843_v41, %s5356_s28 }
 0xdd1   : > { %2647 = vrot.lane.b32.xlu2 %v5810_v30, %s5357_s29 }
 0xdd2   : > { %2639 = vrot.lane.b32.xlu0 %v5824_v11, %s5357_s29 }
 0xdd3   : > { %v1629_v8 = vpop.xlane.xlu0 %1628 }
 0xdd4   : > { %5151 = vrcp.f32 %v1629_v8  ;;  %2238 = vrot.lane.b32.xlu1 %v5849_v43, %s5356_s28 }
 0xdd9   : > { %2248 = vrot.lane.b32.xlu2 %v5800_v27, %s5356_s28 }
 0xdda   : > { %v5152_v9 = vpop.eup %5151  ;;  %2240 = vrot.lane.b32.xlu0 %v5826_v36, %s5356_s28 }
 0xddb   : > { %v1663_v10 = vmul.f32 %v5152_v9, %v6105_v33  ;;  %v1632_v12 = vpop.xlane.xlu2 %1631 }
 0xddc   : > { %5153 = vrcp.f32 %v1632_v12 }
 0xddd   : > { %4681 = vmatmul.msk.f32.vlgmr.msrb.gmra.mxu1 %vm1571_vm1, %v1663_v10 }
 0xde1   : > { %2653 = vrot.lane.b32.xlu2 %v5812_v32, %s5357_s29 }
 0xde2   : > { %v5154_v11 = vpop.eup %5153  ;;  %2645 = vrot.lane.b32.xlu0 %v5843_v41, %s5357_s29  ;;  %v1625_v41 = vmul.f32 1.442695, %v1608_v21 }
 0xde3   : > { %v1635_v43 = vpop.xlane.xlu0 %1634  ;;  %v1664_v14 = vmul.f32 %v5154_v11, %v6109_v46  ;;  %v2237_v50 = vpop.permute.xlu2 %2236 }
 0xde4   : > { %5155 = vrcp.f32 %v1635_v43 }
 0xde5   : > { %4682 = vmatmul.msk.f32.gmra.mxu1 %vm1571_vm1, %v1664_v14 }
 0xdea   : > { %v5156_v19 = vpop.eup %5155  ;;  %2246 = vrot.lane.b32.xlu0 %v5835_v38, %s5356_s28 }
 0xdeb   : > { %v1638_v23 = vpop.xlane.xlu1 %1637  ;;  %v1665_v28 = vmul.f32 %v5156_v19, %v6113_v51  ;;  %v1896_v51 = vsel %vm1571_vm1, %v6186_v47, -inf }
 0xdec   : > { %5157 = vrcp.f32 %v1638_v23 }
 0xded   : > { %4683 = vmatmul.msk.f32.gmra.mxu1 %vm1571_vm1, %v1665_v28  ;;  %5159 = vpow2.f32 %v1625_v41 }
 0xdf2   : > { %v5158_v29 = vpop.eup %5157  ;;  %2651 = vrot.lane.b32.xlu0 %v5800_v27, %s5357_s29 }
 0xdf3   : > { %v1641_v33 = vpop.xlane.xlu0 %1640  ;;  %v1666_v34 = vmul.f32 %v5158_v29, %v6117_v56  ;;  %v6177_v18 = vpop.eup %5159  ;;  %v1911_v56 = vsel %vm1571_vm1, %v6196_v55, -inf }
 0xdf4   : > { %5161 = vrcp.f32 %v1641_v33  ;;  %v1651_v27 = vsel %vm1596_vm9, %v6177_v18, 0.0  ;;  %v1881_v29 = vpop.f32.mrf.mxu2 }
 0xdf5   : > { %4684 = vmatmul.msk.f32.gmra.mxu1 %vm1571_vm1, %v1666_v34 }
 0xdfa   : > { %v5162_v37 = vpop.eup %5161  ;;  %2252 = vrot.lane.b32.xlu0 %v5921_v58, %s5356_s28 }
 0xdfb   : > { %v1667_v39 = vmul.f32 %v5162_v37, %v6121_v25  ;;  %v6204_v25 = vmul.f32 0.35355338, %v1863_v17 }
 0xdfd   : > { %4685 = vmatmul.msk.f32.gmra.mxu1 %vm1571_vm1, %v1667_v39  ;;  %v1899_v15 = vsel %vm1571_vm1, %v6204_v25, -inf  ;;  %v1884_v39 = vpop.f32.mrf.mxu2 }
 0xdfe   : > { %1652 = vadd.xlane.f32.xlu1 %v1651_v27  ;;  %v6272_v40 = vmul.f32 0.35355338, %v1884_v39 }
 0xe03   : > { %v2658_v46 = vpop.permute.xlu1 %2657 }
 0xe04   : > { %4781 = vmatpush.xpose.msk.msra.mxu0 %vm396_vm0, %v2658_v46 }
 0xe06   : > { %v2255_v49 = vpop.permute.xlu0 %2254 }
 0xe07   : > { %4744 = vmatpush.xpose.msk.msra.mxu2 %vm396_vm0, %v2255_v49 }
 0xe0a   : > { %1897 = vmax.xlane.f32.xlu2 %v1896_v51  ;;  %4745 = vmatmul.msk.f32.vlgmr.msra.gmra.mxu2 %vm396_vm0, %v2237_v50 }
 0xe12   : > { %1906 = vmax.xlane.f32.xlu2 %v1905_v54 }
 0xe17   : > { %2643 = vrot.lane.b32.xlu1 %v5826_v36, %s5357_s29  ;;  %v6212_v36 = vmul.f32 0.35355338, %v1872_v48 }
 0xe19   : > { %v1908_v60 = vsel %vm1571_vm1, %v6212_v36, -inf }
 0xe1a   : > { %1912 = vmax.xlane.f32.xlu2 %v1911_v56 }
 0xe1f   : > { %2244 = vrot.lane.b32.xlu1 %v5810_v30, %s5356_s28  ;;  %v1647_v30 = vpop.xlane.xlu2 %1646 }
 0xe22   : > { %1915 = vmax.xlane.f32.xlu2 %v1914_v59 }
 0xe24   : > { %1900 = vmax.xlane.f32.xlu0 %v1899_v15  ;;  %v6287_v15 = vmul.f32 0.35355338, %v1881_v29 }
 0xe27   : > { %2649 = vrot.lane.b32.xlu1 %v5835_v38, %s5357_s29 }
 0xe2c   : > { %1909 = vmax.xlane.f32.xlu0 %v1908_v60 }
 0xe2e   : > { %v1644_v61 = vpop.xlane.xlu1 %1643 }
 0xe2f   : > { %5163 = vrcp.f32 %v1644_v61  ;;  %2250 = vrot.lane.b32.xlu1 %v5812_v32, %s5356_s28 }
 0xe30   : > { %5165 = vrcp.f32 %v1647_v30  ;;  %v1917_v30 = vsel %vm1571_vm1, %v6287_v15, -inf }
 0xe31   : > { %v1650_v38 = vpop.xlane.xlu0 %1649 }
 0xe32   : > { %5167 = vrcp.f32 %v1650_v38 }
 0xe35   : > { %v5164_v62 = vpop.eup %5163 }
 0xe36   : > { %v1668_v35 = vmul.f32 %v5164_v62, %v6136_v3  ;;  %v5166_v0 = vpop.eup %5165  ;;  %v6237_v3 = vpop.permute.xlu2 %2641 }
 0xe37   : > { %2655 = vrot.lane.b32.xlu1 %v5921_v58, %s5357_s29  ;;  %v1669_v20 = vmul.f32 %v5166_v0, %v6131_v26 }
 0xe38   : > { %4686 = vmatmul.msk.f32.gmra.mxu1 %vm1571_vm1, %v1668_v35  ;;  %v5168_v32 = vpop.eup %5167 }
 0xe39   : > { %v1670_v2 = vmul.f32 %v5168_v32, %v6138_v4  ;;  %v1902_v4 = vsel %vm1571_vm1, %v6243_v6, -inf }
 0xe3a   : > { %4945 = vrot.lane.b32.xlu2 %v5847_v42, %s7462_s17 }
 0xe3e   : > { %v2243_v5 = vpop.permute.xlu2 %2242 }
 0xe40   : > { %4940 = vrot.lane.b32.xlu0 %v5953_v63, %s7462_s17  ;;  %4687 = vmatmul.msk.f32.gmra.mxu1 %vm1571_vm1, %v1669_v20 }
 0xe42   : > { %4955 = vrot.lane.b32.xlu2 %v5861_v45, %s7462_s17 }
 0xe44   : > { %v6232_v16 = vpop.permute.xlu0 %2639 }
 0xe46   : > { %v2239_v1 = vpop.permute.xlu1 %2238  ;;  %v6247_v8 = vpop.permute.xlu2 %2647 }
 0xe47   : > { %4746 = vmatmul.msk.f32.gmra.mxu2 %vm396_vm0, %v2239_v1 }
 0xe48   : > { %4688 = vmatmul.msk.f32.gmra.mxu1 %vm1571_vm1, %v1670_v2 }
 0xe4c   : > { %v2241_v26 = vpop.permute.xlu0 %2240 }
 0xe4e   : > { %v2249_v12 = vpop.permute.xlu2 %2248 }
 0xe4f   : > { %4747 = vmatmul.msk.f32.gmra.mxu2 %vm396_vm0, %v2241_v26 }
 0xe54   : > { %v6251_v13 = vpop.permute.xlu0 %2645 }
 0xe56   : > { %v6254_v14 = vpop.permute.xlu2 %2653 }
 0xe57   : > { %4748 = vmatmul.msk.f32.gmra.mxu2 %vm396_vm0, %v2243_v5 }
 0xe5a   : > { %v1744_v7 = vpop.f32.mrf.mxu1 }
 0xe5b   : > { %4727 = vmatmul.msk.f32.vlgmr.msrb.gmra.mxu0 %vm396_vm0, %v1744_v7 }
 0xe5c   : > { %v2247_v23 = vpop.permute.xlu0 %2246 }
 0xe61   : > { %1903 = vmax.xlane.f32.xlu1 %v1902_v4 }
 0xe62   : > { %v1747_v9 = vpop.f32.mrf.mxu1 }
 0xe63   : > { %4728 = vmatmul.msk.f32.gmra.mxu0 %vm396_vm0, %v1747_v9 }
 0xe64   : > { %v6264_v33 = vpop.permute.xlu0 %2651 }
 0xe6a   : > { %v1750_v10 = vpop.f32.mrf.mxu1 }
 0xe6b   : > { %4729 = vmatmul.msk.f32.gmra.mxu0 %vm396_vm0, %v1750_v10 }
 0xe6c   : > { %v2253_v27 = vpop.permute.xlu0 %2252 }
 0xe71   : > { %v1653_v11 = vpop.xlane.xlu1 %1652 }
 0xe72   : > { %5169 = vrcp.f32 %v1653_v11  ;;  %v1753_v43 = vpop.f32.mrf.mxu1 }
 0xe73   : > { %4730 = vmatmul.msk.f32.gmra.mxu0 %vm396_vm0, %v1753_v43 }
 0xe78   : > { %v5170_v17 = vpop.eup %5169 }
 0xe79   : > { %v1671_v19 = vmul.f32 %v5170_v17, %v6177_v18 }
 0xe7a   : > { %2011 = vrot.lane.b32.xlu1 %v5921_v58, %s7462_s17  ;;  %v1756_v21 = vpop.f32.mrf.mxu1 }
 0xe7b   : > { %4689 = vmatmul.msk.f32.gmra.mxu1 %vm1571_vm1, %v1671_v19  ;;  %4731 = vmatmul.msk.f32.gmra.mxu0 %vm396_vm0, %v1756_v21 }
 0xe7d   : > { %v1898_v28 = vpop.xlane.xlu2 %1897 }
 0xe7e   : > { %v1923_v41 = vsub.f32 %v6186_v47, %v1898_v28  ;;  %v1920_v47 = vsel %vm1596_vm9, %v6272_v40, -inf }
 0xe80   : > { %v1932_v31 = vmul.f32 1.442695, %v1923_v41 }
 0xe82   : > { %5171 = vpow2.f32 %v1932_v31  ;;  %4950 = vrot.lane.b32.xlu1 %v5855_v44, %s7462_s17 }
 0xe85   : > { %v1907_v51 = vpop.xlane.xlu2 %1906 }
 0xe86   : > { %v1926_v56 = vsub.f32 %v6192_v52, %v1907_v51 }
 0xe88   : > { %v6266_v34 = vpop.eup %5171  ;;  %v1938_v59 = vmul.f32 1.442695, %v1926_v56 }
 0xe89   : > { %v6268_v18 = vpop.permute.xlu1 %2643  ;;  %v1950_v37 = vsel %vm1571_vm1, %v6266_v34, 0.0 }
 0xe8a   : > { %1951 = vadd.xlane.f32.xlu0 %v1950_v37 }
 0xe8d   : > { %v1913_v52 = vpop.xlane.xlu2 %1912  ;;  %v2325_v4 = vpop.f32.mrf.mxu2 }
 0xe8e   : > { %v1928_v38 = vsub.f32 %v6196_v55, %v1913_v52 }
 0xe90   : > { %v1942_v20 = vmul.f32 1.442695, %v1928_v38 }
 0xe91   : > { %v2245_v46 = vpop.permute.xlu1 %2244 }
 0xe92   : > { %1921 = vmax.xlane.f32.xlu0 %v1920_v47  ;;  %4749 = vmatmul.msk.f32.gmra.mxu2 %vm396_vm0, %v2245_v46 }
 0xe95   : > { %v1916_v32 = vpop.xlane.xlu2 %1915 }
 0xe96   : > { %v1929_v2 = vsub.f32 %v6202_v57, %v1916_v32 }
 0xe97   : > { %v1901_v48 = vpop.xlane.xlu0 %1900 }
 0xe98   : > { %v1924_v49 = vsub.f32 %v6204_v25, %v1901_v48  ;;  %v1944_v5 = vmul.f32 1.442695, %v1929_v2 }
 0xe99   : > { %v6279_v53 = vpop.permute.xlu1 %2649 }
 0xe9a   : > { %v1934_v50 = vmul.f32 1.442695, %v1924_v49  ;;  %4750 = vmatmul.msk.f32.gmra.mxu2 %vm396_vm0, %v2247_v23 }
 0xe9c   : > { %5173 = vpow2.f32 %v1934_v50 }
 0xe9d   : > { %5175 = vpow2.f32 %v1938_v59  ;;  %v4946_v50 = vpop.permute.xlu2 %4945 }
 0xe9e   : > { %v4947_v59 = vunpack.i.l.bf16 %v4946_v50 }
 0xe9f   : > { %v1910_v25 = vpop.xlane.xlu0 %1909 }
 0xea0   : > { %v1927_v61 = vsub.f32 %v6212_v36, %v1910_v25  ;;  %v4948_v25 = vunpack.i.h.bf16 %v4946_v50 }
 0xea1   : > { %v2251_v60 = vpop.permute.xlu1 %2250 }
 0xea2   : > { %v6281_v54 = vpop.eup %5173  ;;  %4751 = vmatmul.msk.f32.gmra.mxu2 %vm396_vm0, %v2249_v12  ;;  %v1940_v62 = vmul.f32 1.442695, %v1927_v61 }
 0xea3   : > { %v1953_v24 = vsel %vm1571_vm1, %v6281_v54, 0.0  ;;  %v6293_v35 = vpop.eup %5175 }
 0xea4   : > { %1954 = vadd.xlane.f32.xlu2 %v1953_v24  ;;  %5177 = vpow2.f32 %v1940_v62  ;;  %v1959_v0 = vsel %vm1571_vm1, %v6293_v35, 0.0 }
 0xea5   : > { %5179 = vpow2.f32 %v1942_v20 }
 0xea6   : > { %5181 = vpow2.f32 %v1944_v5 }
 0xea9   : > { %v6317_v17 = vpop.permute.xlu1 %2655 }
 0xeaa   : > { %4752 = vmatmul.msk.f32.gmra.mxu2 %vm396_vm0, %v2251_v60  ;;  %v6300_v1 = vpop.eup %5177 }
 0xeab   : > { %v1962_v55 = vsel %vm1571_vm1, %v6300_v1, 0.0  ;;  %v6306_v7 = vpop.eup %5179 }
 0xeac   : > { %1918 = vmax.xlane.f32.xlu1 %v1917_v30  ;;  %v1965_v9 = vsel %vm1571_vm1, %v6306_v7, 0.0  ;;  %v6311_v57 = vpop.eup %5181  ;;  %v4956_v30 = vpop.permute.xlu2 %4955 }
 0xead   : > { %v1968_v43 = vsel %vm1571_vm1, %v6311_v57, 0.0  ;;  %v4957_v38 = vunpack.i.l.bf16 %v4956_v30 }
 0xeb2   : > { %4753 = vmatmul.msk.f32.gmra.mxu2 %vm396_vm0, %v2253_v27  ;;  %v4941_v49 = vpop.permute.xlu0 %4940 }
 0xeb3   : > { %v4942_v56 = vunpack.i.l.bf16 %v4941_v49  ;;  %v4943_v24 = vunpack.i.h.bf16 %v4941_v49 }
 0xeb4   : > { %1960 = vadd.xlane.f32.xlu1 %v1959_v0  ;;  %v4958_v0 = vunpack.i.h.bf16 %v4956_v30 }
 0xeb5   : > { %v1759_v36 = vpop.f32.mrf.mxu1 }
 0xeb6   : > { %4732 = vmatmul.msk.f32.gmra.mxu0 %vm396_vm0, %v1759_v36 }
 0xebc   : > { %1963 = vadd.xlane.f32.xlu1 %v1962_v55 }
 0xebd   : > { %v1762_v26 = vpop.f32.mrf.mxu1 }
 0xebe   : > { %4733 = vmatmul.msk.f32.gmra.mxu0 %vm396_vm0, %v1762_v26 }
 0xec4   : > { %1966 = vadd.xlane.f32.xlu1 %v1965_v9 }
 0xec5   : > { %v1765_v10 = vpop.f32.mrf.mxu1 }
 0xec6   : > { %4734 = vmatmul.msk.f32.gmra.mxu0 %vm396_vm0, %v1765_v10 }
 0xeca   : > { %v2328_v12 = vpop.f32.mrf.mxu2 }
 0xecb   : > { %v6313_v11 = vmul.f32 0.35355338, %v2328_v12 }
 0xecc   : > { %1969 = vadd.xlane.f32.xlu1 %v1968_v43 }
 0xecd   : > { %v2364_v19 = vsel %vm1571_vm1, %v6313_v11, -inf }
 0xece   : > { %2365 = vmax.xlane.f32.xlu2 %v2364_v19 }
 0xed2   : > { %v2331_v21 = vpop.f32.mrf.mxu2 }
 0xed3   : > { %v6321_v23 = vmul.f32 0.35355338, %v2331_v21 }
 0xed4   : > { %v1904_v28 = vpop.xlane.xlu1 %1903 }
 0xed5   : > { %v1925_v41 = vsub.f32 %v6243_v6, %v1904_v28  ;;  %v2367_v29 = vsel %vm1571_vm1, %v6321_v23, -inf  ;;  %v6334_v6 = vmul.f32 0.35355338, %v2325_v4 }
 0xed6   : > { %2368 = vmax.xlane.f32.xlu2 %v2367_v29 }
 0xed7   : > { %v1936_v31 = vmul.f32 1.442695, %v1925_v41  ;;  %v2361_v48 = vsel %vm1571_vm1, %v6334_v6, -inf }
 0xed8   : > { %v6369_v43 = vpop.f32.mrf.mxu0 }
 0xed9   : > { %5183 = vpow2.f32 %v1936_v31 }
 0xeda   : > { %v2334_v37 = vpop.f32.mrf.mxu2 }
 0xedb   : > { %v6326_v39 = vmul.f32 0.35355338, %v2334_v37 }
 0xedd   : > { %v2370_v27 = vsel %vm1571_vm1, %v6326_v39, -inf }
 0xede   : > { %2371 = vmax.xlane.f32.xlu2 %v2370_v27 }
 0xedf   : > { %v6330_v46 = vpop.eup %5183 }
 0xee0   : > { %v1956_v47 = vsel %vm1571_vm1, %v6330_v46, 0.0 }
 0xee1   : > { %1957 = vadd.xlane.f32.xlu0 %v1956_v47 }
 0xee9   : > { %2362 = vmax.xlane.f32.xlu0 %v2361_v48 }
 0xeec   : > { %v2012_v51 = vpop.permute.xlu1 %2011 }
 0xeed   : > { %4708 = vmatpush.msk.msra.mxu3 %vm574_vm5, %v2012_v51 }
 0xeef   : > { %2058 = vmatpush.msra.mxu3 %v4942_v56 }
 0xef1   : > { %2059 = vmatpush.msra.mxu3 %v4943_v24 }
 0xef3   : > { %2060 = vmatpush.msra.mxu3 %v4947_v59 }
 0xef4   : > { %v4951_v60 = vpop.permute.xlu1 %4950 }
 0xef5   : > { %v4952_v61 = vunpack.i.l.bf16 %v4951_v60  ;;  %2061 = vmatpush.msra.mxu3 %v4948_v25  ;;  %v4953_v52 = vunpack.i.h.bf16 %v4951_v60 }
 0xef7   : > { %2062 = vmatpush.msra.mxu3 %v4952_v61 }
 0xef8   : > { %v1768_v62 = vpop.f32.mrf.mxu1 }
 0xef9   : > { %2063 = vmatpush.msra.mxu3 %v4953_v52  ;;  %4735 = vmatmul.msk.f32.gmra.mxu0 %vm396_vm0, %v1768_v62 }
 0xefb   : > { %2064 = vmatpush.msra.mxu3 %v4957_v38 }
 0xefd   : > { %v1952_v36 = vpop.xlane.xlu0 %1951  ;;  %4960 = vrot.lane.b32.xlu0 %v5953_v63, %s7463_s14  ;;  %2065 = vmatpush.msra.mxu3 %v4958_v0 }
 0xefe   : > { %5185 = vrcp.f32 %v1952_v36 }
 0xf01   : > { %4782 = vmatmul.msk.f32.vlgmr.msra.gmra.mxu0 %vm396_vm0, %v6232_v16 }
 0xf04   : > { %v5186_v20 = vpop.eup %5185 }
 0xf05   : > { %v1986_v32 = vmul.f32 %v5186_v20, %v6266_v34  ;;  %4965 = vrot.lane.b32.xlu0 %v5953_v63, %s7464_s18 }
 0xf07   : > { %4709 = vmatmul.msk.f32.vlgmr.msra.gmra.mxu3 %vm1571_vm1, %v1986_v32 }
 0xf09   : > { %4783 = vmatmul.msk.f32.gmra.mxu0 %vm396_vm0, %v6237_v3 }
 0xf11   : > { %4784 = vmatmul.msk.f32.gmra.mxu0 %vm396_vm0, %v6268_v18 }
 0xf15   : > { %v2337_v2 = vpop.f32.mrf.mxu2 }
 0xf16   : > { %v6352_v55 = vmul.f32 0.35355338, %v2337_v2 }
 0xf17   : > { %v1955_v26 = vpop.xlane.xlu2 %1954 }
 0xf18   : > { %5187 = vrcp.f32 %v1955_v26  ;;  %v2373_v16 = vsel %vm1571_vm1, %v6352_v55, -inf }
 0xf19   : > { %2374 = vmax.xlane.f32.xlu2 %v2373_v16  ;;  %4785 = vmatmul.msk.f32.gmra.mxu0 %vm396_vm0, %v6251_v13 }
 0xf1d   : > { %v2340_v63 = vpop.f32.mrf.mxu2 }
 0xf1e   : > { %v5188_v34 = vpop.eup %5187  ;;  %v6358_v5 = vmul.f32 0.35355338, %v2340_v63 }
 0xf1f   : > { %v1919_v3 = vpop.xlane.xlu1 %1918  ;;  %v1987_v4 = vmul.f32 %v5188_v34, %v6281_v54 }
 0xf20   : > { %v1930_v18 = vsub.f32 %v6287_v15, %v1919_v3  ;;  %v2376_v9 = vsel %vm1571_vm1, %v6358_v5, -inf }
 0xf21   : > { %2377 = vmax.xlane.f32.xlu2 %v2376_v9  ;;  %4710 = vmatmul.msk.f32.gmra.mxu3 %vm1571_vm1, %v1987_v4 }
 0xf22   : > { %v1946_v10 = vmul.f32 1.442695, %v1930_v18  ;;  %4786 = vmatmul.msk.f32.gmra.mxu0 %vm396_vm0, %v6247_v8  ;;  %v6381_v8 = vpop.f32.mrf.mxu0 }
 0xf24   : > { %5189 = vpow2.f32 %v1946_v10 }
 0xf25   : > { %v2343_v13 = vpop.f32.mrf.mxu2 }
 0xf26   : > { %v6371_v19 = vmul.f32 0.35355338, %v2343_v13 }
 0xf27   : > { %v1961_v28 = vpop.xlane.xlu1 %1960 }
 0xf28   : > { %v2379_v15 = vsel %vm1571_vm1, %v6371_v19, -inf }
 0xf2a   : > { %v6367_v12 = vpop.eup %5189  ;;  %4787 = vmatmul.msk.f32.gmra.mxu0 %vm396_vm0, %v6279_v53  ;;  %v6387_v53 = vpop.f32.mrf.mxu0 }
 0xf2b   : > { %v1971_v54 = vsel %vm1571_vm1, %v6367_v12, 0.0 }
 0xf2c   : > { %1972 = vadd.xlane.f32.xlu1 %v1971_v54 }
 0xf2f   : > { %2380 = vmax.xlane.f32.xlu0 %v2379_v15  ;;  %v1964_v31 = vpop.xlane.xlu1 %1963 }
 0xf32   : > { %4788 = vmatmul.msk.f32.gmra.mxu0 %vm396_vm0, %v6264_v33  ;;  %v6397_v33 = vpop.f32.mrf.mxu0 }
 0xf37   : > { %v1967_v50 = vpop.xlane.xlu1 %1966 }
 0xf39   : > { %2476 = vrot.lane.b32.xlu2 %v5921_v58, %s7464_s18 }
 0xf3a   : > { %4789 = vmatmul.msk.f32.gmra.mxu0 %vm396_vm0, %v6254_v14  ;;  %v1922_v14 = vpop.xlane.xlu0 %1921  ;;  %v6403_v21 = vpop.f32.mrf.mxu0 }
 0xf3b   : > { %v1931_v37 = vsub.f32 %v6272_v40, %v1922_v14 }
 0xf3d   : > { %v1948_v47 = vmul.f32 1.442695, %v1931_v37 }
 0xf3f   : > { %v1970_v25 = vpop.xlane.xlu1 %1969 }
 0xf41   : > { %4975 = vrot.lane.b32.xlu2 %v5847_v42, %s7464_s18  ;;  %v6424_v60 = vpop.xlane.xlu2 %2365 }
 0xf42   : > { %4790 = vmatmul.msk.f32.gmra.mxu0 %vm396_vm0, %v6317_v17  ;;  %v6405_v17 = vpop.f32.mrf.mxu0 }
 0xf43   : > { %4990 = vrot.lane.b32.xlu0 %v5861_v45, %s7463_s14 }
 0xf45   : > { %2879 = vrot.lane.b32.xlu1 %v5921_v58, %s7463_s14 }
 0xf49   : > { %4980 = vrot.lane.b32.xlu2 %v5855_v44, %s7463_s14  ;;  %v6436_v0 = vpop.xlane.xlu2 %2368 }
 0xf4d   : > { %4970 = vrot.lane.b32.xlu1 %v5847_v42, %s7463_s14  ;;  %v6410_v42 = vpop.f32.mrf.mxu0 }
 0xf51   : > { %v6444_v2 = vpop.xlane.xlu2 %2371 }
 0xf54   : > { %v1958_v41 = vpop.xlane.xlu0 %1957 }
 0xf55   : > { %5191 = vrcp.f32 %v1958_v41 }
 0xf56   : > { %5193 = vrcp.f32 %v1961_v28 }
 0xf57   : > { %5195 = vrcp.f32 %v1964_v31 }
 0xf58   : > { %5197 = vpow2.f32 %v1948_v47 }
 0xf59   : > { %5199 = vrcp.f32 %v1967_v50 }
 0xf5b   : > { %v5192_v29 = vpop.eup %5191 }
 0xf5c   : > { %v1988_v58 = vmul.f32 %v5192_v29, %v6330_v46  ;;  %v5194_v27 = vpop.eup %5193  ;;  %v2363_v49 = vpop.xlane.xlu0 %2362  ;;  %v1451_v46 = vld [vmem:[%s7451_s5 + $0xd8] sm:$0xff] }
 0xf5d   : > { %v1989_v48 = vmul.f32 %v5194_v27, %v6293_v35  ;;  %v2388_v51 = vsub.f32 %v6334_v6, %v2363_v49  ;;  %v5196_v56 = vpop.eup %5195  ;;  %2136 = vmatpush.msra.mxu1 %v1451_v46  ;;  %v6421_v35 = vpop.f32.mrf.mxu0 }
 0xf5e   : > { %4711 = vmatmul.msk.f32.gmra.mxu3 %vm1571_vm1, %v1988_v58  ;;  %v1990_v24 = vmul.f32 %v5196_v56, %v6300_v1  ;;  %v6419_v59 = vpop.eup %5197 }
 0xf5f   : > { %v2397_v40 = vmul.f32 1.442695, %v2388_v51  ;;  %v5200_v6 = vpop.eup %5199  ;;  %v1974_v61 = vsel %vm1596_vm9, %v6419_v59, 0.0 }
 0xf60   : > { %v1991_v30 = vmul.f32 %v5200_v6, %v6306_v7 }
 0xf61   : > { %5201 = vpow2.f32 %v2397_v40 }
 0xf62   : > { %5203 = vrcp.f32 %v1970_v25 }
 0xf66   : > { %4712 = vmatmul.msk.f32.gmra.mxu3 %vm1571_vm1, %v1989_v48 }
 0xf67   : > { %v6429_v52 = vpop.eup %5201 }
 0xf68   : > { %v5204_v62 = vpop.eup %5203  ;;  %v2415_v38 = vsel %vm1571_vm1, %v6429_v52, 0.0 }
 0xf69   : > { %v1992_v36 = vmul.f32 %v5204_v62, %v6311_v57 }
 0xf6e   : > { %4713 = vmatmul.msk.f32.gmra.mxu3 %vm1571_vm1, %v1990_v24 }
 0xf6f   : > { %v4961_v18 = vpop.permute.xlu0 %4960 }
 0xf72   : > { %1975 = vadd.xlane.f32.xlu2 %v1974_v61 }
 0xf76   : > { %4714 = vmatmul.msk.f32.gmra.mxu3 %vm1571_vm1, %v1991_v30  ;;  %v6432_v1 = vpop.f32.mrf.mxu0 }
 0xf77   : > { %v4966_v14 = vpop.permute.xlu0 %4965 }
 0xf78   : > { %v4967_v41 = vunpack.i.l.bf16 %v4966_v14  ;;  %v4968_v29 = vunpack.i.h.bf16 %v4966_v14 }
 0xf7a   : > { %2416 = vadd.xlane.f32.xlu2 %v2415_v38  ;;  %v4963_v38 = vunpack.i.h.bf16 %v4961_v18 }
 0xf7e   : > { %4715 = vmatmul.msk.f32.gmra.mxu3 %vm1571_vm1, %v1992_v36  ;;  %v2728_v20 = vpop.f32.mrf.mxu0 }
 0xf7f   : > { %v6440_v32 = vmul.f32 0.35355338, %v2728_v20  ;;  %v2346_v20 = vpop.f32.mrf.mxu2 }
 0xf81   : > { %v2764_v7 = vsel %vm1571_vm1, %v6440_v32, -inf }
 0xf82   : > { %2765 = vmax.xlane.f32.xlu1 %v2764_v7 }
 0xf86   : > { %v2731_v26 = vpop.f32.mrf.mxu0 }
 0xf87   : > { %v6446_v16 = vmul.f32 0.35355338, %v2731_v26 }
 0xf89   : > { %v2767_v63 = vsel %vm1571_vm1, %v6446_v16, -inf }
 0xf8a   : > { %v2067_v34 = vpop.f32.mrf.mxu3  ;;  %2768 = vmax.xlane.f32.xlu0 %v2767_v63  ;;  %v6488_v63 = vmul.f32 0.35355338, %v2346_v20 }
 0xf8b   : > { %4718 = vmatmul.msk.f32.vlgmr.msra.gmra.mxu1 %vm396_vm0, %v2067_v34 }
 0xf8c   : > { %v6451_v57 = vpop.xlane.xlu2 %2374 }
 0xf8e   : > { %v2734_v3 = vpop.f32.mrf.mxu0 }
 0xf8f   : > { %v6453_v4 = vmul.f32 0.35355338, %v2734_v3 }
 0xf91   : > { %v2770_v9 = vsel %vm1571_vm1, %v6453_v4, -inf }
 0xf92   : > { %2771 = vmax.xlane.f32.xlu0 %v2770_v9 }
 0xf94   : > { %v6457_v10 = vpop.xlane.xlu2 %2377 }
 0xf96   : > { %v2737_v13 = vpop.f32.mrf.mxu0 }
 0xf97   : > { %v6459_v54 = vmul.f32 0.35355338, %v2737_v13 }
 0xf99   : > { %v2773_v15 = vsel %vm1571_vm1, %v6459_v54, -inf }
 0xf9a   : > { %2774 = vmax.xlane.f32.xlu0 %v2773_v15 }
 0xf9b   : > { %4985 = vrot.lane.b32.xlu1 %v5855_v44, %s7464_s18 }
 0xf9c   : > { %v2477_v28 = vpop.permute.xlu2 %2476 }
 0xf9d   : > { %4754 = vmatpush.msk.msrb.mxu3 %vm574_vm5, %v2477_v28 }
 0xf9f   : > { %v2740_v31 = vpop.f32.mrf.mxu0  ;;  %v1973_v58 = vpop.xlane.xlu1 %1972  ;;  %2523 = vmatpush.msrb.mxu3 %v4967_v41 }
 0xfa0   : > { %v6466_v37 = vmul.f32 0.35355338, %v2740_v31  ;;  %5205 = vrcp.f32 %v1973_v58  ;;  %v2389_v31 = vsub.f32 %v6313_v11, %v6424_v60 }
 0xfa1   : > { %2524 = vmatpush.msrb.mxu3 %v4968_v29 }
 0xfa2   : > { %v2776_v27 = vsel %vm1571_vm1, %v6466_v37, -inf  ;;  %v6486_v7 = vpop.xlane.xlu0 %2380 }
 0xfa3   : > { %2777 = vmax.xlane.f32.xlu0 %v2776_v27  ;;  %v2399_v27 = vmul.f32 1.442695, %v2389_v31 }
 0xfa4   : > { %v4976_v47 = vpop.permute.xlu2 %4975  ;;  %v2070_v48 = vpop.f32.mrf.mxu3 }
 0xfa5   : > { %v4977_v49 = vunpack.i.l.bf16 %v4976_v47  ;;  %4719 = vmatmul.msk.f32.gmra.mxu1 %vm396_vm0, %v2070_v48  ;;  %v4978_v56 = vunpack.i.h.bf16 %v4976_v47  ;;  %v2392_v48 = vsub.f32 %v6352_v55, %v6451_v57 }
 0xfa6   : > { %v5206_v44 = vpop.eup %5205 }
 0xfa7   : > { %v2743_v50 = vpop.f32.mrf.mxu0  ;;  %2525 = vmatpush.msrb.mxu3 %v4977_v49  ;;  %v1993_v51 = vmul.f32 %v5206_v44, %v6367_v12  ;;  %v4962_v12 = vunpack.i.l.bf16 %v4961_v18  ;;  %v2382_v18 = vsel %vm1571_vm1, %v6488_v63, -inf  ;;  %v2405_v44 = vmul.f32 1.442695, %v2392_v48 }
 0xfa8   : > { %v6472_v46 = vmul.f32 0.35355338, %v2743_v50 }
 0xfa9   : > { %4716 = vmatmul.msk.f32.gmra.mxu3 %vm1571_vm1, %v1993_v51 }
 0xfaa   : > { %2526 = vmatpush.msrb.mxu3 %v4978_v56  ;;  %v2779_v40 = vsel %vm1571_vm1, %v6472_v46, -inf }
 0xfab   : > { %2780 = vmax.xlane.f32.xlu0 %v2779_v40 }
 0xfac   : > { %v4981_v3 = vpop.permute.xlu2 %4980 }
 0xfad   : > { %v4982_v13 = vunpack.i.l.bf16 %v4981_v3  ;;  %v4983_v14 = vunpack.i.h.bf16 %v4981_v3 }
 0xfaf   : > { %v2746_v24 = vpop.f32.mrf.mxu0 }
 0xfb0   : > { %v6477_v25 = vmul.f32 0.35355338, %v2746_v24 }
 0xfb2   : > { %v2782_v6 = vsel %vm1571_vm1, %v6477_v25, -inf }
 0xfb3   : > { %2783 = vmax.xlane.f32.xlu2 %v2782_v6 }
 0xfb5   : > { %v4991_v15 = vpop.permute.xlu0 %4990 }
 0xfb6   : > { %v4992_v28 = vunpack.i.l.bf16 %v4991_v15  ;;  %v4993_v41 = vunpack.i.h.bf16 %v4991_v15 }
 0xfb7   : > { %v2749_v61 = vpop.f32.mrf.mxu0  ;;  %v2880_v30 = vpop.permute.xlu1 %2879 }
 0xfb8   : > { %v6481_v62 = vmul.f32 0.35355338, %v2749_v61  ;;  %4791 = vmatpush.msk.msrb.mxu2 %vm574_vm5, %v2880_v30 }
 0xfba   : > { %2926 = vmatpush.msrb.mxu2 %v4962_v12  ;;  %v2785_v36 = vsel %vm1571_vm1, %v6481_v62, -inf }
 0xfbb   : > { %2786 = vmax.xlane.f32.xlu0 %v2785_v36 }
 0xfbc   : > { %2927 = vmatpush.msrb.mxu2 %v4963_v38 }
 0xfbf   : > { %v4971_v26 = vpop.permute.xlu1 %4970  ;;  %v2752_v38 = vpop.f32.mrf.mxu0 }
 0xfc0   : > { %v4972_v34 = vunpack.i.l.bf16 %v4971_v26  ;;  %v4973_v9 = vunpack.i.h.bf16 %v4971_v26  ;;  %v6519_v36 = vmul.f32 0.35355338, %v2752_v38 }
 0xfc2   : > { %2928 = vmatpush.msrb.mxu2 %v4972_v34 }
 0xfc4   : > { %2929 = vmatpush.msrb.mxu2 %v4973_v9 }
 0xfc5   : > { %2383 = vmax.xlane.f32.xlu1 %v2382_v18  ;;  %v2349_v18 = vpop.f32.mrf.mxu2 }
 0xfc6   : > { %2930 = vmatpush.msrb.mxu2 %v4982_v13  ;;  %v2788_v13 = vsel %vm1596_vm9, %v6519_v36, -inf }
 0xfc8   : > { %2931 = vmatpush.msrb.mxu2 %v4983_v14  ;;  %v6530_v14 = vmul.f32 0.35355338, %v2349_v18 }
 0xfca   : > { %2932 = vmatpush.msrb.mxu2 %v4992_v28 }
 0xfcb   : > { %4995 = vrot.lane.b32.xlu2 %v5861_v45, %s7464_s18 }
 0xfcc   : > { %2933 = vmatpush.msrb.mxu2 %v4993_v41 }
 0xfe1   : > { %v2073_v29 = vpop.f32.mrf.mxu3 }
 0xfe2   : > { %4720 = vmatmul.msk.f32.gmra.mxu1 %vm396_vm0, %v2073_v29 }
 0xfe5   : > { %v1976_v58 = vpop.xlane.xlu2 %1975 }
 0xfe6   : > { %5207 = vrcp.f32 %v1976_v58 }
 0xfe7   : > { %5209 = vpow2.f32 %v2399_v27  ;;  %v2385_v27 = vsel %vm1596_vm9, %v6530_v14, -inf }
 0xfe8   : > { %5211 = vpow2.f32 %v2405_v44 }
 0xfe9   : > { %v2076_v47 = vpop.f32.mrf.mxu3 }
 0xfea   : > { %4721 = vmatmul.msk.f32.gmra.mxu1 %vm396_vm0, %v2076_v47 }
 0xfec   : > { %v5208_v49 = vpop.eup %5207 }
 0xfed   : > { %v1994_v45 = vmul.f32 %v5208_v49, %v6419_v59  ;;  %v6502_v50 = vpop.eup %5209 }
 0xfee   : > { %v2418_v60 = vsel %vm1571_vm1, %v6502_v50, 0.0  ;;  %v6508_v57 = vpop.eup %5211 }
 0xfef   : > { %4717 = vmatmul.msk.f32.gmra.mxu3 %vm1571_vm1, %v1994_v45  ;;  %v2427_v40 = vsel %vm1571_vm1, %v6508_v57, 0.0 }
 0xff1   : > { %v2079_v11 = vpop.f32.mrf.mxu3 }
 0xff2   : > { %4722 = vmatmul.msk.f32.gmra.mxu1 %vm396_vm0, %v2079_v11 }
 0xff4   : > { %2419 = vadd.xlane.f32.xlu2 %v2418_v60 }
 0xff5   : > { %v2766_v51 = vpop.xlane.xlu1 %2765 }
 0xff6   : > { %v2791_v55 = vsub.f32 %v6440_v32, %v2766_v51 }
 0xff8   : > { %v2800_v56 = vmul.f32 1.442695, %v2791_v55 }
 0xff9   : > { %v2082_v59 = vpop.f32.mrf.mxu3 }
 0xffa   : > { %5213 = vpow2.f32 %v2800_v56  ;;  %4723 = vmatmul.msk.f32.gmra.mxu1 %vm396_vm0, %v2082_v59 }
 0xffc   : > { %2428 = vadd.xlane.f32.xlu2 %v2427_v40 }
 0xffd   : > { %v2769_v24 = vpop.xlane.xlu0 %2768 }
 0xffe   : > { %v2792_v6 = vsub.f32 %v6446_v16, %v2769_v24  ;;  %v2390_v16 = vsub.f32 %v6321_v23, %v6436_v0  ;;  %v2391_v0 = vsub.f32 %v6326_v39, %v6444_v2  ;;  %v2393_v2 = vsub.f32 %v6358_v5, %v6457_v10 }
 0xfff   : > { %v2394_v24 = vsub.f32 %v6371_v19, %v6486_v7 }
0x1000   : > { %v6514_v61 = vpop.eup %5213  ;;  %v2802_v30 = vmul.f32 1.442695, %v2792_v6  ;;  %v2401_v15 = vmul.f32 1.442695, %v2390_v16  ;;  %v2407_v51 = vmul.f32 1.442695, %v2393_v2 }
0x1001   : > { %v2085_v12 = vpop.f32.mrf.mxu3  ;;  %v2818_v32 = vsel %vm1571_vm1, %v6514_v61, 0.0 }
0x1002   : > { %5215 = vpow2.f32 %v2802_v30  ;;  %4724 = vmatmul.msk.f32.gmra.mxu1 %vm396_vm0, %v2085_v12  ;;  %2819 = vadd.xlane.f32.xlu1 %v2818_v32  ;;  %v2409_v30 = vmul.f32 1.442695, %v2394_v24 }
0x1005   : > { %v2772_v20 = vpop.xlane.xlu0 %2771 }
0x1006   : > { %v2793_v26 = vsub.f32 %v6453_v4, %v2772_v20 }
0x1008   : > { %v6522_v34 = vpop.eup %5215  ;;  %v2804_v3 = vmul.f32 1.442695, %v2793_v26 }
0x1009   : > { %v2821_v9 = vsel %vm1571_vm1, %v6522_v34, 0.0 }
0x100a   : > { %5217 = vpow2.f32 %v2804_v3  ;;  %2822 = vadd.xlane.f32.xlu0 %v2821_v9  ;;  %2789 = vmax.xlane.f32.xlu1 %v2788_v13 }
0x100b   : > { %5219 = vpow2.f32 %v2401_v15 }
0x100d   : > { %v4986_v4 = vpop.permute.xlu1 %4985  ;;  %v2775_v28 = vpop.xlane.xlu0 %2774 }
0x100e   : > { %v4987_v41 = vunpack.i.l.bf16 %v4986_v4  ;;  %v2794_v29 = vsub.f32 %v6459_v54, %v2775_v28  ;;  %v4988_v31 = vunpack.i.h.bf16 %v4986_v4  ;;  %v2403_v54 = vmul.f32 1.442695, %v2391_v0 }
0x1010   : > { %v6533_v23 = vpop.eup %5217  ;;  %v2806_v58 = vmul.f32 1.442695, %v2794_v29  ;;  %2527 = vmatpush.msrb.mxu3 %v4987_v41 }
0x1011   : > { %v2824_v47 = vsel %vm1571_vm1, %v6533_v23, 0.0  ;;  %v6541_v48 = vpop.eup %5219 }
0x1012   : > { %5221 = vpow2.f32 %v2806_v58  ;;  %2528 = vmatpush.msrb.mxu3 %v4988_v31  ;;  %2386 = vmax.xlane.f32.xlu0 %v2385_v27  ;;  %v2421_v11 = vsel %vm1571_vm1, %v6541_v48, 0.0 }
0x1013   : > { %2825 = vadd.xlane.f32.xlu1 %v2824_v47  ;;  %5223 = vpow2.f32 %v2403_v54 }
0x1016   : > { %v2778_v49 = vpop.xlane.xlu0 %2777 }
0x1017   : > { %v2795_v45 = vsub.f32 %v6466_v37, %v2778_v49  ;;  %v2417_v37 = vpop.xlane.xlu2 %2416 }
0x1018   : > { %v6544_v39 = vpop.eup %5221 }
0x1019   : > { %v2808_v44 = vmul.f32 1.442695, %v2795_v45  ;;  %v2827_v60 = vsel %vm1571_vm1, %v6544_v39, 0.0  ;;  %v6552_v55 = vpop.eup %5223 }
0x101a   : > { %2422 = vadd.xlane.f32.xlu0 %v2421_v11  ;;  %v2424_v10 = vsel %vm1571_vm1, %v6552_v55, 0.0 }
0x101b   : > { %5225 = vpow2.f32 %v2808_v44  ;;  %2828 = vadd.xlane.f32.xlu1 %v2827_v60 }
0x101c   : > { %5227 = vpow2.f32 %v2407_v51 }
0x101e   : > { %v2781_v56 = vpop.xlane.xlu0 %2780 }
0x101f   : > { %v2796_v59 = vsub.f32 %v6472_v46, %v2781_v56 }
0x1021   : > { %v6555_v40 = vpop.eup %5225  ;;  %v2810_v5 = vmul.f32 1.442695, %v2796_v59 }
0x1022   : > { %2425 = vadd.xlane.f32.xlu0 %v2424_v10  ;;  %v2830_v6 = vsel %vm1571_vm1, %v6555_v40, 0.0  ;;  %v6563_v32 = vpop.eup %5227 }
0x1023   : > { %5229 = vpow2.f32 %v2810_v5  ;;  %2831 = vadd.xlane.f32.xlu1 %v2830_v6  ;;  %v2430_v7 = vsel %vm1571_vm1, %v6563_v32, 0.0 }
0x1024   : > { %5231 = vrcp.f32 %v2417_v37 }
0x1025   : > { %5233 = vpow2.f32 %v2409_v30 }
0x1026   : > { %v2784_v12 = vpop.xlane.xlu2 %2783 }
0x1027   : > { %v2797_v46 = vsub.f32 %v6477_v25, %v2784_v12 }
0x1029   : > { %v6566_v38 = vpop.eup %5229  ;;  %v2812_v20 = vmul.f32 1.442695, %v2797_v46 }
0x102a   : > { %v2833_v19 = vsel %vm1571_vm1, %v6566_v38, 0.0  ;;  %v5232_v25 = vpop.eup %5231 }
0x102b   : > { %5235 = vpow2.f32 %v2812_v20  ;;  %2834 = vadd.xlane.f32.xlu0 %v2833_v19  ;;  %2431 = vadd.xlane.f32.xlu1 %v2430_v7  ;;  %v6574_v18 = vpop.eup %5233  ;;  %v2451_v41 = vmul.f32 %v5232_v25, %v6429_v52 }
0x102c   : > { %v2088_v26 = vpop.f32.mrf.mxu3  ;;  %v2433_v0 = vsel %vm1571_vm1, %v6574_v18, 0.0 }
0x102d   : > { %4725 = vmatmul.msk.f32.gmra.mxu1 %vm396_vm0, %v2088_v26 }
0x102e   : > { %v4996_v16 = vpop.permute.xlu2 %4995  ;;  %v2787_v3 = vpop.xlane.xlu0 %2786 }
0x102f   : > { %v4997_v9 = vunpack.i.l.bf16 %v4996_v16  ;;  %v2798_v13 = vsub.f32 %v6481_v62, %v2787_v3  ;;  %v4998_v4 = vunpack.i.h.bf16 %v4996_v16 }
0x1031   : > { %v6576_v15 = vpop.eup %5235  ;;  %v2814_v28 = vmul.f32 1.442695, %v2798_v13  ;;  %2529 = vmatpush.msrb.mxu3 %v4997_v9 }
0x1032   : > { %v2836_v29 = vsel %vm1571_vm1, %v6576_v15, 0.0 }
0x1033   : > { %5237 = vpow2.f32 %v2814_v28  ;;  %2837 = vadd.xlane.f32.xlu2 %v2836_v29  ;;  %2530 = vmatpush.msrb.mxu3 %v4998_v4 }
0x1034   : > { %2434 = vadd.xlane.f32.xlu0 %v2433_v0  ;;  %4755 = vmatmul.msk.f32.vlgmr.msrb.gmra.mxu3 %vm1571_vm1, %v2451_v41 }
0x1038   : > { %v2384_v62 = vpop.xlane.xlu1 %2383 }
0x1039   : > { %v6584_v31 = vpop.eup %5237  ;;  %v2395_v58 = vsub.f32 %v6488_v63, %v2384_v62 }
0x103a   : > { %v2839_v52 = vsel %vm1571_vm1, %v6584_v31, 0.0 }
0x103b   : > { %v2411_v27 = vmul.f32 1.442695, %v2395_v58  ;;  %2840 = vadd.xlane.f32.xlu1 %v2839_v52 }
0x103d   : > { %5239 = vpow2.f32 %v2411_v27 }
0x1043   : > { %v6589_v47 = vpop.eup %5239 }
0x1044   : > { %v2436_v54 = vsel %vm1571_vm1, %v6589_v47, 0.0 }
0x1045   : > { %2437 = vadd.xlane.f32.xlu2 %v2436_v54 }
0x1067   : > { %v2420_v49 = vpop.xlane.xlu2 %2419 }
0x1068   : > { %5241 = vrcp.f32 %v2420_v49 }
0x106e   : > { %v5242_v45 = vpop.eup %5241 }
0x106f   : > { %v2452_v2 = vmul.f32 %v5242_v45, %v6502_v50  ;;  %v2429_v13 = vpop.xlane.xlu2 %2428 }
0x1071   : > { %4756 = vmatmul.msk.f32.gmra.mxu3 %vm1571_vm1, %v2452_v2 }
0x1072   : > { %v2091_v63 = vpop.f32.mrf.mxu3 }
0x1073   : > { %4726 = vmatmul.msk.f32.gmra.mxu1 %vm396_vm0, %v2091_v63 }
0x1075   : > { %v2820_v44 = vpop.xlane.xlu1 %2819 }
0x1076   : > { %5243 = vrcp.f32 %v2820_v44 }
0x107c   : > { %v5244_v11 = vpop.eup %5243 }
0x107d   : > { %v2854_v60 = vmul.f32 %v5244_v11, %v6514_v61  ;;  %v2823_v51 = vpop.xlane.xlu0 %2822  ;;  %v2790_v37 = vpop.xlane.xlu1 %2789 }
0x107e   : > { %5245 = vrcp.f32 %v2823_v51  ;;  %v2799_v56 = vsub.f32 %v6519_v36, %v2790_v37 }
0x107f   : > { %4792 = vmatmul.msk.f32.vlgmr.msrb.gmra.mxu2 %vm1571_vm1, %v2854_v60 }
0x1080   : > { %v2816_v59 = vmul.f32 1.442695, %v2799_v56 }
0x1082   : > { %5247 = vpow2.f32 %v2816_v59 }
0x1084   : > { %v5246_v50 = vpop.eup %5245 }
0x1085   : > { %v2387_v5 = vpop.xlane.xlu0 %2386  ;;  %v2855_v10 = vmul.f32 %v5246_v50, %v6522_v34 }
0x1086   : > { %v2396_v24 = vsub.f32 %v6530_v14, %v2387_v5  ;;  %v2826_v6 = vpop.xlane.xlu1 %2825 }
0x1087   : > { %5249 = vrcp.f32 %v2826_v6  ;;  %4793 = vmatmul.msk.f32.gmra.mxu2 %vm1571_vm1, %v2855_v10 }
0x1088   : > { %v6602_v61 = vpop.eup %5247  ;;  %v2413_v30 = vmul.f32 1.442695, %v2396_v24 }
0x1089   : > { %v2842_v36 = vsel %vm1596_vm9, %v6602_v61, 0.0 }
0x108a   : > { %5251 = vpow2.f32 %v2413_v30  ;;  %2843 = vadd.xlane.f32.xlu0 %v2842_v36 }
0x108d   : > { %v5250_v12 = vpop.eup %5249  ;;  %v2423_v46 = vpop.xlane.xlu0 %2422 }
0x108e   : > { %5253 = vrcp.f32 %v2423_v46  ;;  %v2829_v20 = vpop.xlane.xlu1 %2828  ;;  %v2856_v34 = vmul.f32 %v5250_v12, %v6533_v23  ;;  %v1452_v23 = vld [vmem:[%s7451_s5 + $0xe0] sm:$0xff] }
0x108f   : > { %5255 = vrcp.f32 %v2829_v20  ;;  %2601 = vmatpush.msrb.mxu1 %v1452_v23 }
0x1090   : > { %v6607_v14 = vpop.eup %5251  ;;  %4794 = vmatmul.msk.f32.gmra.mxu2 %vm1571_vm1, %v2856_v34 }
0x1091   : > { %v2439_v19 = vsel %vm1596_vm9, %v6607_v14, 0.0 }
0x1092   : > { %2440 = vadd.xlane.f32.xlu1 %v2439_v19 }
0x1094   : > { %v5254_v7 = vpop.eup %5253 }
0x1095   : > { %v5256_v26 = vpop.eup %5255  ;;  %v2426_v16 = vpop.xlane.xlu0 %2425  ;;  %v2453_v3 = vmul.f32 %v5254_v7, %v6541_v48 }
0x1096   : > { %5257 = vrcp.f32 %v2426_v16  ;;  %v2832_v25 = vpop.xlane.xlu1 %2831  ;;  %v2857_v9 = vmul.f32 %v5256_v26, %v6544_v39 }
0x1097   : > { %5259 = vrcp.f32 %v2832_v25  ;;  %4757 = vmatmul.msk.f32.gmra.mxu3 %vm1571_vm1, %v2453_v3 }
0x1098   : > { %4795 = vmatmul.msk.f32.gmra.mxu2 %vm1571_vm1, %v2857_v9  ;;  %5261 = vrcp.f32 %v2429_v13 }
0x109c   : > { %v5258_v4 = vpop.eup %5257 }
0x109d   : > { %v5260_v28 = vpop.eup %5259  ;;  %v2454_v48 = vmul.f32 %v5258_v4, %v6552_v55 }
0x109e   : > { %v2835_v41 = vpop.xlane.xlu0 %2834  ;;  %v2858_v29 = vmul.f32 %v5260_v28, %v6555_v40  ;;  %v2432_v39 = vpop.xlane.xlu1 %2431 }
0x109f   : > { %5263 = vrcp.f32 %v2835_v41  ;;  %4758 = vmatmul.msk.f32.gmra.mxu3 %vm1571_vm1, %v2454_v48  ;;  %v5262_v0 = vpop.eup %5261 }
0x10a0   : > { %4796 = vmatmul.msk.f32.gmra.mxu2 %vm1571_vm1, %v2858_v29  ;;  %5265 = vrcp.f32 %v2432_v39  ;;  %v2455_v58 = vmul.f32 %v5262_v0, %v6508_v57 }
0x10a5   : > { %v5264_v62 = vpop.eup %5263 }
0x10a6   : > { %v2838_v52 = vpop.xlane.xlu2 %2837  ;;  %v2859_v27 = vmul.f32 %v5264_v62, %v6566_v38  ;;  %v5266_v40 = vpop.eup %5265 }
0x10a7   : > { %5267 = vrcp.f32 %v2838_v52  ;;  %4759 = vmatmul.msk.f32.gmra.mxu3 %vm1571_vm1, %v2455_v58  ;;  %v2435_v55 = vpop.xlane.xlu0 %2434  ;;  %v2456_v49 = vmul.f32 %v5266_v40, %v6563_v32  ;;  %v6672_v58 = vld [vmem:[%s7451_s5 + $0xf0] ss:$0 sm:$0xff] }
0x10a8   : > { %4797 = vmatmul.msk.f32.gmra.mxu2 %vm1571_vm1, %v2859_v27  ;;  %5269 = vrcp.f32 %v2435_v55 }
0x10ad   : > { %v5268_v54 = vpop.eup %5267 }
0x10ae   : > { %v2841_v45 = vpop.xlane.xlu1 %2840  ;;  %v2860_v2 = vmul.f32 %v5268_v54, %v6576_v15  ;;  %v5270_v57 = vpop.eup %5269 }
0x10af   : > { %5271 = vrcp.f32 %v2841_v45  ;;  %4760 = vmatmul.msk.f32.gmra.mxu3 %vm1571_vm1, %v2456_v49  ;;  %v2457_v63 = vmul.f32 %v5270_v57, %v6574_v18  ;;  %v1453_v18 = vld [vmem:[%s7451_s5 + $0xe8] sm:$0xff]  ;;  %v5335_v49 = vld [vmem:[#allocation3] sm:$0xff] }
0x10b0   : > { %4798 = vmatmul.msk.f32.gmra.mxu2 %vm1571_vm1, %v2860_v2  ;;  %3004 = vmatpush.msra.mxu3 %v1453_v18 }
0x10b5   : > { %v5272_v38 = vpop.eup %5271 }
0x10b6   : > { %v2861_v44 = vmul.f32 %v5272_v38, %v6584_v31 }
0x10b7   : > { %v2532_v11 = vpop.f32.mrf.mxu3  ;;  %4761 = vmatmul.msk.f32.gmra.mxu3 %vm1571_vm1, %v2457_v63 }
0x10b8   : > { %4764 = vmatmul.msk.f32.vlgmr.msrb.gmra.mxu1 %vm396_vm0, %v2532_v11  ;;  %4799 = vmatmul.msk.f32.gmra.mxu2 %vm1571_vm1, %v2861_v44  ;;  %v2438_v32 = vpop.xlane.xlu2 %2437  ;;  %v5336_v11 = vld [vmem:[#allocation3 + $0x8] sm:$0xff] }
0x10b9   : > { %5273 = vrcp.f32 %v2438_v32 }
0x10bf   : > { %v5274_v15 = vpop.eup %5273 }
0x10c0   : > { %v2458_v60 = vmul.f32 %v5274_v15, %v6589_v47 }
0x10c2   : > { %4762 = vmatmul.msk.f32.gmra.mxu3 %vm1571_vm1, %v2458_v60 }
0x10f4   : > { %v2535_v31 = vpop.f32.mrf.mxu3 }
0x10f5   : > { %4765 = vmatmul.msk.f32.gmra.mxu1 %vm396_vm0, %v2535_v31 }
0x10fd   : > { %v2844_v51 = vpop.xlane.xlu0 %2843 }
0x10fe   : > { %5275 = vrcp.f32 %v2844_v51 }
0x1102   : > { %v2935_v47 = vpop.f32.mrf.mxu2 }
0x1104   : > { %v5276_v37 = vpop.eup %5275 }
0x1105   : > { %v2441_v56 = vpop.xlane.xlu1 %2440  ;;  %v2862_v59 = vmul.f32 %v5276_v37, %v6602_v61 }
0x1106   : > { %5277 = vrcp.f32 %v2441_v56  ;;  %v5337_v56 = vld [vmem:[#allocation3 + $0x10] sm:$0xff] }
0x1107   : > { %4800 = vmatmul.msk.f32.gmra.mxu2 %vm1571_vm1, %v2862_v59 }
0x110a   : > { %v2938_v10 = vpop.f32.mrf.mxu2 }
0x110c   : > { %v5278_v50 = vpop.eup %5277 }
0x110d   : > { %v2459_v5 = vmul.f32 %v5278_v50, %v6607_v14  ;;  %v2138_v14 = vpop.f32.mrf.mxu1 }
0x110e   : > { %v2210_v0 = vadd.f32 %v6369_v43, %v2138_v14 }
0x110f   : > { %4763 = vmatmul.msk.f32.gmra.mxu3 %vm1571_vm1, %v2459_v5 }
0x1113   : > { %v2941_v6 = vpop.f32.mrf.mxu2 }
0x1115   : > { %v2141_v26 = vpop.f32.mrf.mxu1 }
0x1116   : > { %v2213_v54 = vadd.f32 %v6381_v8, %v2141_v26 }
0x1117   : > { %4801 = vmatmul.msk.f32.vlgmr.msra.gmra.mxu3 %vm396_vm0, %v2935_v47 }
0x111a   : > { %v2538_v24 = vpop.f32.mrf.mxu3 }
0x111b   : > { %4766 = vmatmul.msk.f32.gmra.mxu1 %vm396_vm0, %v2538_v24  ;;  %v2944_v61 = vpop.f32.mrf.mxu2 }
0x111d   : > { %v2144_v16 = vpop.f32.mrf.mxu1 }
0x111e   : > { %v2216_v44 = vadd.f32 %v6387_v53, %v2144_v16 }
0x111f   : > { %4802 = vmatmul.msk.f32.gmra.mxu3 %vm396_vm0, %v2938_v10 }
0x1122   : > { %v2541_v30 = vpop.f32.mrf.mxu3 }
0x1123   : > { %4767 = vmatmul.msk.f32.gmra.mxu1 %vm396_vm0, %v2541_v30  ;;  %v2947_v12 = vpop.f32.mrf.mxu2  ;;  %v5338_v30 = vld [vmem:[#allocation3 + $0x18] sm:$0xff] }
0x1125   : > { %v2147_v25 = vpop.f32.mrf.mxu1 }
0x1126   : > { %v2219_v37 = vadd.f32 %v6397_v33, %v2147_v25 }
0x1127   : > { %4803 = vmatmul.msk.f32.gmra.mxu3 %vm396_vm0, %v2941_v6 }
0x112a   : > { %v2544_v36 = vpop.f32.mrf.mxu3 }
0x112b   : > { %4768 = vmatmul.msk.f32.gmra.mxu1 %vm396_vm0, %v2544_v36  ;;  %v2950_v20 = vpop.f32.mrf.mxu2 }
0x112d   : > { %v2150_v9 = vpop.f32.mrf.mxu1 }
0x112e   : > { %v2222_v6 = vadd.f32 %v6403_v21, %v2150_v9 }
0x112f   : > { %4804 = vmatmul.msk.f32.gmra.mxu3 %vm396_vm0, %v2944_v61 }
0x1132   : > { %v2547_v46 = vpop.f32.mrf.mxu3 }
0x1133   : > { %4769 = vmatmul.msk.f32.gmra.mxu1 %vm396_vm0, %v2547_v46  ;;  %v2953_v19 = vpop.f32.mrf.mxu2 }
0x1135   : > { %v2153_v23 = vpop.f32.mrf.mxu1 }
0x1136   : > { %v2225_v14 = vadd.f32 %v6405_v17, %v2153_v23 }
0x1137   : > { %4805 = vmatmul.msk.f32.gmra.mxu3 %vm396_vm0, %v2947_v12 }
0x113a   : > { %v2550_v34 = vpop.f32.mrf.mxu3 }
0x113b   : > { %4770 = vmatmul.msk.f32.gmra.mxu1 %vm396_vm0, %v2550_v34  ;;  %v2956_v3 = vpop.f32.mrf.mxu2 }
0x113d   : > { %v6660_v13 = vpop.f32.mrf.mxu1 }
0x113f   : > { %4806 = vmatmul.msk.f32.gmra.mxu3 %vm396_vm0, %v2950_v20 }
0x1145   : > { %v2553_v7 = vpop.f32.mrf.mxu3  ;;  %v6662_v4 = vpop.f32.mrf.mxu1 }
0x1146   : > { %4771 = vmatmul.msk.f32.gmra.mxu1 %vm396_vm0, %v2553_v7 }
0x1147   : > { %4807 = vmatmul.msk.f32.gmra.mxu3 %vm396_vm0, %v2953_v19  ;;  %v5339_v19 = vld [vmem:[#allocation3 + $0x20] sm:$0xff] }
0x114d   : > { %v6664_v28 = vpop.f32.mrf.mxu1 }
0x114f   : > { %4808 = vmatmul.msk.f32.gmra.mxu3 %vm396_vm0, %v2956_v3 }
0x1155   : > { %v2603_v41 = vpop.f32.mrf.mxu1 }
0x1156   : > { %v2630_v62 = vadd.f32 %v2603_v41, %v2210_v0  ;;  %v5340_v41 = vld [vmem:[#allocation3 + $0x28] sm:$0xff] }
0x1172   : > { %v2606_v39 = vpop.f32.mrf.mxu1 }
0x1173   : > { %v2631_v2 = vadd.f32 %v2606_v39, %v2213_v54 }
0x118a   : > { %v2959_v48 = vpop.f32.mrf.mxu2 }
0x118b   : > { %4809 = vmatmul.msk.f32.gmra.mxu3 %vm396_vm0, %v2959_v48  ;;  %v2228_v48 = vadd.f32 %v6410_v42, %v6660_v13  ;;  %v2231_v13 = vadd.f32 %v6421_v35, %v6662_v4 }
0x1192   : > { %v2556_v29 = vpop.f32.mrf.mxu3 }
0x1193   : > { %4772 = vmatmul.msk.f32.gmra.mxu1 %vm396_vm0, %v2556_v29 }
0x1198   : > { %v2609_v40 = vpop.f32.mrf.mxu1 }
0x1199   : > { %v2632_v60 = vadd.f32 %v2609_v40, %v2216_v44 }
0x119a   : > { %v3006_v52 = vpop.f32.mrf.mxu3 }
0x119b   : > { %v3033_v27 = vadd.f32 %v3006_v52, %v2630_v62  ;;  %v5341_v52 = vld [vmem:[#allocation3 + $0x30] sm:$0xff] }
0x119d   : > { %v3043_v55 = vadd.f32 %v6672_v58, %v3033_v27 }
0x119f   : > { %v6676_v45 = vadd.f32 %v5335_v49, %v3043_v55 }
0x11a0   : > { %v2612_v15 = vpop.f32.mrf.mxu1 }
0x11a1   : > { %v3062_v43 = vsel %vm446_vm2, %v6676_v45, 0.0  ;;  %v2633_v47 = vadd.f32 %v2612_v15, %v2219_v37 }
0x11a2   : > { %v3009_v57 = vpop.f32.mrf.mxu3  ;;  %3063 = vadd.xlane.f32.xlu2 %v3062_v43 }
0x11a3   : > { %v3034_v38 = vadd.f32 %v3009_v57, %v2631_v2 }
0x11a5   : > { %v3044_v63 = vadd.f32 %v6672_v58, %v3034_v38 }
0x11a7   : > { %v6682_v32 = vadd.f32 %v5336_v11, %v3044_v63  ;;  %v2234_v63 = vadd.f32 %v6432_v1, %v6664_v28 }
0x11a8   : > { %v2615_v50 = vpop.f32.mrf.mxu1 }
0x11a9   : > { %v3065_v8 = vsel %vm446_vm2, %v6682_v32, 0.0  ;;  %v2634_v36 = vadd.f32 %v2615_v50, %v2222_v6 }
0x11aa   : > { %v3012_v18 = vpop.f32.mrf.mxu3  ;;  %3066 = vadd.xlane.f32.xlu0 %v3065_v8 }
0x11ab   : > { %v3035_v31 = vadd.f32 %v3012_v18, %v2632_v60 }
0x11ad   : > { %v3045_v51 = vadd.f32 %v6672_v58, %v3035_v31  ;;  %v5342_v31 = vld [vmem:[#allocation3 + $0x38] sm:$0xff] }
0x11af   : > { %v6688_v59 = vadd.f32 %v5337_v56, %v3045_v51 }
0x11b0   : > { %v2618_v20 = vpop.f32.mrf.mxu1 }
0x11b1   : > { %v3068_v53 = vsel %vm446_vm2, %v6688_v59, 0.0  ;;  %v2635_v26 = vadd.f32 %v2618_v20, %v2225_v14 }
0x11b2   : > { %v3015_v5 = vpop.f32.mrf.mxu3  ;;  %3069 = vadd.xlane.f32.xlu1 %v3068_v53 }
0x11b3   : > { %v3036_v10 = vadd.f32 %v3015_v5, %v2633_v47 }
0x11b5   : > { %v3046_v24 = vadd.f32 %v6672_v58, %v3036_v10 }
0x11b7   : > { %v6694_v61 = vadd.f32 %v5338_v30, %v3046_v24  ;;  %v3283_v30 = vld [vmem:[%s7452_s6 + $0x50] sm:$0xff] }
0x11b8   : > { %v2621_v9 = vpop.f32.mrf.mxu1  ;;  %3325 = vmatpush.msra.mxu1 %v3283_v30 }
0x11b9   : > { %v3071_v33 = vsel %vm446_vm2, %v6694_v61, 0.0  ;;  %v2636_v17 = vadd.f32 %v2621_v9, %v2228_v48 }
0x11ba   : > { %v3018_v12 = vpop.f32.mrf.mxu3  ;;  %3072 = vadd.xlane.f32.xlu2 %v3071_v33 }
0x11bb   : > { %v3037_v46 = vadd.f32 %v3018_v12, %v2634_v36 }
0x11bd   : > { %v3047_v34 = vadd.f32 %v6672_v58, %v3037_v46 }
0x11bf   : > { %v6700_v7 = vadd.f32 %v5339_v19, %v3047_v34 }
0x11c1   : > { %v3074_v21 = vsel %vm446_vm2, %v6700_v7, 0.0 }
0x11c2   : > { %v3021_v16 = vpop.f32.mrf.mxu3  ;;  %3075 = vadd.xlane.f32.xlu0 %v3074_v21 }
0x11c3   : > { %v3038_v3 = vadd.f32 %v3021_v16, %v2635_v26  ;;  %v2624_v42 = vpop.f32.mrf.mxu1 }
0x11c4   : > { %v2637_v49 = vadd.f32 %v2624_v42, %v2231_v13 }
0x11c5   : > { %v3048_v25 = vadd.f32 %v6672_v58, %v3038_v3 }
0x11c7   : > { %v6707_v29 = vadd.f32 %v5340_v41, %v3048_v25 }
0x11c9   : > { %v3077_v23 = vsel %vm446_vm2, %v6707_v29, 0.0 }
0x11ca   : > { %v3024_v39 = vpop.f32.mrf.mxu3  ;;  %3078 = vadd.xlane.f32.xlu1 %v3077_v23  ;;  %v3280_v23 = vld [vmem:[%s7452_s6 + $0x38] sm:$0xff] }
0x11cb   : > { %v3039_v0 = vadd.f32 %v3024_v39, %v2636_v17  ;;  %v3281_v17 = vld [vmem:[%s7452_s6 + $0x40] sm:$0xff] }
0x11cd   : > { %v3049_v62 = vadd.f32 %v6672_v58, %v3039_v0 }
0x11cf   : > { %v6712_v27 = vadd.f32 %v5341_v52, %v3049_v62 }
0x11d1   : > { %v3080_v55 = vsel %vm446_vm2, %v6712_v27, 0.0 }
0x11d2   : > { %3081 = vadd.xlane.f32.xlu0 %v3080_v55  ;;  %v3027_v40 = vpop.f32.mrf.mxu3 }
0x11d3   : > { %v3040_v43 = vadd.f32 %v3027_v40, %v2637_v49 }
0x11d5   : > { %v3050_v11 = vadd.f32 %v6672_v58, %v3040_v43 }
0x11d7   : > { %v3060_v51 = vadd.f32 %v5342_v31, %v3050_v11 }
0x11d9   : > { %v3083_v56 = vsel %vm446_vm2, %v3060_v51, 0.0 }
0x120e   : > { %v3030_v8 = vpop.f32.mrf.mxu3 }
0x1210   : > { %v2627_v38 = vpop.f32.mrf.mxu1 }
0x1211   : > { %v2638_v15 = vadd.f32 %v2627_v38, %v2234_v63 }
0x1213   : > { %v3041_v18 = vadd.f32 %v3030_v8, %v2638_v15 }
0x1215   : > { %v3064_v54 = vpop.xlane.xlu2 %3063  ;;  %v3051_v28 = vadd.f32 %v6672_v58, %v3041_v18 }
0x1216   : > { %v3089_v2 = vmul.f32 %v3064_v54, %v5639_v22 }
0x1218   : > { %v6720_v57 = vsub.f32 %v6676_v45, %v3089_v2 }
0x121a   : > { %v3107_v44 = vmul.f32 %v6720_v57, %v6720_v57 }
0x121c   : > { %v3116_v35 = vsel %vm446_vm2, %v3107_v44, 0.0 }
0x121d   : > { %v3067_v4 = vpop.xlane.xlu0 %3066  ;;  %3117 = vadd.xlane.f32.xlu2 %v3116_v35 }
0x121e   : > { %v3090_v60 = vmul.f32 %v3067_v4, %v5639_v22  ;;  %v3052_v4 = vld [vmem:[%s7451_s5 + $0xf8] sm:$0x3] }
0x1220   : > { %v6730_v45 = vsub.f32 %v6682_v32, %v3090_v60  ;;  %v5343_v32 = vld [vmem:[#allocation3 + $0x40] sm:$0x3] }
0x1221   : > { %v6741_v5 = vadd.f32 %v5343_v32, %v3051_v28  ;;  %v6804_v28 = vperm.slane %v3052_v4, 0 }
0x1222   : > { %v3108_v1 = vmul.f32 %v6730_v45, %v6730_v45 }
0x1223   : > { %v3086_v24 = vsel %vm1032_vm6, %v6741_v5, 0.0 }
0x1224   : > { %v3119_v37 = vsel %vm446_vm2, %v3108_v1, 0.0 }
0x1225   : > { %v3070_v47 = vpop.xlane.xlu1 %3069  ;;  %3120 = vadd.xlane.f32.xlu1 %v3119_v37  ;;  %3084 = vadd.xlane.f32.xlu2 %v3083_v56 }
0x1226   : > { %v3091_v53 = vmul.f32 %v3070_v47, %v5639_v22 }
0x1228   : > { %v6739_v50 = vsub.f32 %v6688_v59, %v3091_v53  ;;  %v6808_v53 = vperm.slane %v3052_v4, 1 }
0x122a   : > { %v3109_v10 = vmul.f32 %v6739_v50, %v6739_v50 }
0x122c   : > { %v3122_v58 = vsel %vm446_vm2, %v3109_v10, 0.0 }
0x122d   : > { %v3073_v6 = vpop.xlane.xlu2 %3072  ;;  %3123 = vadd.xlane.f32.xlu0 %v3122_v58  ;;  %3087 = vadd.xlane.f32.xlu1 %v3086_v24 }
0x122e   : > { %v3092_v59 = vmul.f32 %v3073_v6, %v5639_v22 }
0x1230   : > { %v6753_v36 = vsub.f32 %v6694_v61, %v3092_v59 }
0x1232   : > { %v3110_v33 = vmul.f32 %v6753_v36, %v6753_v36 }
0x1234   : > { %v3125_v12 = vsel %vm446_vm2, %v3110_v33, 0.0 }
0x1235   : > { %v3076_v46 = vpop.xlane.xlu0 %3075  ;;  %3126 = vadd.xlane.f32.xlu2 %v3125_v12 }
0x1236   : > { %v3093_v20 = vmul.f32 %v3076_v46, %v5639_v22 }
0x1238   : > { %v6760_v34 = vsub.f32 %v6700_v7, %v3093_v20 }
0x123a   : > { %v3111_v14 = vmul.f32 %v6760_v34, %v6760_v34 }
0x123c   : > { %v3128_v19 = vsel %vm446_vm2, %v3111_v14, 0.0 }
0x123d   : > { %v3079_v26 = vpop.xlane.xlu1 %3078  ;;  %3129 = vadd.xlane.f32.xlu0 %v3128_v19 }
0x123e   : > { %v3094_v61 = vmul.f32 %v3079_v26, %v5639_v22 }
0x1240   : > { %v6767_v21 = vsub.f32 %v6707_v29, %v3094_v61  ;;  %v3282_v29 = vld [vmem:[%s7452_s6 + $0x48] sm:$0xff] }
0x1241   : > { %3326 = vmatpush.msra.mxu1 %v3282_v29 }
0x1242   : > { %v3112_v16 = vmul.f32 %v6767_v21, %v6767_v21 }
0x1243   : > { %3327 = vmatpush.msra.mxu1 %v3281_v17 }
0x1244   : > { %v3131_v3 = vsel %vm446_vm2, %v3112_v16, 0.0 }
0x1245   : > { %v3082_v25 = vpop.xlane.xlu0 %3081  ;;  %3132 = vadd.xlane.f32.xlu1 %v3131_v3  ;;  %3328 = vmatpush.msra.mxu1 %v3280_v23 }
0x1246   : > { %v3095_v7 = vmul.f32 %v3082_v25, %v5639_v22 }
0x1248   : > { %v6774_v9 = vsub.f32 %v6712_v27, %v3095_v7 }
0x124a   : > { %v3113_v48 = vmul.f32 %v6774_v9, %v6774_v9 }
0x124c   : > { %v3134_v41 = vsel %vm446_vm2, %v3113_v48, 0.0 }
0x124d   : > { %3135 = vadd.xlane.f32.xlu2 %v3134_v41 }
0x1290   : > { %v3118_v39 = vpop.xlane.xlu2 %3117 }
0x1291   : > { %v3143_v0 = vmul.f32 %v3118_v39, %v5639_v22 }
0x1293   : > { %v3152_v62 = vadd.f32 1e-05, %v3143_v0 }
0x1295   : > { %5279 = vrsqrt.f32 %v3152_v62  ;;  %vm3167_vm11 = vweird.f32 %v3152_v62 }
0x1298   : > { %v3121_v52 = vpop.xlane.xlu1 %3120  ;;  %v3085_v27 = vpop.xlane.xlu2 %3084 }
0x1299   : > { %v3144_v55 = vmul.f32 %v3121_v52, %v5639_v22  ;;  %v3096_v42 = vmul.f32 %v3085_v27, %v5639_v22 }
0x129b   : > { %v5280_v13 = vpop.eup %5279  ;;  %v3153_v40 = vadd.f32 1e-05, %v3144_v55  ;;  %v6791_v54 = vsub.f32 %v3060_v51, %v3096_v42 }
0x129c   : > { %v3162_v49 = vmul.f32 %v5280_v13, %v3152_v62  ;;  %vm3168_vm10 = vweird.f32 %v5280_v13 }
0x129d   : > { %5281 = vrsqrt.f32 %v3153_v40  ;;  %v3114_v2 = vmul.f32 %v6791_v54, %v6791_v54  ;;  %vm3169_vm12 = vmor %vm3167_vm11, %vm3168_vm10  ;;  %vm3177_vm15 = vweird.f32 %v3153_v40 }
0x129e   : > { %v3163_v43 = vmul.f32 %v5280_v13, %v3162_v49 }
0x129f   : > { %v3137_v38 = vsel %vm446_vm2, %v3114_v2, 0.0 }
0x12a0   : > { %v3164_v63 = vmul.f32 0.5, %v3163_v43  ;;  %v3124_v44 = vpop.xlane.xlu0 %3123  ;;  %3138 = vadd.xlane.f32.xlu0 %v3137_v38  ;;  %v3088_v11 = vpop.xlane.xlu1 %3087  ;;  %v3372_v43 = vld [vmem:[%s7451_s5 + $0x130] sm:$0xff] }
0x12a1   : > { %v3145_v15 = vmul.f32 %v3124_v44, %v5639_v22  ;;  %v3097_v35 = vmul.f32 %v3088_v11, %v5639_v22 }
0x12a2   : > { %v3165_v60 = vsub.f32 1.5, %v3164_v63 }
0x12a3   : > { %v5282_v8 = vpop.eup %5281  ;;  %v3154_v18 = vadd.f32 1e-05, %v3145_v15  ;;  %v6802_v31 = vsub.f32 %v6741_v5, %v3097_v35 }
0x12a4   : > { %v3166_v51 = vmul.f32 %v5280_v13, %v3165_v60  ;;  %v3172_v1 = vmul.f32 %v5282_v8, %v3153_v40  ;;  %vm3178_vm13 = vweird.f32 %v5282_v8 }
0x12a5   : > { %5283 = vrsqrt.f32 %v3154_v18  ;;  %v3115_v37 = vmul.f32 %v6802_v31, %v6802_v31  ;;  %vm3179_vm3 = vmor %vm3177_vm15, %vm3178_vm13  ;;  %vm3187_vm7 = vweird.f32 %v3154_v18 }
0x12a6   : > { %v3170_v56 = vsel %vm3169_vm12, %v5280_v13, %v3166_v51  ;;  %v3173_v47 = vmul.f32 %v5282_v8, %v3172_v1 }
0x12a7   : > { %v3251_v32 = vmul.f32 %v3170_v56, %v6720_v57  ;;  %v3140_v10 = vsel %vm1032_vm6, %v3115_v37, 0.0 }
0x12a8   : > { %v3174_v5 = vmul.f32 0.5, %v3173_v47  ;;  %v3127_v58 = vpop.xlane.xlu2 %3126  ;;  %3141 = vadd.xlane.f32.xlu1 %v3140_v10 }
0x12a9   : > { %v3261_v24 = vmul.f32 %v6804_v28, %v3251_v32  ;;  %v3146_v6 = vmul.f32 %v3127_v58, %v5639_v22 }
0x12aa   : > { %v3175_v30 = vsub.f32 1.5, %v3174_v5 }
0x12ab   : > { %v5284_v59 = vpop.eup %5283  ;;  %v6815_v33 = vadd.f32 %v6808_v53, %v3261_v24  ;;  %v3155_v12 = vadd.f32 1e-05, %v3146_v6 }
0x12ac   : > { %v3176_v46 = vmul.f32 %v5282_v8, %v3175_v30  ;;  %v3182_v20 = vmul.f32 %v5284_v59, %v3154_v18  ;;  %vm3188_vm4 = vweird.f32 %v5284_v59 }
0x12ad   : > { %5285 = vrsqrt.f32 %v3155_v12  ;;  %4810 = vmatmul.msk.f32.vlgmr.msra.gmra.mxu1 %vm446_vm2, %v6815_v33  ;;  %vm3189_vm8 = vmor %vm3187_vm7, %vm3188_vm4  ;;  %vm3197_vm10 = vweird.f32 %v3155_v12 }
0x12ae   : > { %v3180_v57 = vsel %vm3179_vm3, %v5282_v8, %v3176_v46  ;;  %v3183_v14 = vmul.f32 %v5284_v59, %v3182_v20 }
0x12af   : > { %v3252_v19 = vmul.f32 %v3180_v57, %v6730_v45 }
0x12b0   : > { %v3184_v26 = vmul.f32 0.5, %v3183_v14  ;;  %v3130_v61 = vpop.xlane.xlu0 %3129 }
0x12b1   : > { %v3147_v16 = vmul.f32 %v3130_v61, %v5639_v22  ;;  %v3262_v3 = vmul.f32 %v6804_v28, %v3252_v19 }
0x12b2   : > { %v3185_v25 = vsub.f32 1.5, %v3184_v26 }
0x12b3   : > { %v5286_v7 = vpop.eup %5285  ;;  %v3156_v48 = vadd.f32 1e-05, %v3147_v16  ;;  %v6823_v41 = vadd.f32 %v6808_v53, %v3262_v3  ;;  %v3371_v3 = vld [vmem:[%s7451_s5 + $0x128] sm:$0xff] }
0x12b4   : > { %v3186_v29 = vmul.f32 %v5284_v59, %v3185_v25  ;;  %v3192_v17 = vmul.f32 %v5286_v7, %v3155_v12  ;;  %vm3198_vm9 = vweird.f32 %v5286_v7  ;;  %v3370_v25 = vld [vmem:[%s7451_s5 + $0x120] sm:$0xff] }
0x12b5   : > { %5287 = vrsqrt.f32 %v3156_v48  ;;  %4811 = vmatmul.msk.f32.gmra.mxu1 %vm446_vm2, %v6823_v41  ;;  %vm3199_vm11 = vmor %vm3197_vm10, %vm3198_vm9  ;;  %vm3207_vm13 = vweird.f32 %v3156_v48 }
0x12b6   : > { %v3190_v45 = vsel %vm3189_vm8, %v5284_v59, %v3186_v29  ;;  %v3193_v23 = vmul.f32 %v5286_v7, %v3192_v17  ;;  %v3366_v29 = vld [vmem:[%s7451_s5 + $0x100] sm:$0xff] }
0x12b7   : > { %v3253_v39 = vmul.f32 %v3190_v45, %v6739_v50  ;;  %v3373_v50 = vld [vmem:[%s7451_s5 + $0x138] sm:$0xff] }
0x12b8   : > { %v3194_v0 = vmul.f32 0.5, %v3193_v23  ;;  %v3133_v62 = vpop.xlane.xlu1 %3132  ;;  %3411 = vmatpush.msrb.mxu0 %v3373_v50 }
0x12b9   : > { %v3148_v52 = vmul.f32 %v3133_v62, %v5639_v22  ;;  %v3263_v27 = vmul.f32 %v6804_v28, %v3253_v39 }
0x12ba   : > { %v3195_v55 = vsub.f32 1.5, %v3194_v0  ;;  %3412 = vmatpush.msrb.mxu0 %v3372_v43  ;;  %v5087_v43 = vld [vmem:[%s7452_s6 + $0x58] ss:$0 sm:$0xff] }
0x12bb   : > { %v5288_v42 = vpop.eup %5287  ;;  %v3157_v13 = vadd.f32 1e-05, %v3148_v52  ;;  %v6831_v40 = vadd.f32 %v6808_v53, %v3263_v27 }
0x12bc   : > { %v3196_v49 = vmul.f32 %v5286_v7, %v3195_v55  ;;  %v3202_v2 = vmul.f32 %v5288_v42, %v3156_v48  ;;  %vm3208_vm12 = vweird.f32 %v5288_v42  ;;  %3413 = vmatpush.msrb.mxu0 %v3371_v3  ;;  %v3367_v48 = vld [vmem:[%s7451_s5 + $0x108] sm:$0xff] }
0x12bd   : > { %5289 = vrsqrt.f32 %v3157_v13  ;;  %4812 = vmatmul.msk.f32.gmra.mxu1 %vm446_vm2, %v6831_v40  ;;  %vm3209_vm15 = vmor %vm3207_vm13, %vm3208_vm12  ;;  %vm3217_vm4 = vweird.f32 %v3157_v13 }
0x12be   : > { %v3200_v38 = vsel %vm3199_vm11, %v5286_v7, %v3196_v49  ;;  %v3203_v63 = vmul.f32 %v5288_v42, %v3202_v2  ;;  %3414 = vmatpush.msrb.mxu0 %v3370_v25  ;;  %v3368_v7 = vld [vmem:[%s7451_s5 + $0x110] sm:$0xff] }
0x12bf   : > { %v3254_v44 = vmul.f32 %v3200_v38, %v6753_v36 }
0x12c0   : > { %v3204_v11 = vmul.f32 0.5, %v3203_v63  ;;  %v3136_v15 = vpop.xlane.xlu2 %3135 }
0x12c1   : > { %v3149_v35 = vmul.f32 %v3136_v15, %v5639_v22  ;;  %v3264_v4 = vmul.f32 %v6804_v28, %v3254_v44 }
0x12c2   : > { %v3205_v60 = vsub.f32 1.5, %v3204_v11 }
0x12c3   : > { %v5290_v8 = vpop.eup %5289  ;;  %v3158_v18 = vadd.f32 1e-05, %v3149_v35  ;;  %v6845_v51 = vadd.f32 %v6808_v53, %v3264_v4 }
0x12c4   : > { %v3206_v1 = vmul.f32 %v5288_v42, %v3205_v60  ;;  %v3212_v37 = vmul.f32 %v5290_v8, %v3157_v13  ;;  %vm3218_vm3 = vweird.f32 %v5290_v8 }
0x12c5   : > { %5291 = vrsqrt.f32 %v3158_v18  ;;  %4813 = vmatmul.msk.f32.gmra.mxu1 %vm446_vm2, %v6845_v51  ;;  %vm3219_vm7 = vmor %vm3217_vm4, %vm3218_vm3  ;;  %vm3227_vm9 = vweird.f32 %v3158_v18 }
0x12c6   : > { %v3210_v36 = vsel %vm3209_vm15, %v5288_v42, %v3206_v1  ;;  %v3213_v56 = vmul.f32 %v5290_v8, %v3212_v37 }
0x12c7   : > { %v3255_v47 = vmul.f32 %v3210_v36, %v6760_v34 }
0x12c8   : > { %v3214_v32 = vmul.f32 0.5, %v3213_v56 }
0x12c9   : > { %v3265_v10 = vmul.f32 %v6804_v28, %v3255_v47 }
0x12ca   : > { %v3215_v5 = vsub.f32 1.5, %v3214_v32 }
0x12cb   : > { %v5292_v58 = vpop.eup %5291  ;;  %v6852_v24 = vadd.f32 %v6808_v53, %v3265_v10 }
0x12cc   : > { %v3216_v6 = vmul.f32 %v5290_v8, %v3215_v5  ;;  %v3222_v30 = vmul.f32 %v5292_v58, %v3158_v18  ;;  %vm3228_vm8 = vweird.f32 %v5292_v58 }
0x12cd   : > { %4814 = vmatmul.msk.f32.gmra.mxu1 %vm446_vm2, %v6852_v24  ;;  %vm3229_vm10 = vmor %vm3227_vm9, %vm3228_vm8 }
0x12ce   : > { %v3220_v59 = vsel %vm3219_vm7, %v5290_v8, %v3216_v6  ;;  %v3223_v12 = vmul.f32 %v5292_v58, %v3222_v30 }
0x12cf   : > { %v3256_v34 = vmul.f32 %v3220_v59, %v6767_v21 }
0x12d0   : > { %v3224_v46 = vmul.f32 0.5, %v3223_v12 }
0x12d1   : > { %v3266_v20 = vmul.f32 %v6804_v28, %v3256_v34 }
0x12d2   : > { %v3225_v57 = vsub.f32 1.5, %v3224_v46 }
0x12d3   : > { %v6859_v14 = vadd.f32 %v6808_v53, %v3266_v20 }
0x12d4   : > { %v3226_v19 = vmul.f32 %v5292_v58, %v3225_v57 }
0x12d5   : > { %4815 = vmatmul.msk.f32.gmra.mxu1 %vm446_vm2, %v6859_v14 }
0x12d6   : > { %v3230_v26 = vsel %vm3229_vm10, %v5292_v58, %v3226_v19 }
0x12d7   : > { %v3257_v61 = vmul.f32 %v3230_v26, %v6774_v9  ;;  %v3369_v9 = vld [vmem:[%s7451_s5 + $0x118] sm:$0xff] }
0x12d8   : > { %3415 = vmatpush.msrb.mxu0 %v3369_v9 }
0x12d9   : > { %v3267_v16 = vmul.f32 %v6804_v28, %v3257_v61  ;;  %v6917_v61 = vld [vmem:[%s7451_s5 + $0x140] ss:$0 sm:$0xff] }
0x12da   : > { %3416 = vmatpush.msrb.mxu0 %v3368_v7 }
0x12db   : > { %v6866_v21 = vadd.f32 %v6808_v53, %v3267_v16 }
0x12dc   : > { %3417 = vmatpush.msrb.mxu0 %v3367_v48 }
0x12dd   : > { %4816 = vmatmul.msk.f32.gmra.mxu1 %vm446_vm2, %v6866_v21 }
0x12de   : > { %3418 = vmatpush.msrb.mxu0 %v3366_v29 }
0x1313   : > { %v3139_v17 = vpop.xlane.xlu0 %3138 }
0x1314   : > { %v3150_v45 = vmul.f32 %v3139_v17, %v5639_v22 }
0x1316   : > { %v3159_v23 = vadd.f32 1e-05, %v3150_v45 }
0x1318   : > { %5293 = vrsqrt.f32 %v3159_v23  ;;  %vm3237_vm12 = vweird.f32 %v3159_v23 }
0x131b   : > { %v3142_v39 = vpop.xlane.xlu1 %3141 }
0x131c   : > { %v3151_v0 = vmul.f32 %v3142_v39, %v5639_v22 }
0x131e   : > { %v5294_v62 = vpop.eup %5293  ;;  %v3160_v52 = vadd.f32 1e-05, %v3151_v0 }
0x131f   : > { %v3232_v27 = vmul.f32 %v5294_v62, %v3159_v23  ;;  %vm3238_vm11 = vweird.f32 %v5294_v62 }
0x1320   : > { %5295 = vrsqrt.f32 %v3160_v52  ;;  %vm3239_vm13 = vmor %vm3237_vm12, %vm3238_vm11  ;;  %vm3247_vm3 = vweird.f32 %v3160_v52 }
0x1321   : > { %v3233_v55 = vmul.f32 %v5294_v62, %v3232_v27 }
0x1323   : > { %v3234_v42 = vmul.f32 0.5, %v3233_v55 }
0x1325   : > { %v3235_v13 = vsub.f32 1.5, %v3234_v42 }
0x1326   : > { %v5296_v49 = vpop.eup %5295 }
0x1327   : > { %v3236_v2 = vmul.f32 %v5294_v62, %v3235_v13  ;;  %v3242_v50 = vmul.f32 %v5296_v49, %v3160_v52  ;;  %vm3248_vm15 = vweird.f32 %v5296_v49 }
0x1328   : > { %vm3249_vm4 = vmor %vm3247_vm3, %vm3248_vm15 }
0x1329   : > { %v3240_v38 = vsel %vm3239_vm13, %v5294_v62, %v3236_v2  ;;  %v3243_v63 = vmul.f32 %v5296_v49, %v3242_v50 }
0x132a   : > { %v3258_v44 = vmul.f32 %v3240_v38, %v6791_v54  ;;  %v3330_v11 = vpop.f32.mrf.mxu1 }
0x132b   : > { %v3244_v15 = vmul.f32 0.5, %v3243_v63  ;;  %v3331_v35 = vadd.f32 %v5087_v43, %v3330_v11 }
0x132c   : > { %v3268_v4 = vmul.f32 %v6804_v28, %v3258_v44 }
0x132d   : > { %v3245_v60 = vsub.f32 1.5, %v3244_v15  ;;  %v3357_v8 = vmax.f32 %v3331_v35, 0.0 }
0x132e   : > { %v6896_v18 = vadd.f32 %v6808_v53, %v3268_v4 }
0x132f   : > { %v3246_v1 = vmul.f32 %v5296_v49, %v3245_v60  ;;  %4819 = vmatmul.msk.f32.vlgmr.msrb.gmra.mxu0 %vm1134_vm14, %v3357_v8 }
0x1330   : > { %4817 = vmatmul.msk.f32.gmra.mxu1 %vm446_vm2, %v6896_v18 }
0x1331   : > { %v3250_v54 = vsel %vm3249_vm4, %v5296_v49, %v3246_v1 }
0x1332   : > { %v3259_v37 = vmul.f32 %v3250_v54, %v6802_v31  ;;  %v3333_v36 = vpop.f32.mrf.mxu1 }
0x1333   : > { %v3334_v56 = vadd.f32 %v5087_v43, %v3333_v36 }
0x1334   : > { %v3269_v47 = vmul.f32 %v6804_v28, %v3259_v37 }
0x1335   : > { %v3358_v32 = vmax.f32 %v3334_v56, 0.0 }
0x1336   : > { %v6904_v10 = vadd.f32 %v6808_v53, %v3269_v47 }
0x1337   : > { %4820 = vmatmul.msk.f32.gmra.mxu0 %vm1134_vm14, %v3358_v32 }
0x1338   : > { %4818 = vmatmul.msk.f32.gmra.mxu1 %vm446_vm2, %v6904_v10 }
0x133a   : > { %v3336_v5 = vpop.f32.mrf.mxu1 }
0x133b   : > { %v3337_v58 = vadd.f32 %v5087_v43, %v3336_v5 }
0x133d   : > { %v3359_v6 = vmax.f32 %v3337_v58, 0.0 }
0x133f   : > { %4821 = vmatmul.msk.f32.gmra.mxu0 %vm1134_vm14, %v3359_v6 }
0x1342   : > { %v3339_v30 = vpop.f32.mrf.mxu1 }
0x1343   : > { %v3340_v31 = vadd.f32 %v5087_v43, %v3339_v30 }
0x1345   : > { %v3360_v59 = vmax.f32 %v3340_v31, 0.0 }
0x1347   : > { %4822 = vmatmul.msk.f32.gmra.mxu0 %vm1134_vm14, %v3360_v59 }
0x134a   : > { %v3342_v28 = vpop.f32.mrf.mxu1 }
0x134b   : > { %v3343_v12 = vadd.f32 %v5087_v43, %v3342_v28 }
0x134d   : > { %v3361_v34 = vmax.f32 %v3343_v12, 0.0 }
0x134f   : > { %4823 = vmatmul.msk.f32.gmra.mxu0 %vm1134_vm14, %v3361_v34 }
0x1352   : > { %v3345_v53 = vpop.f32.mrf.mxu1 }
0x1353   : > { %v3346_v46 = vadd.f32 %v5087_v43, %v3345_v53 }
0x1355   : > { %v3362_v20 = vmax.f32 %v3346_v46, 0.0 }
0x1357   : > { %4824 = vmatmul.msk.f32.gmra.mxu0 %vm1134_vm14, %v3362_v20 }
0x135a   : > { %v3348_v57 = vpop.f32.mrf.mxu1 }
0x135b   : > { %v3349_v19 = vadd.f32 %v5087_v43, %v3348_v57 }
0x135d   : > { %v3363_v26 = vmax.f32 %v3349_v19, 0.0 }
0x135f   : > { %4825 = vmatmul.msk.f32.gmra.mxu0 %vm1134_vm14, %v3363_v26 }
0x13ac   : > { %v3420_v16 = vpop.f32.mrf.mxu0 }
0x13ad   : > { %v3421_v3 = vadd.f32 %v6917_v61, %v3420_v16  ;;  %v3351_v25 = vpop.f32.mrf.mxu1 }
0x13ae   : > { %v3352_v9 = vadd.f32 %v5087_v43, %v3351_v25 }
0x13af   : > { %v3448_v7 = vadd.f32 %v3421_v3, %v6815_v33 }
0x13b0   : > { %v3364_v48 = vmax.f32 %v3352_v9, 0.0 }
0x13b1   : > { %v3457_v29 = vsel %vm446_vm2, %v3448_v7, 0.0 }
0x13b2   : > { %3458 = vadd.xlane.f32.xlu2 %v3457_v29  ;;  %4826 = vmatmul.msk.f32.gmra.mxu0 %vm1134_vm14, %v3364_v48 }
0x13b4   : > { %v3423_v17 = vpop.f32.mrf.mxu0 }
0x13b5   : > { %v3424_v45 = vadd.f32 %v6917_v61, %v3423_v17  ;;  %v3354_v23 = vpop.f32.mrf.mxu1 }
0x13b6   : > { %v3355_v39 = vadd.f32 %v5087_v43, %v3354_v23 }
0x13b7   : > { %v3449_v0 = vadd.f32 %v3424_v45, %v6823_v41 }
0x13b8   : > { %v3365_v62 = vmax.f32 %v3355_v39, 0.0 }
0x13b9   : > { %v3460_v52 = vsel %vm446_vm2, %v3449_v0, 0.0 }
0x13ba   : > { %3461 = vadd.xlane.f32.xlu0 %v3460_v52  ;;  %4827 = vmatmul.msk.f32.gmra.mxu0 %vm1134_vm14, %v3365_v62 }
0x13bc   : > { %v3426_v33 = vpop.f32.mrf.mxu0 }
0x13bd   : > { %v3427_v27 = vadd.f32 %v6917_v61, %v3426_v33  ;;  %v3678_v33 = vld [vmem:[%s7452_s6 + $0xa0] sm:$0xff] }
0x13be   : > { %3727 = vmatpush.msra.mxu2 %v3678_v33 }
0x13bf   : > { %v3450_v55 = vadd.f32 %v3427_v27, %v6831_v40  ;;  %v3677_v27 = vld [vmem:[%s7452_s6 + $0x98] sm:$0xff] }
0x13c0   : > { %3728 = vmatpush.msra.mxu2 %v3677_v27 }
0x13c1   : > { %v3463_v42 = vsel %vm446_vm2, %v3450_v55, 0.0 }
0x13c2   : > { %3464 = vadd.xlane.f32.xlu1 %v3463_v42  ;;  %v3675_v42 = vld [vmem:[%s7452_s6 + $0x88] sm:$0xff] }
0x13c4   : > { %v3429_v13 = vpop.f32.mrf.mxu0 }
0x13c5   : > { %v3430_v49 = vadd.f32 %v6917_v61, %v3429_v13 }
0x13c7   : > { %v3451_v2 = vadd.f32 %v3430_v49, %v6845_v51 }
0x13c9   : > { %v3466_v41 = vsel %vm446_vm2, %v3451_v2, 0.0 }
0x13ca   : > { %3467 = vadd.xlane.f32.xlu2 %v3466_v41 }
0x13cc   : > { %v3432_v50 = vpop.f32.mrf.mxu0 }
0x13cd   : > { %v3433_v43 = vadd.f32 %v6917_v61, %v3432_v50 }
0x13cf   : > { %v3452_v38 = vadd.f32 %v3433_v43, %v6852_v24 }
0x13d1   : > { %v3469_v63 = vsel %vm446_vm2, %v3452_v38, 0.0 }
0x13d2   : > { %3470 = vadd.xlane.f32.xlu0 %v3469_v63 }
0x13d4   : > { %v3435_v40 = vpop.f32.mrf.mxu0 }
0x13d5   : > { %v3436_v44 = vadd.f32 %v6917_v61, %v3435_v40 }
0x13d7   : > { %v3453_v11 = vadd.f32 %v3436_v44, %v6859_v14 }
0x13d9   : > { %v3472_v15 = vsel %vm446_vm2, %v3453_v11, 0.0 }
0x13da   : > { %3473 = vadd.xlane.f32.xlu1 %v3472_v15 }
0x13dc   : > { %v3438_v51 = vpop.f32.mrf.mxu0 }
0x13dd   : > { %v3439_v35 = vadd.f32 %v6917_v61, %v3438_v51 }
0x13df   : > { %v3454_v4 = vadd.f32 %v3439_v35, %v6866_v21 }
0x13e1   : > { %v3475_v60 = vsel %vm446_vm2, %v3454_v4, 0.0 }
0x13e2   : > { %3476 = vadd.xlane.f32.xlu0 %v3475_v60 }
0x1425   : > { %v3459_v24 = vpop.xlane.xlu2 %3458 }
0x1426   : > { %v3484_v8 = vmul.f32 %v3459_v24, %v5639_v22 }
0x1428   : > { %v6943_v1 = vsub.f32 %v3448_v7, %v3484_v8 }
0x142a   : > { %v3502_v54 = vmul.f32 %v6943_v1, %v6943_v1 }
0x142c   : > { %v3511_v14 = vsel %vm446_vm2, %v3502_v54, 0.0 }
0x142d   : > { %v3462_v37 = vpop.xlane.xlu0 %3461  ;;  %3512 = vadd.xlane.f32.xlu2 %v3511_v14  ;;  %v3447_v14 = vld [vmem:[%s7451_s5 + $0x148] sm:$0x3] }
0x142e   : > { %v3485_v36 = vmul.f32 %v3462_v37, %v5639_v22 }
0x142f   : > { %v3441_v56 = vpop.f32.mrf.mxu0 }
0x1430   : > { %v6949_v47 = vsub.f32 %v3449_v0, %v3485_v36  ;;  %v3442_v21 = vadd.f32 %v6917_v61, %v3441_v56 }
0x1432   : > { %v3455_v32 = vadd.f32 %v3442_v21, %v6896_v18  ;;  %v3503_v5 = vmul.f32 %v6949_v47, %v6949_v47 }
0x1434   : > { %v3478_v58 = vsel %vm446_vm2, %v3455_v32, 0.0  ;;  %v3514_v6 = vsel %vm446_vm2, %v3503_v5, 0.0 }
0x1435   : > { %3479 = vadd.xlane.f32.xlu2 %v3478_v58  ;;  %3515 = vadd.xlane.f32.xlu1 %v3514_v6  ;;  %v3465_v30 = vpop.xlane.xlu1 %3464  ;;  %v7021_v58 = vperm.slane %v3447_v14, 0 }
0x1436   : > { %v3486_v31 = vmul.f32 %v3465_v30, %v5639_v22 }
0x1437   : > { %v3444_v59 = vpop.f32.mrf.mxu0 }
0x1438   : > { %v6958_v28 = vsub.f32 %v3450_v55, %v3486_v31  ;;  %v3445_v12 = vadd.f32 %v6917_v61, %v3444_v59  ;;  %v3676_v55 = vld [vmem:[%s7452_s6 + $0x90] sm:$0xff]  ;;  %v7025_v59 = vperm.slane %v3447_v14, 1 }
0x1439   : > { %3729 = vmatpush.msra.mxu2 %v3676_v55 }
0x143a   : > { %v6962_v34 = vadd.f32 %v3445_v12, %v6904_v10  ;;  %v3504_v18 = vmul.f32 %v6958_v28, %v6958_v28 }
0x143b   : > { %3730 = vmatpush.msra.mxu2 %v3675_v42 }
0x143c   : > { %v3481_v53 = vsel %vm1032_vm6, %v6962_v34, 0.0  ;;  %v3517_v46 = vsel %vm446_vm2, %v3504_v18, 0.0 }
0x143d   : > { %v3468_v20 = vpop.xlane.xlu2 %3467  ;;  %3482 = vadd.xlane.f32.xlu1 %v3481_v53  ;;  %3518 = vadd.xlane.f32.xlu0 %v3517_v46 }
0x143e   : > { %v3487_v57 = vmul.f32 %v3468_v20, %v5639_v22 }
0x1440   : > { %v6970_v19 = vsub.f32 %v3451_v2, %v3487_v57 }
0x1442   : > { %v3505_v26 = vmul.f32 %v6970_v19, %v6970_v19 }
0x1444   : > { %v3520_v10 = vsel %vm446_vm2, %v3505_v26, 0.0 }
0x1445   : > { %v3471_v61 = vpop.xlane.xlu0 %3470  ;;  %3521 = vadd.xlane.f32.xlu2 %v3520_v10 }
0x1446   : > { %v3488_v16 = vmul.f32 %v3471_v61, %v5639_v22 }
0x1448   : > { %v6976_v3 = vsub.f32 %v3452_v38, %v3488_v16 }
0x144a   : > { %v3506_v25 = vmul.f32 %v6976_v3, %v6976_v3 }
0x144c   : > { %v3523_v9 = vsel %vm446_vm2, %v3506_v25, 0.0 }
0x144d   : > { %3524 = vadd.xlane.f32.xlu0 %v3523_v9  ;;  %v3474_v7 = vpop.xlane.xlu1 %3473 }
0x144e   : > { %v3489_v48 = vmul.f32 %v3474_v7, %v5639_v22 }
0x1450   : > { %v6982_v29 = vsub.f32 %v3453_v11, %v3489_v48 }
0x1452   : > { %v3507_v17 = vmul.f32 %v6982_v29, %v6982_v29 }
0x1454   : > { %v3526_v45 = vsel %vm446_vm2, %v3507_v17, 0.0 }
0x1455   : > { %v3477_v23 = vpop.xlane.xlu0 %3476  ;;  %3527 = vadd.xlane.f32.xlu1 %v3526_v45 }
0x1456   : > { %v3490_v39 = vmul.f32 %v3477_v23, %v5639_v22 }
0x1458   : > { %v6988_v0 = vsub.f32 %v3454_v4, %v3490_v39 }
0x145a   : > { %v3508_v62 = vmul.f32 %v6988_v0, %v6988_v0 }
0x145c   : > { %v3529_v52 = vsel %vm446_vm2, %v3508_v62, 0.0 }
0x145d   : > { %3530 = vadd.xlane.f32.xlu2 %v3529_v52 }
0x14a0   : > { %v3513_v13 = vpop.xlane.xlu2 %3512 }
0x14a1   : > { %v3538_v49 = vmul.f32 %v3513_v13, %v5639_v22 }
0x14a3   : > { %v3547_v2 = vadd.f32 1e-05, %v3538_v49 }
0x14a5   : > { %5297 = vrsqrt.f32 %v3547_v2  ;;  %vm3562_vm8 = vweird.f32 %v3547_v2 }
0x14a8   : > { %v3480_v41 = vpop.xlane.xlu2 %3479  ;;  %v3516_v50 = vpop.xlane.xlu1 %3515 }
0x14a9   : > { %v3491_v43 = vmul.f32 %v3480_v41, %v5639_v22  ;;  %v3539_v38 = vmul.f32 %v3516_v50, %v5639_v22 }
0x14ab   : > { %v5298_v63 = vpop.eup %5297  ;;  %v7008_v40 = vsub.f32 %v3455_v32, %v3491_v43  ;;  %v3548_v44 = vadd.f32 1e-05, %v3539_v38 }
0x14ac   : > { %v3557_v11 = vmul.f32 %v5298_v63, %v3547_v2  ;;  %vm3563_vm7 = vweird.f32 %v5298_v63 }
0x14ad   : > { %5299 = vrsqrt.f32 %v3548_v44  ;;  %v3509_v15 = vmul.f32 %v7008_v40, %v7008_v40  ;;  %vm3564_vm9 = vmor %vm3562_vm8, %vm3563_vm7  ;;  %vm3572_vm11 = vweird.f32 %v3548_v44 }
0x14ae   : > { %v3558_v51 = vmul.f32 %v5298_v63, %v3557_v11 }
0x14af   : > { %v3532_v35 = vsel %vm446_vm2, %v3509_v15, 0.0 }
0x14b0   : > { %v3559_v4 = vmul.f32 0.5, %v3558_v51  ;;  %3533 = vadd.xlane.f32.xlu0 %v3532_v35  ;;  %v3519_v60 = vpop.xlane.xlu0 %3518  ;;  %v3483_v24 = vpop.xlane.xlu1 %3482 }
0x14b1   : > { %v3540_v8 = vmul.f32 %v3519_v60, %v5639_v22  ;;  %v3492_v54 = vmul.f32 %v3483_v24, %v5639_v22 }
0x14b2   : > { %v3560_v37 = vsub.f32 1.5, %v3559_v4 }
0x14b3   : > { %v5300_v36 = vpop.eup %5299  ;;  %v3549_v56 = vadd.f32 1e-05, %v3540_v8  ;;  %v7019_v21 = vsub.f32 %v6962_v34, %v3492_v54 }
0x14b4   : > { %v3561_v32 = vmul.f32 %v5298_v63, %v3560_v37  ;;  %v3567_v5 = vmul.f32 %v5300_v36, %v3548_v44  ;;  %vm3573_vm10 = vweird.f32 %v5300_v36 }
0x14b5   : > { %5301 = vrsqrt.f32 %v3549_v56  ;;  %v3510_v6 = vmul.f32 %v7019_v21, %v7019_v21  ;;  %vm3574_vm12 = vmor %vm3572_vm11, %vm3573_vm10  ;;  %vm3582_vm13 = vweird.f32 %v3549_v56 }
0x14b6   : > { %v3565_v30 = vsel %vm3564_vm9, %v5298_v63, %v3561_v32  ;;  %v3568_v31 = vmul.f32 %v5300_v36, %v3567_v5 }
0x14b7   : > { %v3646_v12 = vmul.f32 %v3565_v30, %v6943_v1  ;;  %v3535_v18 = vsel %vm1032_vm6, %v3510_v6, 0.0 }
0x14b8   : > { %v3569_v34 = vmul.f32 0.5, %v3568_v31  ;;  %v3522_v53 = vpop.xlane.xlu2 %3521  ;;  %3536 = vadd.xlane.f32.xlu1 %v3535_v18 }
0x14b9   : > { %v3656_v46 = vmul.f32 %v7021_v58, %v3646_v12  ;;  %v3541_v20 = vmul.f32 %v3522_v53, %v5639_v22 }
0x14ba   : > { %v3570_v57 = vsub.f32 1.5, %v3569_v34 }
0x14bb   : > { %v5302_v26 = vpop.eup %5301  ;;  %v3666_v10 = vadd.f32 %v7025_v59, %v3656_v46  ;;  %v3550_v61 = vadd.f32 1e-05, %v3541_v20 }
0x14bc   : > { %v3571_v16 = vmul.f32 %v5300_v36, %v3570_v57  ;;  %v3577_v25 = vmul.f32 %v5302_v26, %v3549_v56  ;;  %vm3583_vm6 = vweird.f32 %v5302_v26 }
0x14bd   : > { %5303 = vrsqrt.f32 %v3550_v61  ;;  %4828 = vmatmul.msk.f32.vlgmr.msra.gmra.mxu2 %vm446_vm2, %v3666_v10  ;;  %vm3584_vm15 = vmor %vm3582_vm13, %vm3583_vm6  ;;  %vm3592_vm4 = vweird.f32 %v3550_v61 }
0x14be   : > { %v3575_v1 = vsel %vm3574_vm12, %v5300_v36, %v3571_v16  ;;  %v3578_v9 = vmul.f32 %v5302_v26, %v3577_v25 }
0x14bf   : > { %v3647_v7 = vmul.f32 %v3575_v1, %v6949_v47 }
0x14c0   : > { %v3579_v48 = vmul.f32 0.5, %v3578_v9  ;;  %v3525_v17 = vpop.xlane.xlu0 %3524 }
0x14c1   : > { %v3542_v45 = vmul.f32 %v3525_v17, %v5639_v22  ;;  %v3657_v23 = vmul.f32 %v7021_v58, %v3647_v7 }
0x14c2   : > { %v3580_v39 = vsub.f32 1.5, %v3579_v48 }
0x14c3   : > { %v5304_v62 = vpop.eup %5303  ;;  %v3551_v52 = vadd.f32 1e-05, %v3542_v45  ;;  %v3667_v33 = vadd.f32 %v7025_v59, %v3657_v23 }
0x14c4   : > { %v3581_v27 = vmul.f32 %v5302_v26, %v3580_v39  ;;  %v3587_v55 = vmul.f32 %v5304_v62, %v3550_v61  ;;  %vm3593_vm3 = vweird.f32 %v5304_v62 }
0x14c5   : > { %5305 = vrsqrt.f32 %v3551_v52  ;;  %4829 = vmatmul.msk.f32.gmra.mxu2 %vm446_vm2, %v3667_v33  ;;  %vm3594_vm7 = vmor %vm3592_vm4, %vm3593_vm3  ;;  %vm3602_vm9 = vweird.f32 %v3551_v52 }
0x14c6   : > { %v3585_v47 = vsel %vm3584_vm15, %v5302_v26, %v3581_v27  ;;  %v3588_v42 = vmul.f32 %v5304_v62, %v3587_v55 }
0x14c7   : > { %v3648_v13 = vmul.f32 %v3585_v47, %v6958_v28 }
0x14c8   : > { %v3589_v49 = vmul.f32 0.5, %v3588_v42  ;;  %v3528_v2 = vpop.xlane.xlu1 %3527 }
0x14c9   : > { %v3543_v41 = vmul.f32 %v3528_v2, %v5639_v22  ;;  %v3658_v50 = vmul.f32 %v7021_v58, %v3648_v13 }
0x14ca   : > { %v3590_v43 = vsub.f32 1.5, %v3589_v49 }
0x14cb   : > { %v5306_v38 = vpop.eup %5305  ;;  %v3552_v63 = vadd.f32 1e-05, %v3543_v41  ;;  %v3668_v44 = vadd.f32 %v7025_v59, %v3658_v50 }
0x14cc   : > { %v3591_v11 = vmul.f32 %v5304_v62, %v3590_v43  ;;  %v3597_v15 = vmul.f32 %v5306_v38, %v3551_v52  ;;  %vm3603_vm8 = vweird.f32 %v5306_v38 }
0x14cd   : > { %5307 = vrsqrt.f32 %v3552_v63  ;;  %4830 = vmatmul.msk.f32.gmra.mxu2 %vm446_vm2, %v3668_v44  ;;  %vm3604_vm10 = vmor %vm3602_vm9, %vm3603_vm8  ;;  %vm3612_vm12 = vweird.f32 %v3552_v63 }
0x14ce   : > { %v3595_v28 = vsel %vm3594_vm7, %v5304_v62, %v3591_v11  ;;  %v3598_v51 = vmul.f32 %v5306_v38, %v3597_v15 }
0x14cf   : > { %v3649_v35 = vmul.f32 %v3595_v28, %v6970_v19 }
0x14d0   : > { %v3599_v4 = vmul.f32 0.5, %v3598_v51  ;;  %v3531_v60 = vpop.xlane.xlu2 %3530 }
0x14d1   : > { %v3544_v24 = vmul.f32 %v3531_v60, %v5639_v22  ;;  %v3659_v8 = vmul.f32 %v7021_v58, %v3649_v35 }
0x14d2   : > { %v3600_v54 = vsub.f32 1.5, %v3599_v4 }
0x14d3   : > { %v5308_v14 = vpop.eup %5307  ;;  %v3553_v37 = vadd.f32 1e-05, %v3544_v24  ;;  %v3669_v36 = vadd.f32 %v7025_v59, %v3659_v8 }
0x14d4   : > { %v3601_v56 = vmul.f32 %v5306_v38, %v3600_v54  ;;  %v3607_v32 = vmul.f32 %v5308_v14, %v3552_v63  ;;  %vm3613_vm11 = vweird.f32 %v5308_v14  ;;  %v3685_v54 = vld [vmem:[%s7452_s6 + $0xd8] sm:$0xff] }
0x14d5   : > { %5309 = vrsqrt.f32 %v3553_v37  ;;  %4831 = vmatmul.msk.f32.gmra.mxu2 %vm446_vm2, %v3669_v36  ;;  %vm3614_vm6 = vmor %vm3612_vm12, %vm3613_vm11  ;;  %vm3622_vm15 = vweird.f32 %v3553_v37  ;;  %v3686_v36 = vld [vmem:[%s7452_s6 + $0xe0] sm:$0xff] }
0x14d6   : > { %v3605_v19 = vsel %vm3604_vm10, %v5306_v38, %v3601_v56  ;;  %v3608_v5 = vmul.f32 %v5308_v14, %v3607_v32 }
0x14d7   : > { %v3650_v6 = vmul.f32 %v3605_v19, %v6976_v3 }
0x14d8   : > { %v3609_v30 = vmul.f32 0.5, %v3608_v5  ;;  %v3684_v5 = vld [vmem:[%s7452_s6 + $0xd0] sm:$0xff] }
0x14d9   : > { %v3660_v31 = vmul.f32 %v7021_v58, %v3650_v6  ;;  %v3687_v6 = vld [vmem:[%s7452_s6 + $0xe8] sm:$0x3] }
0x14da   : > { %v3610_v12 = vsub.f32 1.5, %v3609_v30 }
0x14db   : > { %v5310_v18 = vpop.eup %5309  ;;  %v3670_v34 = vadd.f32 %v7025_v59, %v3660_v31 }
0x14dc   : > { %v3611_v53 = vmul.f32 %v5308_v14, %v3610_v12  ;;  %v3617_v46 = vmul.f32 %v5310_v18, %v3553_v37  ;;  %vm3623_vm13 = vweird.f32 %v5310_v18 }
0x14dd   : > { %4832 = vmatmul.msk.f32.gmra.mxu2 %vm446_vm2, %v3670_v34  ;;  %vm3624_vm3 = vmor %vm3622_vm15, %vm3623_vm13  ;;  %v3683_v34 = vld [vmem:[%s7452_s6 + $0xc8] sm:$0xff] }
0x14de   : > { %v3615_v20 = vsel %vm3614_vm6, %v5308_v14, %v3611_v53  ;;  %v3618_v57 = vmul.f32 %v5310_v18, %v3617_v46 }
0x14df   : > { %v3651_v26 = vmul.f32 %v3615_v20, %v6982_v29  ;;  %v3679_v20 = vld [vmem:[%s7452_s6 + $0xa8] sm:$0xff] }
0x14e0   : > { %v3619_v10 = vmul.f32 0.5, %v3618_v57  ;;  %v3680_v57 = vld [vmem:[%s7452_s6 + $0xb0] sm:$0xff] }
0x14e1   : > { %v3661_v3 = vmul.f32 %v7021_v58, %v3651_v26 }
0x14e2   : > { %v3620_v61 = vsub.f32 1.5, %v3619_v10 }
0x14e3   : > { %v3671_v16 = vadd.f32 %v7025_v59, %v3661_v3 }
0x14e4   : > { %v3621_v25 = vmul.f32 %v5310_v18, %v3620_v61 }
0x14e5   : > { %4833 = vmatmul.msk.f32.gmra.mxu2 %vm446_vm2, %v3671_v16 }
0x14e6   : > { %v3625_v1 = vsel %vm3624_vm3, %v5310_v18, %v3621_v25  ;;  %v3682_v18 = vld [vmem:[%s7452_s6 + $0xc0] sm:$0xff] }
0x14e7   : > { %v3652_v9 = vmul.f32 %v3625_v1, %v6988_v0 }
0x14e9   : > { %v3662_v7 = vmul.f32 %v7021_v58, %v3652_v9 }
0x14eb   : > { %v3672_v48 = vadd.f32 %v7025_v59, %v3662_v7 }
0x14ed   : > { %4834 = vmatmul.msk.f32.gmra.mxu2 %vm446_vm2, %v3672_v48 }
0x1523   : > { %v3534_v29 = vpop.xlane.xlu0 %3533 }
0x1524   : > { %v3545_v17 = vmul.f32 %v3534_v29, %v5639_v22 }
0x1526   : > { %v3554_v45 = vadd.f32 1e-05, %v3545_v17 }
0x1528   : > { %5311 = vrsqrt.f32 %v3554_v45  ;;  %vm3632_vm7 = vweird.f32 %v3554_v45 }
0x152b   : > { %v3537_v23 = vpop.xlane.xlu1 %3536 }
0x152c   : > { %v3546_v39 = vmul.f32 %v3537_v23, %v5639_v22 }
0x152e   : > { %v5312_v62 = vpop.eup %5311  ;;  %v3555_v52 = vadd.f32 1e-05, %v3546_v39 }
0x152f   : > { %v3627_v33 = vmul.f32 %v5312_v62, %v3554_v45  ;;  %vm3633_vm4 = vweird.f32 %v5312_v62 }
0x1530   : > { %5313 = vrsqrt.f32 %v3555_v52  ;;  %vm3634_vm8 = vmor %vm3632_vm7, %vm3633_vm4  ;;  %vm3642_vm10 = vweird.f32 %v3555_v52 }
0x1531   : > { %v3628_v27 = vmul.f32 %v5312_v62, %v3627_v33 }
0x1533   : > { %v3629_v0 = vmul.f32 0.5, %v3628_v27 }
0x1535   : > { %v3630_v55 = vsub.f32 1.5, %v3629_v0 }
0x1536   : > { %v5314_v47 = vpop.eup %5313 }
0x1537   : > { %v3631_v42 = vmul.f32 %v5312_v62, %v3630_v55  ;;  %v3637_v13 = vmul.f32 %v5314_v47, %v3555_v52  ;;  %vm3643_vm9 = vweird.f32 %v5314_v47 }
0x1538   : > { %vm3644_vm11 = vmor %vm3642_vm10, %vm3643_vm9 }
0x1539   : > { %v3635_v49 = vsel %vm3634_vm8, %v5312_v62, %v3631_v42  ;;  %v3638_v2 = vmul.f32 %v5314_v47, %v3637_v13 }
0x153a   : > { %v3653_v41 = vmul.f32 %v3635_v49, %v7008_v40 }
0x153b   : > { %v3639_v50 = vmul.f32 0.5, %v3638_v2 }
0x153c   : > { %v3663_v43 = vmul.f32 %v7021_v58, %v3653_v41 }
0x153d   : > { %v3640_v38 = vsub.f32 1.5, %v3639_v50 }
0x153e   : > { %v3673_v63 = vadd.f32 %v7025_v59, %v3663_v43 }
0x153f   : > { %v3641_v44 = vmul.f32 %v5314_v47, %v3640_v38 }
0x1540   : > { %v3732_v11 = vpop.f32.mrf.mxu2  ;;  %4835 = vmatmul.msk.f32.gmra.mxu2 %vm446_vm2, %v3673_v63 }
0x1541   : > { %v3645_v15 = vsel %vm3644_vm11, %v5314_v47, %v3641_v44  ;;  %v7146_v26 = vadd.f32 %v3732_v11, %v3679_v20 }
0x1542   : > { %v3654_v28 = vmul.f32 %v3645_v15, %v7019_v21  ;;  %v3681_v21 = vld [vmem:[%s7452_s6 + $0xb8] sm:$0xff] }
0x1544   : > { %v3664_v51 = vmul.f32 %v7021_v58, %v3654_v28 }
0x1546   : > { %v3674_v40 = vadd.f32 %v7025_v59, %v3664_v51  ;;  %v7087_v59 = vld [vmem:[%s7451_s5 + $0x1d8] sm:$0xff] }
0x1548   : > { %v3735_v35 = vpop.f32.mrf.mxu2  ;;  %4836 = vmatmul.msk.f32.gmra.mxu2 %vm446_vm2, %v3674_v40 }
0x1549   : > { %v7148_v10 = vadd.f32 %v3735_v35, %v3680_v57 }
0x154b   : > { %v7182_v16 = vpack.i.bf16 %v7146_v26, %v7148_v10 }
0x1550   : > { %v3738_v4 = vpop.f32.mrf.mxu2 }
0x1551   : > { %v7080_v58 = vadd.f32 %v3738_v4, %v3681_v21 }
0x1558   : > { %v3741_v60 = vpop.f32.mrf.mxu2 }
0x1559   : > { %v7128_v53 = vadd.f32 %v3741_v60, %v3682_v18 }
0x155b   : > { %v7176_v61 = vpack.i.bf16 %v7080_v58, %v7128_v53 }
0x1560   : > { %v3744_v24 = vpop.f32.mrf.mxu2 }
0x1561   : > { %v7130_v46 = vadd.f32 %v3744_v24, %v3683_v34 }
0x1568   : > { %v3747_v8 = vpop.f32.mrf.mxu2 }
0x1569   : > { %v7110_v31 = vadd.f32 %v3747_v8, %v3684_v5 }
0x156b   : > { %v7166_v3 = vpack.i.bf16 %v7130_v46, %v7110_v31 }
0x1570   : > { %v3750_v14 = vpop.f32.mrf.mxu2 }
0x1571   : > { %v7073_v37 = vadd.f32 %v3750_v14, %v3685_v54 }
0x1573   : > { %3892 = vrot.lane.b32.xlu1 %v7073_v37, %s5354_s26 }
0x157b   : > { %3884 = vrot.lane.b32.xlu1 %v7080_v58, %s5354_s26 }
0x1583   : > { %3878 = vrot.lane.b32.xlu1 %v7087_v59, %s5354_s26 }
0x15c3   : > { %v3753_v56 = vpop.f32.mrf.mxu2 }
0x15c4   : > { %v7094_v32 = vadd.f32 %v3753_v56, %v3686_v36 }
0x15c6   : > { %3894 = vrot.lane.b32.xlu0 %v7094_v32, %s5354_s26  ;;  %v7100_v19 = vpack.i.bf16 %v7073_v37, %v7094_v32 }
0x15c8   : > { %5000 = vrot.lane.b32.xlu1 %v7100_v19, %s5359_s12 }
0x15cb   : > { %v3756_v30 = vpop.f32.mrf.mxu2 }
0x15cc   : > { %v7112_v12 = vadd.f32 %v3756_v30, %v3687_v6 }
0x15ce   : > { %3890 = vrot.lane.b32.xlu0 %v7110_v31, %s5354_s26  ;;  %3896 = vrot.lane.b32.xlu2 %v7112_v12, %s5354_s26 }
0x15cf   : > { %4837 = vmatpush.xpose.msk.msrb.mxu3 %vm396_vm0, %v7112_v12 }
0x15d3   : > { %4838 = vmatpush.xpose.msk.msrb.mxu3 %vm396_vm0, %v7094_v32 }
0x15d6   : > { %3886 = vrot.lane.b32.xlu0 %v7128_v53, %s5354_s26  ;;  %3888 = vrot.lane.b32.xlu2 %v7130_v46, %s5354_s26 }
0x15d7   : > { %4839 = vmatpush.xpose.msk.msrb.mxu3 %vm396_vm0, %v7073_v37 }
0x15db   : > { %4840 = vmatpush.xpose.msk.msrb.mxu3 %vm396_vm0, %v7110_v31 }
0x15de   : > { %3880 = vrot.lane.b32.xlu0 %v7146_v26, %s5354_s26  ;;  %3882 = vrot.lane.b32.xlu2 %v7148_v10, %s5354_s26 }
0x15df   : > { %4841 = vmatpush.xpose.msk.msrb.mxu3 %vm396_vm0, %v7130_v46 }
0x15e3   : > { %4842 = vmatpush.xpose.msk.msrb.mxu3 %vm396_vm0, %v7128_v53 }
0x15e5   : > { %v3893_v9 = vpop.permute.xlu1 %3892 }
0x15e6   : > { %3966 = vrot.lane.b32.xlu0 %v7112_v12, %s5359_s12 }
0x15e7   : > { %4843 = vmatpush.xpose.msk.msrb.mxu3 %vm396_vm0, %v7080_v58 }
0x15eb   : > { %4844 = vmatpush.xpose.msk.msrb.mxu3 %vm396_vm0, %v7148_v10 }
0x15ed   : > { %v3885_v48 = vpop.permute.xlu1 %3884 }
0x15ee   : > { %5005 = vrot.lane.b32.xlu0 %v7166_v3, %s5359_s12 }
0x15ef   : > { %4845 = vmatpush.xpose.msk.msrb.mxu3 %vm396_vm0, %v7146_v26 }
0x15f2   : > { %4846 = vmatmul.msk.f32.vlgmr.msrb.gmra.mxu3 %vm396_vm0, %v7087_v59 }
0x15f5   : > { %v3879_v45 = vpop.permute.xlu1 %3878 }
0x15f6   : > { %5010 = vrot.lane.b32.xlu0 %v7176_v61, %s5359_s12 }
0x15fe   : > { %5015 = vrot.lane.b32.xlu0 %v7182_v16, %s5359_s12 }
0x1628   : > { %v3897_v25 = vpop.permute.xlu2 %3896 }
0x1629   : > { %4849 = vmatpush.xpose.msk.msra.mxu0 %vm396_vm0, %v3897_v25 }
0x1630   : > { %v3889_v29 = vpop.permute.xlu2 %3888 }
0x1638   : > { %v3895_v1 = vpop.permute.xlu0 %3894  ;;  %v3883_v23 = vpop.permute.xlu2 %3882 }
0x1639   : > { %4850 = vmatpush.xpose.msk.msra.mxu0 %vm396_vm0, %v3895_v1 }
0x163a   : > { %v5001_v62 = vpop.permute.xlu1 %5000 }
0x163b   : > { %v5002_v33 = vunpack.i.l.bf16 %v5001_v62  ;;  %v5003_v27 = vunpack.i.h.bf16 %v5001_v62 }
0x163d   : > { %4851 = vmatpush.xpose.msk.msra.mxu0 %vm396_vm0, %v3893_v9 }
0x1640   : > { %v3891_v7 = vpop.permute.xlu0 %3890 }
0x1641   : > { %4852 = vmatpush.xpose.msk.msra.mxu0 %vm396_vm0, %v3891_v7 }
0x1645   : > { %4853 = vmatpush.xpose.msk.msra.mxu0 %vm396_vm0, %v3889_v29 }
0x1648   : > { %v3887_v17 = vpop.permute.xlu0 %3886 }
0x1649   : > { %4854 = vmatpush.xpose.msk.msra.mxu0 %vm396_vm0, %v3887_v17 }
0x164d   : > { %4855 = vmatpush.xpose.msk.msra.mxu0 %vm396_vm0, %v3885_v48 }
0x1650   : > { %v3881_v39 = vpop.permute.xlu0 %3880 }
0x1651   : > { %4856 = vmatpush.xpose.msk.msra.mxu0 %vm396_vm0, %v3883_v23 }
0x1655   : > { %4857 = vmatpush.xpose.msk.msra.mxu0 %vm396_vm0, %v3881_v39 }
0x1658   : > { %v3967_v52 = vpop.permute.xlu0 %3966  ;;  %4858 = vmatmul.msk.f32.vlgmr.msra.gmra.mxu0 %vm396_vm0, %v3879_v45 }
0x1659   : > { %4859 = vmatpush.msk.msra.mxu3 %vm574_vm5, %v3967_v52 }
0x165b   : > { %3989 = vmatpush.msra.mxu3 %v5002_v33 }
0x165d   : > { %3990 = vmatpush.msra.mxu3 %v5003_v27 }
0x1660   : > { %v5006_v0 = vpop.permute.xlu0 %5005 }
0x1661   : > { %v5007_v55 = vunpack.i.l.bf16 %v5006_v0  ;;  %v5008_v47 = vunpack.i.h.bf16 %v5006_v0 }
0x1663   : > { %3991 = vmatpush.msra.mxu3 %v5007_v55 }
0x1665   : > { %3992 = vmatpush.msra.mxu3 %v5008_v47 }
0x1668   : > { %v5011_v42 = vpop.permute.xlu0 %5010 }
0x1669   : > { %v5012_v13 = vunpack.i.l.bf16 %v5011_v42  ;;  %v5013_v49 = vunpack.i.h.bf16 %v5011_v42 }
0x166b   : > { %3993 = vmatpush.msra.mxu3 %v5012_v13 }
0x166d   : > { %3994 = vmatpush.msra.mxu3 %v5013_v49 }
0x1670   : > { %v5016_v2 = vpop.permute.xlu0 %5015 }
0x1671   : > { %v5017_v41 = vunpack.i.l.bf16 %v5016_v2  ;;  %v5018_v50 = vunpack.i.h.bf16 %v5016_v2 }
0x1673   : > { %3995 = vmatpush.msra.mxu3 %v5017_v41 }
0x1675   : > { %v3812_v43 = vpop.f32.mrf.mxu3  ;;  %3996 = vmatpush.msra.mxu3 %v5018_v50 }
0x1676   : > { %v3815_v38 = vmul.f32 0.35355338, %v3812_v43 }
0x1678   : > { %v3816_v63 = vsel %vm1571_vm1, %v3815_v38, -inf }
0x1679   : > { %3817 = vmax.xlane.f32.xlu0 %v3816_v63 }
0x168d   : > { %5030 = vrot.lane.b32.xlu0 %v7176_v61, %s5352_s19 }
0x1695   : > { %4063 = vrot.lane.b32.xlu0 %v7094_v32, %s5356_s28 }
0x169d   : > { %4059 = vrot.lane.b32.xlu0 %v7110_v31, %s5356_s28 }
0x16a5   : > { %4053 = vrot.lane.b32.xlu0 %v7080_v58, %s5356_s28 }
0x16ad   : > { %4049 = vrot.lane.b32.xlu0 %v7146_v26, %s5356_s28 }
0x16b5   : > { %4212 = vrot.lane.b32.xlu0 %v7112_v12, %s5357_s29 }
0x16bd   : > { %4206 = vrot.lane.b32.xlu0 %v7110_v31, %s5357_s29 }
0x16c5   : > { %4200 = vrot.lane.b32.xlu0 %v7080_v58, %s5357_s29 }
0x16cd   : > { %4194 = vrot.lane.b32.xlu0 %v7087_v59, %s5357_s29 }
0x16d5   : > { %5040 = vrot.lane.b32.xlu0 %v7100_v19, %s5355_s27  ;;  %v3935_v44 = vpop.f32.mrf.mxu0 }
0x16d6   : > { %v3938_v11 = vmul.f32 0.35355338, %v3935_v44  ;;  %v3761_v44 = vld [vmem:[%s7451_s5 + $0x158] sm:$0xff] }
0x16d8   : > { %v3939_v15 = vsel %vm1571_vm1, %v3938_v11, -inf }
0x16d9   : > { %3940 = vmax.xlane.f32.xlu2 %v3939_v15 }
0x16ec   : > { %v3818_v28 = vpop.xlane.xlu0 %3817 }
0x16ed   : > { %v3819_v35 = vsub.f32 %v3815_v38, %v3818_v28 }
0x16ef   : > { %v3820_v60 = vmul.f32 1.442695, %v3819_v35 }
0x16f1   : > { %3843 = vrot.lane.b32.xlu2 %v7112_v12, %s5352_s19  ;;  %5315 = vpow2.f32 %v3820_v60  ;;  %v3760_v60 = vld [vmem:[%s7451_s5 + $0x150] sm:$0xff] }
0x16f2   : > { %4042 = vmatpush.msrb.mxu3 %v3760_v60  ;;  %v4409_v60 = vld [vmem:[%s7451_s5 + $0x1b8] sm:$0xff] }
0x16f7   : > { %v7231_v8 = vpop.eup %5315 }
0x16f8   : > { %v3822_v14 = vsel %vm1571_vm1, %v7231_v8, 0.0 }
0x16f9   : > { %5025 = vrot.lane.b32.xlu2 %v7166_v3, %s5352_s19 }
0x16ff   : > { %v7223_v51 = vpop.permute.xlu0 %5030 }
0x1700   : > { %v5032_v49 = vunpack.i.l.bf16 %v7223_v51  ;;  %v5033_v2 = vunpack.i.h.bf16 %v7223_v51 }
0x1707   : > { %v7225_v40 = vpop.permute.xlu0 %4063 }
0x170f   : > { %v7227_v4 = vpop.permute.xlu0 %4059 }
0x1717   : > { %v7229_v24 = vpop.permute.xlu0 %4053 }
0x171f   : > { %v7233_v54 = vpop.permute.xlu0 %4049 }
0x1722   : > { %3823 = vadd.xlane.f32.xlu2 %v3822_v14 }
0x1727   : > { %v4213_v21 = vpop.permute.xlu0 %4212 }
0x1728   : > { %4876 = vmatpush.xpose.msk.msrb.mxu2 %vm396_vm0, %v4213_v21 }
0x172f   : > { %v7268_v34 = vpop.permute.xlu0 %4206 }
0x1737   : > { %v7276_v57 = vpop.permute.xlu0 %4200 }
0x173a   : > { %4055 = vrot.lane.b32.xlu2 %v7128_v53, %s5356_s28 }
0x1742   : > { %4208 = vrot.lane.b32.xlu2 %v7073_v37, %s5357_s29 }
0x174a   : > { %4202 = vrot.lane.b32.xlu2 %v7128_v53, %s5357_s29 }
0x174c   : > { %v3941_v58 = vpop.xlane.xlu2 %3940 }
0x174d   : > { %v3942_v36 = vsub.f32 %v3938_v11, %v3941_v58 }
0x174f   : > { %v3943_v56 = vmul.f32 1.442695, %v3942_v36 }
0x1751   : > { %5317 = vpow2.f32 %v3943_v56 }
0x1752   : > { %4196 = vrot.lane.b32.xlu2 %v7146_v26, %s5357_s29  ;;  %v7282_v26 = vpop.permute.xlu0 %4194 }
0x1754   : > { %v3844_v5 = vpop.permute.xlu2 %3843 }
0x1755   : > { %4847 = vmatpush.msk.msrb.mxu1 %vm574_vm5, %v3844_v5 }
0x1757   : > { %v5318_v6 = vpop.eup %5317 }
0x1758   : > { %v3945_v30 = vsel %vm1571_vm1, %v5318_v6, 0.0 }
0x1759   : > { %3946 = vadd.xlane.f32.xlu1 %v3945_v30 }
0x175a   : > { %4135 = vrot.lane.b32.xlu2 %v7112_v12, %s5355_s27 }
0x175c   : > { %v5026_v31 = vpop.permute.xlu2 %5025 }
0x175d   : > { %v5027_v47 = vunpack.i.l.bf16 %v5026_v31  ;;  %v5028_v42 = vunpack.i.h.bf16 %v5026_v31 }
0x1762   : > { %5045 = vrot.lane.b32.xlu2 %v7166_v3, %s5355_s27 }
0x176a   : > { %5050 = vrot.lane.b32.xlu2 %v7176_v61, %s5355_s27 }
0x1772   : > { %5055 = vrot.lane.b32.xlu2 %v7182_v16, %s5355_s27  ;;  %5020 = vrot.lane.b32.xlu1 %v7100_v19, %s5352_s19 }
0x177a   : > { %5035 = vrot.lane.b32.xlu1 %v7182_v16, %s5352_s19 }
0x1782   : > { %4065 = vrot.lane.b32.xlu1 %v7112_v12, %s5356_s28 }
0x178a   : > { %4061 = vrot.lane.b32.xlu1 %v7073_v37, %s5356_s28 }
0x1792   : > { %4057 = vrot.lane.b32.xlu1 %v7130_v46, %s5356_s28 }
0x1795   : > { %v3824_v18 = vpop.xlane.xlu2 %3823 }
0x179a   : > { %4051 = vrot.lane.b32.xlu1 %v7148_v10, %s5356_s28 }
0x179d   : > { %v7270_v53 = vpop.permute.xlu2 %4055 }
0x17a2   : > { %4047 = vrot.lane.b32.xlu1 %v7087_v59, %s5356_s28  ;;  %v5041_v59 = vpop.permute.xlu0 %5040 }
0x17a3   : > { %v5042_v9 = vunpack.i.l.bf16 %v5041_v59  ;;  %v5043_v7 = vunpack.i.h.bf16 %v5041_v59 }
0x17a5   : > { %v7274_v20 = vpop.permute.xlu2 %4208 }
0x17aa   : > { %4210 = vrot.lane.b32.xlu1 %v7094_v32, %s5357_s29 }
0x17ad   : > { %v7280_v37 = vpop.permute.xlu2 %4202 }
0x17b2   : > { %4204 = vrot.lane.b32.xlu1 %v7130_v46, %s5357_s29 }
0x17b5   : > { %v7286_v25 = vpop.permute.xlu2 %4196 }
0x17ba   : > { %4198 = vrot.lane.b32.xlu1 %v7148_v10, %s5357_s29 }
0x17bd   : > { %v4136_v1 = vpop.permute.xlu2 %4135 }
0x17be   : > { %4873 = vmatpush.msk.msrb.mxu0 %vm574_vm5, %v4136_v1 }
0x17c0   : > { %4158 = vmatpush.msrb.mxu0 %v5042_v9 }
0x17c2   : > { %4159 = vmatpush.msrb.mxu0 %v5043_v7 }
0x17c5   : > { %v5046_v32 = vpop.permute.xlu2 %5045 }
0x17c6   : > { %v5047_v48 = vunpack.i.l.bf16 %v5046_v32  ;;  %v5048_v29 = vunpack.i.h.bf16 %v5046_v32 }
0x17c8   : > { %4160 = vmatpush.msrb.mxu0 %v5047_v48 }
0x17ca   : > { %4161 = vmatpush.msrb.mxu0 %v5048_v29 }
0x17cc   : > { %v3947_v17 = vpop.xlane.xlu1 %3946 }
0x17cd   : > { %5319 = vrcp.f32 %v3947_v17  ;;  %v5051_v46 = vpop.permute.xlu2 %5050 }
0x17ce   : > { %v5052_v45 = vunpack.i.l.bf16 %v5051_v46  ;;  %v5053_v23 = vunpack.i.h.bf16 %v5051_v46  ;;  %5321 = vrcp.f32 %v3824_v18 }
0x17d0   : > { %4162 = vmatpush.msrb.mxu0 %v5052_v45 }
0x17d2   : > { %4163 = vmatpush.msrb.mxu0 %v5053_v23 }
0x17d3   : > { %v5320_v10 = vpop.eup %5319 }
0x17d4   : > { %v3949_v39 = vmul.f32 %v5320_v10, %v5318_v6  ;;  %v5322_v41 = vpop.eup %5321 }
0x17d5   : > { %v5056_v62 = vpop.permute.xlu2 %5055  ;;  %v3826_v38 = vmul.f32 %v5322_v41, %v7231_v8  ;;  %v4344_v41 = vld [vmem:[%s7451_s5 + $0x1d0] sm:$0xff] }
0x17d6   : > { %v5057_v52 = vunpack.i.l.bf16 %v5056_v62  ;;  %4860 = vmatmul.msk.f32.vlgmr.msra.gmra.mxu3 %vm1571_vm1, %v3949_v39  ;;  %v5058_v33 = vunpack.i.h.bf16 %v5056_v62 }
0x17d8   : > { %4164 = vmatpush.msrb.mxu0 %v5057_v52 }
0x17da   : > { %4165 = vmatpush.msrb.mxu0 %v5058_v33  ;;  %v3763_v33 = vld [vmem:[%s7451_s5 + $0x168] sm:$0xff] }
0x17dc   : > { %4335 = vmatpush.msra.mxu0 %v3763_v33  ;;  %v4463_v33 = vld [vmem:[%s7454_s8 + $0x28] sm:$0xff] }
0x17e4   : > { %v5021_v27 = vpop.permute.xlu1 %5020 }
0x17e5   : > { %v5022_v0 = vunpack.i.l.bf16 %v5021_v27  ;;  %v5023_v55 = vunpack.i.h.bf16 %v5021_v27 }
0x17e7   : > { %3866 = vmatpush.msrb.mxu1 %v5022_v0 }
0x17e9   : > { %3867 = vmatpush.msrb.mxu1 %v5023_v55 }
0x17eb   : > { %3868 = vmatpush.msrb.mxu1 %v5027_v47 }
0x17ec   : > { %v5036_v13 = vpop.permute.xlu1 %5035 }
0x17ed   : > { %3869 = vmatpush.msrb.mxu1 %v5028_v42  ;;  %v5037_v50 = vunpack.i.l.bf16 %v5036_v13  ;;  %v5038_v43 = vunpack.i.h.bf16 %v5036_v13  ;;  %v5089_v13 = vld [vmem:[%s7451_s5 + $0x170] ss:$0 sm:$0xff] }
0x17ef   : > { %3870 = vmatpush.msrb.mxu1 %v5032_v49 }
0x17f1   : > { %3871 = vmatpush.msrb.mxu1 %v5033_v2 }
0x17f3   : > { %3872 = vmatpush.msrb.mxu1 %v5037_v50 }
0x17f4   : > { %v4066_v63 = vpop.permute.xlu1 %4065 }
0x17f5   : > { %3873 = vmatpush.msrb.mxu1 %v5038_v43 }
0x17f6   : > { %4848 = vmatmul.msk.f32.vlgmr.msrb.gmra.mxu1 %vm1571_vm1, %v3826_v38 }
0x17f7   : > { %4019 = vmatpush.msra.mxu1 %v3761_v44 }
0x17f9   : > { %4863 = vmatpush.xpose.msk.msrb.mxu1 %vm396_vm0, %v4066_v63 }
0x17fc   : > { %v4062_v11 = vpop.permute.xlu1 %4061 }
0x17fd   : > { %4864 = vmatpush.xpose.msk.msrb.mxu1 %vm396_vm0, %v7225_v40 }
0x1801   : > { %4865 = vmatpush.xpose.msk.msrb.mxu1 %vm396_vm0, %v4062_v11 }
0x1804   : > { %v4058_v15 = vpop.permute.xlu1 %4057 }
0x1805   : > { %4866 = vmatpush.xpose.msk.msrb.mxu1 %vm396_vm0, %v7227_v4 }
0x1809   : > { %4867 = vmatpush.xpose.msk.msrb.mxu1 %vm396_vm0, %v4058_v15 }
0x180c   : > { %v4052_v28 = vpop.permute.xlu1 %4051 }
0x180d   : > { %4868 = vmatpush.xpose.msk.msrb.mxu1 %vm396_vm0, %v7270_v53 }
0x1811   : > { %4869 = vmatpush.xpose.msk.msrb.mxu1 %vm396_vm0, %v7229_v24 }
0x1814   : > { %v4048_v51 = vpop.permute.xlu1 %4047 }
0x1815   : > { %4870 = vmatpush.xpose.msk.msrb.mxu1 %vm396_vm0, %v4052_v28 }
0x1819   : > { %4871 = vmatpush.xpose.msk.msrb.mxu1 %vm396_vm0, %v7233_v54 }
0x181c   : > { %v4211_v40 = vpop.permute.xlu1 %4210 }
0x181d   : > { %4877 = vmatpush.xpose.msk.msrb.mxu2 %vm396_vm0, %v4211_v40  ;;  %v4374_v40 = vld [vmem:[%s7452_s6 + $0x70] sm:$0xff] }
0x1821   : > { %4878 = vmatpush.xpose.msk.msrb.mxu2 %vm396_vm0, %v7274_v20 }
0x1824   : > { %v4205_v35 = vpop.permute.xlu1 %4204 }
0x1825   : > { %4879 = vmatpush.xpose.msk.msrb.mxu2 %vm396_vm0, %v7268_v34 }
0x1829   : > { %4880 = vmatpush.xpose.msk.msrb.mxu2 %vm396_vm0, %v4205_v35  ;;  %v4373_v35 = vld [vmem:[%s7452_s6 + $0x68] sm:$0xff] }
0x182c   : > { %v4199_v4 = vpop.permute.xlu1 %4198 }
0x182d   : > { %4881 = vmatpush.xpose.msk.msrb.mxu2 %vm396_vm0, %v7280_v37 }
0x1831   : > { %4882 = vmatpush.xpose.msk.msrb.mxu2 %vm396_vm0, %v7276_v57 }
0x1835   : > { %4883 = vmatpush.xpose.msk.msrb.mxu2 %vm396_vm0, %v4199_v4  ;;  %v4372_v4 = vld [vmem:[%s7452_s6 + $0x60] sm:$0xff] }
0x1839   : > { %4884 = vmatpush.xpose.msk.msrb.mxu2 %vm396_vm0, %v7286_v25 }
0x183c   : > { %4885 = vmatmul.msk.f32.vlgmr.msrb.gmra.mxu2 %vm396_vm0, %v7282_v26 }
0x1859   : > { %v3998_v24 = vpop.f32.mrf.mxu3 }
0x185a   : > { %4861 = vmatmul.msk.f32.vlgmr.msra.gmra.mxu1 %vm396_vm0, %v3998_v24  ;;  %v4408_v24 = vld [vmem:[%s7451_s5 + $0x1b0] sm:$0xff] }
0x1862   : > { %4872 = vmatmul.msk.f32.vlgmr.msrb.gmra.mxu1 %vm396_vm0, %v4048_v51  ;;  %v4375_v51 = vld [vmem:[%s7452_s6 + $0x78] sm:$0xff] }
0x1873   : > { %v3875_v8 = vpop.f32.mrf.mxu1 }
0x1874   : > { %4862 = vmatmul.msk.f32.vlgmr.msrb.gmra.mxu3 %vm396_vm0, %v3875_v8  ;;  %v4407_v8 = vld [vmem:[%s7451_s5 + $0x1a8] sm:$0xff] }
0x18bf   : > { %v4251_v54 = vpop.f32.mrf.mxu2 }
0x18c0   : > { %v4254_v14 = vmul.f32 0.35355338, %v4251_v54 }
0x18c2   : > { %v4255_v21 = vsel %vm1571_vm1, %v4254_v14, -inf }
0x18c3   : > { %4256 = vmax.xlane.f32.xlu2 %v4255_v21  ;;  %v4406_v21 = vld [vmem:[%s7451_s5 + $0x1a0] sm:$0xff] }
0x18d7   : > { %v7335_v58 = vpop.f32.mrf.mxu1 }
0x18db   : > { %5075 = vrot.lane.b32.xlu2 %v7182_v16, %s5358_s11  ;;  %v3762_v16 = vld [vmem:[%s7451_s5 + $0x160] sm:$0xff] }
0x18dc   : > { %4188 = vmatpush.msra.mxu3 %v3762_v16 }
0x18df   : > { %v4104_v36 = vpop.f32.mrf.mxu1 }
0x18e0   : > { %v4107_v56 = vmul.f32 0.35355338, %v4104_v36  ;;  %v4405_v36 = vld [vmem:[%s7451_s5 + $0x198] sm:$0xff] }
0x18e2   : > { %v4108_v5 = vsel %vm1571_vm1, %v4107_v56, -inf }
0x18e3   : > { %4109 = vmax.xlane.f32.xlu1 %v4108_v5 }
0x18f7   : > { %v4044_v27 = vpop.f32.mrf.mxu3 }
0x18f8   : > { %v4045_v0 = vadd.f32 %v4044_v27, %v7335_v58 }
0x18fc   : > { %4282 = vrot.lane.b32.xlu1 %v7112_v12, %s5358_s11 }
0x1904   : > { %5065 = vrot.lane.b32.xlu1 %v7166_v3, %s5358_s11 }
0x1936   : > { %v4257_v6 = vpop.xlane.xlu2 %4256 }
0x1937   : > { %v4258_v30 = vsub.f32 %v4254_v14, %v4257_v6 }
0x1939   : > { %v4259_v31 = vmul.f32 1.442695, %v4258_v30 }
0x193b   : > { %5323 = vpow2.f32 %v4259_v31  ;;  %v4343_v31 = vld [vmem:[%s7451_s5 + $0x178] sm:$0x3] }
0x193c   : > { %v4368_v16 = vperm.slane %v4343_v31, 0 }
0x193e   : > { %v5076_v46 = vpop.permute.xlu2 %5075 }
0x193f   : > { %v5077_v45 = vunpack.i.l.bf16 %v5076_v46  ;;  %v5078_v23 = vunpack.i.h.bf16 %v5076_v46 }
0x1941   : > { %v5324_v18 = vpop.eup %5323 }
0x1942   : > { %v4261_v34 = vsel %vm1571_vm1, %v5324_v18, 0.0 }
0x1943   : > { %4262 = vadd.xlane.f32.xlu1 %v4261_v34 }
0x1956   : > { %v4110_v53 = vpop.xlane.xlu1 %4109 }
0x1957   : > { %v4111_v20 = vsub.f32 %v4107_v56, %v4110_v53 }
0x1959   : > { %v4112_v57 = vmul.f32 1.442695, %v4111_v20  ;;  %v4370_v20 = vperm.slane %v4343_v31, 1 }
0x195b   : > { %5325 = vpow2.f32 %v4112_v57 }
0x1961   : > { %v5326_v12 = vpop.eup %5325 }
0x1962   : > { %v4114_v3 = vsel %vm1571_vm1, %v5326_v12, 0.0 }
0x1963   : > { %4115 = vadd.xlane.f32.xlu0 %v4114_v3 }
0x196e   : > { %v4283_v37 = vpop.permute.xlu1 %4282 }
0x196f   : > { %4886 = vmatpush.msk.msrb.mxu3 %vm574_vm5, %v4283_v37  ;;  %v4404_v37 = vld [vmem:[%s7451_s5 + $0x190] sm:$0xff] }
0x1976   : > { %v5066_v7 = vpop.permute.xlu1 %5065 }
0x1977   : > { %5060 = vrot.lane.b32.xlu0 %v7100_v19, %s5358_s11  ;;  %v5067_v48 = vunpack.i.l.bf16 %v5066_v7  ;;  %v5068_v29 = vunpack.i.h.bf16 %v5066_v7 }
0x197f   : > { %5070 = vrot.lane.b32.xlu0 %v7176_v61, %s5358_s11 }
0x19b6   : > { %v4263_v10 = vpop.xlane.xlu1 %4262 }
0x19d6   : > { %v4116_v26 = vpop.xlane.xlu0 %4115 }
0x19d7   : > { %5327 = vrcp.f32 %v4116_v26  ;;  %v4403_v26 = vld [vmem:[%s7451_s5 + $0x188] sm:$0xff] }
0x19d8   : > { %5329 = vrcp.f32 %v4263_v10 }
0x19dd   : > { %v5328_v25 = vpop.eup %5327 }
0x19de   : > { %v4118_v59 = vmul.f32 %v5328_v25, %v5326_v12  ;;  %v5330_v62 = vpop.eup %5329  ;;  %v4402_v25 = vld [vmem:[%s7451_s5 + $0x180] sm:$0xff] }
0x19df   : > { %v4265_v52 = vmul.f32 %v5330_v62, %v5324_v18  ;;  %v4465_v62 = vld [vmem:[%s7454_s8 + $0x38] sm:$0xff] }
0x19e0   : > { %4874 = vmatmul.msk.f32.vlgmr.msrb.gmra.mxu0 %vm1571_vm1, %v4118_v59  ;;  %v5090_v59 = vld [vmem:[%s7452_s6 + $0x80] ss:$0 sm:$0xff] }
0x19e1   : > { %4393 = vmatpush.msrb.mxu0 %v4375_v51 }
0x19e3   : > { %4394 = vmatpush.msrb.mxu0 %v4374_v40 }
0x19e5   : > { %4395 = vmatpush.msrb.mxu0 %v4373_v35 }
0x19e7   : > { %4396 = vmatpush.msrb.mxu0 %v4372_v4 }
0x19e9   : > { %v5061_v1 = vpop.permute.xlu0 %5060 }
0x19ea   : > { %v5062_v9 = vunpack.i.l.bf16 %v5061_v1  ;;  %v5063_v32 = vunpack.i.h.bf16 %v5061_v1 }
0x19ec   : > { %4305 = vmatpush.msrb.mxu3 %v5062_v9 }
0x19ee   : > { %4306 = vmatpush.msrb.mxu3 %v5063_v32  ;;  %v5091_v32 = vld [vmem:[%s7451_s5 + $0x1c0] ss:$0 sm:$0xff] }
0x19f0   : > { %4307 = vmatpush.msrb.mxu3 %v5067_v48 }
0x19f1   : > { %v5071_v17 = vpop.permute.xlu0 %5070 }
0x19f2   : > { %v5072_v19 = vunpack.i.l.bf16 %v5071_v17  ;;  %4308 = vmatpush.msrb.mxu3 %v5068_v29  ;;  %v5073_v61 = vunpack.i.h.bf16 %v5071_v17 }
0x19f4   : > { %4309 = vmatpush.msrb.mxu3 %v5072_v19 }
0x19f6   : > { %4310 = vmatpush.msrb.mxu3 %v5073_v61 }
0x19f8   : > { %4311 = vmatpush.msrb.mxu3 %v5077_v45 }
0x19fa   : > { %4312 = vmatpush.msrb.mxu3 %v5078_v23 }
0x1a5d   : > { %v4167_v39 = vpop.f32.mrf.mxu0 }
0x1a5e   : > { %4875 = vmatmul.msk.f32.vlgmr.msra.gmra.mxu3 %vm396_vm0, %v4167_v39  ;;  %v4466_v39 = vld [vmem:[%s7454_s8 + $0x40] sm:$0xff] }
0x1a5f   : > { %4423 = vmatpush.msra.mxu3 %v4409_v60 }
0x1a61   : > { %4424 = vmatpush.msra.mxu3 %v4408_v24 }
0x1a63   : > { %4425 = vmatpush.msra.mxu3 %v4407_v8 }
0x1a65   : > { %4426 = vmatpush.msra.mxu3 %v4406_v21 }
0x1a66   : > { %4887 = vmatmul.msk.f32.vlgmr.msrb.gmra.mxu3 %vm1571_vm1, %v4265_v52  ;;  %v4464_v52 = vld [vmem:[%s7454_s8 + $0x30] sm:$0xff] }
0x1a67   : > { %4427 = vmatpush.msra.mxu3 %v4405_v36 }
0x1a69   : > { %4428 = vmatpush.msra.mxu3 %v4404_v37 }
0x1a6b   : > { %4429 = vmatpush.msra.mxu3 %v4403_v26 }
0x1a6d   : > { %4430 = vmatpush.msra.mxu3 %v4402_v25 }
0x1ae1   : > { %v4190_v55 = vpop.f32.mrf.mxu3 }
0x1ae2   : > { %v4193_v47 = vadd.f32 %v4190_v55, %v4045_v0 }
0x1ae9   : > { %v4314_v42 = vpop.f32.mrf.mxu3 }
0x1aea   : > { %4888 = vmatmul.msk.f32.vlgmr.msra.gmra.mxu0 %vm396_vm0, %v4314_v42 }
0x1aeb   : > { %4484 = vmatpush.msra.mxu0 %v4466_v39 }
0x1aed   : > { %4485 = vmatpush.msra.mxu0 %v4465_v62 }
0x1aef   : > { %4486 = vmatpush.msra.mxu0 %v4464_v52 }
0x1af1   : > { %4487 = vmatpush.msra.mxu0 %v4463_v33 }
0x1b67   : > { %v4337_v49 = vpop.f32.mrf.mxu0 }
0x1b68   : > { %v4340_v2 = vadd.f32 %v4337_v49, %v4193_v47 }
0x1b6a   : > { %v4342_v50 = vadd.f32 %v5089_v13, %v4340_v2  ;;  %v4435_v2 = vld [vmem:[%s7451_s5 + $0x1c8] sm:$0x3] }
0x1b6c   : > { %v4345_v43 = vadd.f32 %v4344_v41, %v4342_v50 }
0x1b6e   : > { %v4346_v38 = vsel %vm446_vm2, %v4345_v43, 0.0 }
0x1b6f   : > { %4347 = vadd.xlane.f32.xlu0 %v4346_v38 }
0x1be2   : > { %v4348_v63 = vpop.xlane.xlu0 %4347 }
0x1be3   : > { %v4349_v44 = vmul.f32 %v4348_v63, %v5639_v22  ;;  %v4461_v63 = vperm.slane %v4435_v2, 1 }
0x1be5   : > { %v4350_v11 = vsub.f32 %v4345_v43, %v4349_v44  ;;  %v4459_v43 = vperm.slane %v4435_v2, 0 }
0x1be7   : > { %v4351_v15 = vmul.f32 %v4350_v11, %v4350_v11 }
0x1be9   : > { %v4352_v28 = vsel %vm446_vm2, %v4351_v15, 0.0  ;;  %v5092_v15 = vld [vmem:[%s7454_s8 + $0x48] ss:$0 sm:$0xff] }
0x1bea   : > { %4353 = vadd.xlane.f32.xlu2 %v4352_v28 }
0x1c5d   : > { %v4354_v54 = vpop.xlane.xlu2 %4353 }
0x1c5e   : > { %v4355_v14 = vmul.f32 %v4354_v54, %v5639_v22 }
0x1c60   : > { %v4356_v58 = vadd.f32 1e-05, %v4355_v14 }
0x1c62   : > { %5331 = vrsqrt.f32 %v4356_v58  ;;  %vm4363_vm5 = vweird.f32 %v4356_v58 }
0x1c68   : > { %v5332_v56 = vpop.eup %5331 }
0x1c69   : > { %v4358_v5 = vmul.f32 %v5332_v56, %v4356_v58  ;;  %vm4364_vm0 = vweird.f32 %v5332_v56 }
0x1c6a   : > { %vm4365_vm1 = vmor %vm4363_vm5, %vm4364_vm0 }
0x1c6b   : > { %v4359_v6 = vmul.f32 %v5332_v56, %v4358_v5 }
0x1c6d   : > { %v4360_v30 = vmul.f32 0.5, %v4359_v6 }
0x1c6f   : > { %v4361_v18 = vsub.f32 1.5, %v4360_v30 }
0x1c71   : > { %v4362_v34 = vmul.f32 %v5332_v56, %v4361_v18 }
0x1c73   : > { %v4366_v53 = vsel %vm4365_vm1, %v5332_v56, %v4362_v34 }
0x1c74   : > { %v4367_v57 = vmul.f32 %v4366_v53, %v4350_v11 }
0x1c76   : > { %v4369_v12 = vmul.f32 %v4368_v16, %v4367_v57 }
0x1c78   : > { %v4371_v3 = vadd.f32 %v4370_v20, %v4369_v12 }
0x1c7a   : > { %4889 = vmatmul.msk.f32.vlgmr.msrb.gmra.mxu0 %vm446_vm2, %v4371_v3 }
0x1cf7   : > { %v4398_v1 = vpop.f32.mrf.mxu0 }
0x1cf8   : > { %v4399_v9 = vadd.f32 %v5090_v59, %v4398_v1 }
0x1cfa   : > { %v4401_v7 = vmax.f32 %v4399_v9, 0.0 }
0x1cfc   : > { %4890 = vmatmul.msk.f32.vlgmr.msra.gmra.mxu3 %vm1134_vm14, %v4401_v7 }
0x1d7f   : > { %v4432_v48 = vpop.f32.mrf.mxu3 }
0x1d80   : > { %v4433_v29 = vadd.f32 %v5091_v32, %v4432_v48 }
0x1d82   : > { %v4436_v17 = vadd.f32 %v4433_v29, %v4371_v3 }
0x1d84   : > { %v4437_v19 = vsel %vm446_vm2, %v4436_v17, 0.0 }
0x1d85   : > { %4438 = vadd.xlane.f32.xlu1 %v4437_v19 }
0x1df8   : > { %v4439_v46 = vpop.xlane.xlu1 %4438 }
0x1df9   : > { %v4440_v61 = vmul.f32 %v4439_v46, %v5639_v22 }
0x1dfb   : > { %v4441_v45 = vsub.f32 %v4436_v17, %v4440_v61 }
0x1dfd   : > { %v4442_v23 = vmul.f32 %v4441_v45, %v4441_v45 }
0x1dff   : > { %v4443_v10 = vsel %vm446_vm2, %v4442_v23, 0.0 }
0x1e00   : > { %4444 = vadd.xlane.f32.xlu1 %v4443_v10 }
0x1e73   : > { %v4445_v27 = vpop.xlane.xlu1 %4444 }
0x1e74   : > { %v4446_v0 = vmul.f32 %v4445_v27, %v5639_v22 }
0x1e76   : > { %v4447_v55 = vadd.f32 1e-05, %v4446_v0 }
0x1e78   : > { %5333 = vrsqrt.f32 %v4447_v55  ;;  %vm4454_vm12 = vweird.f32 %v4447_v55 }
0x1e7e   : > { %v5334_v47 = vpop.eup %5333 }
0x1e7f   : > { %v4449_v42 = vmul.f32 %v5334_v47, %v4447_v55  ;;  %vm4455_vm14 = vweird.f32 %v5334_v47 }
0x1e80   : > { %vm4456_vm6 = vmor %vm4454_vm12, %vm4455_vm14 }
0x1e81   : > { %v4450_v13 = vmul.f32 %v5334_v47, %v4449_v42 }
0x1e83   : > { %v4451_v49 = vmul.f32 0.5, %v4450_v13 }
0x1e85   : > { %v4452_v41 = vsub.f32 1.5, %v4451_v49 }
0x1e87   : > { %v4453_v50 = vmul.f32 %v5334_v47, %v4452_v41 }
0x1e89   : > { %v4457_v38 = vsel %vm4456_vm6, %v5334_v47, %v4453_v50 }
0x1e8a   : > { %v4458_v22 = vmul.f32 %v4457_v38, %v4441_v45 }
0x1e8c   : > { %v4460_v44 = vmul.f32 %v4459_v43, %v4458_v22 }
0x1e8e   : > { %v4462_v11 = vadd.f32 %v4461_v63, %v4460_v44 }
0x1e90   : > { %4891 = vmatmul.msk.f32.vlgmr.msra.gmra.mxu0 %vm446_vm2, %v4462_v11 }
0x1f0d   : > { %v4489_v28 = vpop.f32.mrf.mxu0 }
0x1f0e   : > { %v4490_v51 = vadd.f32 %v5092_v15, %v4489_v28 }
0x1f10   : > { %4492 = vst [vmem:[%s5766_s21] sm:$0xff] %v4490_v51 }
0x1f11 PF: > { %s19_s30 = sadd.s32 1, %s5350_s30  }
0x1f12   : > { %p16_p4 = scmp.ge.s32.totalorder %s19_s30, 4  }
0x1f14   :  { %18 = sbr.rel (!%p16_p4) target bundleno = 1 (0x1), region = 98 }

</bundles_post_ra>
